<compile_context>
chip_gen: v5e
topology: v5e:2x2
jax: 0.10.0
libtpu: 0.0.40
codegen_flags: <defaults>
</compile_context>

<pallas_src>
import jax
import jax.numpy as jnp
from jax.experimental import pallas as pl
from jax.experimental.pallas import tpu as pltpu

LANE = 128


def _round_up(n, m):
    return ((n + m - 1) // m) * m


def _erf(x):
    # Abramowitz & Stegun 7.1.26 polynomial (max abs err ~1.5e-7): keeps PyTorch's
    # exact-GELU semantics using only exp/mul/add/where (all guaranteed to lower;
    # the exp lands on the EUP slot which is free relative to the VALU).
    a1, a2, a3, a4, a5 = 0.254829592, -0.284496736, 1.421413741, -1.453152027, 1.061405429
    p = 0.3275911
    ax = jnp.abs(x)
    t = 1.0 / (1.0 + p * ax)
    poly = t * (a1 + t * (a2 + t * (a3 + t * (a4 + t * a5))))
    e = 1.0 - poly * jnp.exp(-ax * ax)
    return jnp.where(x >= 0.0, e, -e)


def _gelu_exact(x):
    # PyTorch F.gelu default: x * 0.5 * (1 + erf(x / sqrt(2)))
    return 0.5 * x * (1.0 + _erf(x * 0.7071067811865476))


def feedforward_kernel(x_ref, xtop_ref, xbot_ref, w_in_ref, b_in_ref,
                       w_dw_ref, b_dw_ref, w_out_ref, b_out_ref, o_ref, t_ref):
    # x_ref:    (1, TH, W, Cp)   bf16  spatial tile of one image
    # xtop_ref: (1, 1,  W, Cp)   bf16  row above the tile (clamped at the border)
    # xbot_ref: (1, 1,  W, Cp)   bf16  row below the tile (clamped at the border)
    # w_in_ref: (Cp, F2p) bf16,  b_in_ref: (1, F2p) f32
    # w_dw_ref: (3, 3, F2p) f32, b_dw_ref: (1, 1, F2p) f32
    # w_out_ref:(Fp, Cp) bf16,   b_out_ref: (1, Cp) f32
    # o_ref:    (1, TH, W, Cp)   bf16
    # t_ref:    (TH+2, W, F2p)   f32 scratch holding the project_in result + halo rows
    _, TH, W, Cp = x_ref.shape
    F2p = w_in_ref.shape[1]
    Fp = F2p // 2

    i = pl.program_id(1)
    n_h = pl.num_programs(1)
    # halo rows outside the image must behave as zeros of the dwconv input
    s_top = jnp.where(i == 0, 0.0, 1.0)
    s_bot = jnp.where(i == n_h - 1, 0.0, 1.0)

    # ---- project_in: 1x1 conv == channel matmul (bf16 on MXU, f32 accumulate) ----
    # Three matmuls written straight into row slices of the scratch: no x_ext concat,
    # no full-tensor border-masking rebuild (only the 1-row halo results are scaled).
    t_ref[1:TH + 1] = (
        jnp.dot(x_ref[0].reshape(TH * W, Cp), w_in_ref[...],
                preferred_element_type=jnp.float32) + b_in_ref[...]
    ).reshape(TH, W, F2p)
    t_ref[0:1] = s_top * (
        jnp.dot(xtop_ref[0].reshape(W, Cp), w_in_ref[...],
                preferred_element_type=jnp.float32) + b_in_ref[...]
    ).reshape(1, W, F2p)
    t_ref[TH + 1:TH + 2] = s_bot * (
        jnp.dot(xbot_ref[0].reshape(W, Cp), w_in_ref[...],
                preferred_element_type=jnp.float32) + b_in_ref[...]
    ).reshape(1, W, F2p)

    # ---- depthwise 3x3 conv, padding=1 ----
    # dw outermost: only ONE W-shifted copy of t is live at any time.
    t = t_ref[...]                                      # (TH+2, W, F2p)
    wdw = w_dw_ref[...]                                 # (3, 3, F2p), small
    zcol = jnp.zeros((TH + 2, 1, F2p), jnp.float32)
    y = jnp.zeros((TH, W, F2p), jnp.float32)
    for dw in range(3):
        if dw == 0:       # value at w comes from column w-1 (zero at the left border)
            ts = jnp.concatenate([zcol, t[:, :W - 1, :]], axis=1)
        elif dw == 2:     # value at w comes from column w+1 (zero at the right border)
            ts = jnp.concatenate([t[:, 1:, :], zcol], axis=1)
        else:
            ts = t
        for dh in range(3):
            y = y + ts[dh:dh + TH] * wdw[dh:dh + 1, dw:dw + 1, :]
    y = y + b_dw_ref[...]
    # TODO(synk): on v6e/v7x a bf16 t/ts (with f32 accumulation) would halve VALU slot
    # pressure and the widest VMEM intermediates; kept f32 so the same kernel stays
    # optimal on v5e (no bf16 VALU/EUP there).

    # ---- gate: gelu(x1) * x2 (chunk at Fp is lane-aligned, Fp % 128 == 0) ----
    g = _gelu_exact(y[:, :, :Fp]) * y[:, :, Fp:]

    # ---- project_out: 1x1 conv == channel matmul; bf16 store halves HBM writeback ----
    out = (jnp.dot(g.astype(jnp.bfloat16).reshape(TH * W, Fp), w_out_ref[...],
                   preferred_element_type=jnp.float32) + b_out_ref[...])
    o_ref[0] = out.reshape(TH, W, Cp).astype(o_ref.dtype)


def _vmem_caps():
    """(working-set budget for tile_h, compiler vmem_limit_bytes) — generation aware."""
    cap = 64 * 1024 * 1024                       # assume v7x-like 64 MiB/TC if unknown
    try:
        cap = int(pltpu.get_tpu_info().vmem_capacity_bytes)
    except Exception:
        pass
    vmem_limit = min(cap * 3 // 4, 96 * 1024 * 1024)   # ~48 MiB on v7x, 96 MiB on v5e/v6e
    budget = min(cap * 2 // 5, 52 * 1024 * 1024)        # headroom for compiler scratch
    return budget, vmem_limit


def _estimate_vmem_bytes(tile_h, W, Cp, F2p):
    """Live-buffer estimate per grid step (scratch + values + double-buffered IO)."""
    row_f2 = W * F2p * 4
    t_like = 3 * (tile_h + 2) * row_f2          # t_ref scratch + loaded t + one shifted copy
    y_like = tile_h * row_f2                    # dwconv accumulator
    g_like = tile_h * W * (F2p // 2) * 4        # gate value
    out_f32 = tile_h * W * Cp * 4               # project_out f32 result before bf16 cast
    io_blk = 2 * 2 * tile_h * W * Cp * 2        # double-buffered bf16 in + out tiles
    halo_blk = 2 * 2 * W * Cp * 2               # double-buffered 1-row halos
    weights = 2 * (Cp * F2p * 2 + F2p * 4 + 9 * F2p * 4 + F2p * 4
                   + (F2p // 2) * Cp * 2 + Cp * 4)
    return t_like + y_like + g_like + out_f32 + io_blk + halo_blk + weights


def _choose_tile_h(B, H, W, Cp, F2p, budget_bytes):
    feasible = [d for d in range(1, H + 1)
                if H % d == 0 and _estimate_vmem_bytes(d, W, Cp, F2p) <= budget_bytes]
    if not feasible:
        return 1
    best = max(feasible)
    # v7x megacore: prefer an even total number of grid steps so the 2 TCs split
    # cleanly, but never shrink the tile below half of the best feasible size.
    if (B * (H // best)) % 2 == 1:
        even = [d for d in feasible if (B * (H // d)) % 2 == 0 and 2 * d >= best]
        if even:
            best = max(even)
    return best
    # TODO(synk): support ragged H (no good divisor) via a short masked last tile.


def feedforward_pallas(x_nchw, params, tile_h=None):
    """x_nchw: (B, C, H, W) float32 -> (B, C, H, W) float32."""
    w_in, b_in, w_dw, b_dw, w_out, b_out = params
    B, C, H, W = x_nchw.shape
    F2 = w_in.shape[1]
    Fh = F2 // 2

    Cp = _round_up(C, LANE)
    Fp = _round_up(Fh, LANE)
    F2p = 2 * Fp
    pc, pf = Cp - C, Fp - Fh

    # Cast to bf16 BEFORE the layout pass so the NCHW->NHWC transpose moves half the
    # bytes; then zero-pad channels to a lane multiple.
    # TODO(synk): an NHWC/bf16-native caller would avoid this boundary pass entirely.
    x = jnp.transpose(x_nchw.astype(jnp.bfloat16), (0, 2, 3, 1))
    x = jnp.pad(x, ((0, 0), (0, 0), (0, 0), (0, pc)))

    # Repack weights: gate / value halves each zero-padded to Fp so the in-kernel chunk
    # at Fp is a 128-aligned lane slice.  Zero padding keeps semantics exact.
    w_in_p = jnp.concatenate(
        [jnp.pad(w_in[:, :Fh], ((0, pc), (0, pf))),
         jnp.pad(w_in[:, Fh:], ((0, pc), (0, pf)))], axis=1).astype(jnp.bfloat16)
    b_in_p = jnp.concatenate(
        [jnp.pad(b_in[:, :Fh], ((0, 0), (0, pf))),
         jnp.pad(b_in[:, Fh:], ((0, 0), (0, pf)))], axis=1).astype(jnp.float32)
    w_dw_p = jnp.concatenate(
        [jnp.pad(w_dw[:, :, :Fh], ((0, 0), (0, 0), (0, pf))),
         jnp.pad(w_dw[:, :, Fh:], ((0, 0), (0, 0), (0, pf)))], axis=2).astype(jnp.float32)
    b_dw_p = jnp.concatenate(
        [jnp.pad(b_dw[:, :, :Fh], ((0, 0), (0, 0), (0, pf))),
         jnp.pad(b_dw[:, :, Fh:], ((0, 0), (0, 0), (0, pf)))], axis=2).astype(jnp.float32)
    w_out_p = jnp.pad(w_out, ((0, pf), (0, pc))).astype(jnp.bfloat16)
    b_out_p = jnp.pad(b_out, ((0, 0), (0, pc))).astype(jnp.float32)

    budget, vmem_limit = _vmem_caps()
    if tile_h is None:
        tile_h = _choose_tile_h(B, H, W, Cp, F2p, budget)
    assert H % tile_h == 0, "tile_h must divide H"
    n_h = H // tile_h

    # TODO(synk): when C << 128, writing only the true C output channels (masked vst)
    # would cut writeback further than the lane-dense padded store; benchmark both.
    out_p = pl.pallas_call(
        feedforward_kernel,
        out_shape=jax.ShapeDtypeStruct((B, H, W, Cp), jnp.bfloat16),
        grid_spec=pltpu.PrefetchScalarGridSpec(
            num_scalar_prefetch=0,
            grid=(B, n_h),
            in_specs=[
                # main spatial tile
                pl.BlockSpec((1, tile_h, W, Cp), lambda b, i: (b, i, 0, 0)),
                # 1-row halos (block size 1 along H => block index == row index);
                # clamped at the borders, the kernel zeroes them there.
                pl.BlockSpec((1, 1, W, Cp),
                             lambda b, i: (b, jnp.maximum(i * tile_h - 1, 0), 0, 0)),
                pl.BlockSpec((1, 1, W, Cp),
                             lambda b, i: (b, jnp.minimum(i * tile_h + tile_h, H - 1), 0, 0)),
                # weights: constant index maps -> stay resident across grid steps
                pl.BlockSpec((Cp, F2p), lambda b, i: (0, 0)),
                pl.BlockSpec((1, F2p), lambda b, i: (0, 0)),
                pl.BlockSpec((3, 3, F2p), lambda b, i: (0, 0, 0)),
                pl.BlockSpec((1, 1, F2p), lambda b, i: (0, 0, 0)),
                pl.BlockSpec((Fp, Cp), lambda b, i: (0, 0)),
                pl.BlockSpec((1, Cp), lambda b, i: (0, 0)),
            ],
            out_specs=pl.BlockSpec((1, tile_h, W, Cp), lambda b, i: (b, i, 0, 0)),
            scratch_shapes=[pltpu.VMEM((tile_h + 2, W, F2p), jnp.float32)],
        ),
        compiler_params=pltpu.CompilerParams(
            dimension_semantics=("parallel", "parallel"),
            vmem_limit_bytes=int(vmem_limit),
        ),
    )(x, x, x, w_in_p, b_in_p, w_dw_p, b_dw_p, w_out_p, b_out_p)

    # Crop channel pad and transpose back while still bf16; upcast only at the boundary
    # (a bf16/NHWC-native consumer could skip this entirely).
    out = jnp.transpose(out_p[:, :, :, :C], (0, 3, 1, 2))
    return out.astype(x_nchw.dtype)


def make_params(dim, ffn_expansion_factor, key):
    """Deterministic synthetic parameters in 'squeezed torch Conv2d' layout."""
    hidden = int(dim * ffn_expansion_factor)
    F2 = hidden * 2
    ks = jax.random.split(key, 6)
    w_in = 0.2 * jax.random.normal(ks[0], (dim, F2), jnp.float32)
    b_in = 0.1 * jax.random.normal(ks[1], (1, F2), jnp.float32)
    w_dw = 0.2 * jax.random.normal(ks[2], (3, 3, F2), jnp.float32)
    b_dw = 0.1 * jax.random.normal(ks[3], (1, 1, F2), jnp.float32)
    w_out = 0.2 * jax.random.normal(ks[4], (hidden, dim), jnp.float32)
    b_out = 0.1 * jax.random.normal(ks[5], (1, dim), jnp.float32)
    return (w_in, b_in, w_dw, b_dw, w_out, b_out)


def feedforward_reference(x_nchw, params):
    """Pure-JAX f32 reference of the PyTorch forward."""
    w_in, b_in, w_dw, b_dw, w_out, b_out = params
    x = jnp.transpose(x_nchw, (0, 2, 3, 1))
    B, H, W, C = x.shape
    F2 = w_in.shape[1]
    Fh = F2 // 2
    hp = jax.lax.Precision.HIGHEST
    t = jnp.einsum('bhwc,cf->bhwf', x, w_in, precision=hp) + b_in.reshape(-1)
    tp = jnp.pad(t, ((0, 0), (1, 1), (1, 1), (0, 0)))
    y = jnp.zeros_like(t)
    for dh in range(3):
        for dw in range(3):
            y = y + tp[:, dh:dh + H, dw:dw + W, :] * w_dw[dh, dw, :]
    y = y + b_dw.reshape(-1)
    g = jax.nn.gelu(y[..., :Fh], approximate=False) * y[..., Fh:]
    out = jnp.einsum('bhwf,fc->bhwc', g, w_out, precision=hp) + b_out.reshape(-1)
    return jnp.transpose(out, (0, 3, 1, 2))


if __name__ == "__main__":
    B, dim, H, W = 2, 4, 16, 16
    ffn_expansion_factor = 2.0          # hidden_features = 8, hidden*2 = 16

    key = jax.random.PRNGKey(0)
    kx, kp = jax.random.split(key)
    x = jax.random.normal(kx, (B, dim, H, W), jnp.float32)   # NCHW like PyTorch
    params = make_params(dim, ffn_expansion_factor, kp)

    ref = jax.block_until_ready(feedforward_reference(x, params))

    # multi-tile path (2 spatial tiles per image -> exercises halo loads + border masks)
    out_tiled = jax.block_until_ready(feedforward_pallas(x, params, tile_h=8))
    # auto-chosen tile (whole image per grid step at this toy size)
    out_auto = jax.block_until_ready(feedforward_pallas(x, params))

    assert out_tiled.shape == (B, dim, H, W)
    assert jnp.allclose(out_tiled, ref, atol=2e-2, rtol=2e-2), "tiled kernel mismatch"
    assert jnp.allclose(out_auto, ref, atol=2e-2, rtol=2e-2), "auto-tile kernel mismatch"

    print("KERNEL_OK")
</pallas_src>

<mosaic_0001>
module attributes {stable_mosaic.version = 11 : i64} {
  func.func @feedforward_kernel(%arg0: i32, %arg1: i32, %arg2: memref<1x8x16x128xbf16, #tpu.memory_space<vmem>>, %arg3: memref<1x1x16x128xbf16, #tpu.memory_space<vmem>>, %arg4: memref<1x1x16x128xbf16, #tpu.memory_space<vmem>>, %arg5: memref<128x256xbf16, #tpu.memory_space<vmem>>, %arg6: memref<1x256xf32, #tpu.memory_space<vmem>>, %arg7: memref<3x3x256xf32, #tpu.memory_space<vmem>>, %arg8: memref<1x1x256xf32, #tpu.memory_space<vmem>>, %arg9: memref<128x128xbf16, #tpu.memory_space<vmem>>, %arg10: memref<1x128xf32, #tpu.memory_space<vmem>>, %arg11: memref<1x8x16x128xbf16, #tpu.memory_space<vmem>>, %arg12: memref<10x16x256xf32, #tpu.memory_space<vmem>>) attributes {dimension_semantics = [#tpu.dimension_semantics<parallel>, #tpu.dimension_semantics<parallel>], iteration_bounds = array<i64: 2, 2>, scalar_prefetch = 0 : i64, scratch_operands = 1 : i64, tpu.core_type = #tpu.core_type<tc>, window_params = [{transform_indices = @transform_0, window_bounds = array<i64: 1, 8, 16, 128>}, {transform_indices = @transform_1, window_bounds = array<i64: 1, 1, 16, 128>}, {transform_indices = @transform_2, window_bounds = array<i64: 1, 1, 16, 128>}, {pipeline_mode = #tpu.pipeline_mode<synchronous>, transform_indices = @transform_3, window_bounds = array<i64: 128, 256>}, {pipeline_mode = #tpu.pipeline_mode<synchronous>, transform_indices = @transform_4, window_bounds = array<i64: 1, 256>}, {pipeline_mode = #tpu.pipeline_mode<synchronous>, transform_indices = @transform_5, window_bounds = array<i64: 3, 3, 256>}, {pipeline_mode = #tpu.pipeline_mode<synchronous>, transform_indices = @transform_6, window_bounds = array<i64: 1, 1, 256>}, {pipeline_mode = #tpu.pipeline_mode<synchronous>, transform_indices = @transform_7, window_bounds = array<i64: 128, 128>}, {pipeline_mode = #tpu.pipeline_mode<synchronous>, transform_indices = @transform_8, window_bounds = array<i64: 1, 128>}, {transform_indices = @transform_9, window_bounds = array<i64: 1, 8, 16, 128>}]} {
    %c0_i32 = arith.constant 0 : i32
    %0 = arith.cmpi eq, %arg1, %c0_i32 : i32
    %cst = arith.constant 0.000000e+00 : f32
    %cst_0 = arith.constant 1.000000e+00 : f32
    %1 = arith.select %0, %cst, %cst_0 : f32
    %c1_i32 = arith.constant 1 : i32
    %2 = arith.cmpi eq, %arg1, %c1_i32 : i32
    %cst_1 = arith.constant 0.000000e+00 : f32
    %cst_2 = arith.constant 1.000000e+00 : f32
    %3 = arith.select %2, %cst_1, %cst_2 : f32
    %c0 = arith.constant 0 : index
    %c0_3 = arith.constant 0 : index
    %c0_4 = arith.constant 0 : index
    %c0_5 = arith.constant 0 : index
    %4 = vector.load %arg2[%c0, %c0_3, %c0_4, %c0_5] : memref<1x8x16x128xbf16, #tpu.memory_space<vmem>>, vector<1x8x16x128xbf16>
    %5 = vector.shape_cast %4 : vector<1x8x16x128xbf16> to vector<8x16x128xbf16>
    %6 = vector.shape_cast %5 : vector<8x16x128xbf16> to vector<128x128xbf16>
    %c0_6 = arith.constant 0 : index
    %c0_7 = arith.constant 0 : index
    %7 = vector.load %arg5[%c0_6, %c0_7] : memref<128x256xbf16, #tpu.memory_space<vmem>>, vector<128x256xbf16>
    %cst_8 = arith.constant dense<0.000000e+00> : vector<128x256xf32>
    %8 = tpu.matmul %6, %7, %cst_8 {dimension_numbers = #tpu.dot_dimension_numbers<[1], [0], [0], [1], [0, 0, 1, 1], [], []>} : vector<128x128xbf16>, vector<128x256xbf16>, vector<128x256xf32> -> vector<128x256xf32>
    %c0_9 = arith.constant 0 : index
    %c0_10 = arith.constant 0 : index
    %9 = vector.load %arg6[%c0_9, %c0_10] : memref<1x256xf32, #tpu.memory_space<vmem>>, vector<1x256xf32>
    %10 = vector.broadcast %9 : vector<1x256xf32> to vector<128x256xf32>
    %11 = arith.addf %8, %10 : vector<128x256xf32>
    %12 = vector.shape_cast %11 : vector<128x256xf32> to vector<8x16x256xf32>
    %c1 = arith.constant 1 : index
    %c0_11 = arith.constant 0 : index
    %c0_12 = arith.constant 0 : index
    %13 = vector.load %arg12[%c1, %c0_11, %c0_12] : memref<10x16x256xf32, #tpu.memory_space<vmem>>, vector<8x16x256xf32>
    tpu.vector_store %arg12[%c1, %c0_11, %c0_12], %12 {strides = array<i32>} : memref<10x16x256xf32, #tpu.memory_space<vmem>>, vector<8x16x256xf32>,
    %c0_13 = arith.constant 0 : index
    %c0_14 = arith.constant 0 : index
    %c0_15 = arith.constant 0 : index
    %c0_16 = arith.constant 0 : index
    %14 = vector.load %arg3[%c0_13, %c0_14, %c0_15, %c0_16] : memref<1x1x16x128xbf16, #tpu.memory_space<vmem>>, vector<1x1x16x128xbf16>
    %15 = vector.shape_cast %14 : vector<1x1x16x128xbf16> to vector<1x16x128xbf16>
    %16 = vector.shape_cast %15 : vector<1x16x128xbf16> to vector<16x128xbf16>
    %c0_17 = arith.constant 0 : index
    %c0_18 = arith.constant 0 : index
    %17 = vector.load %arg5[%c0_17, %c0_18] : memref<128x256xbf16, #tpu.memory_space<vmem>>, vector<128x256xbf16>
    %cst_19 = arith.constant dense<0.000000e+00> : vector<16x256xf32>
    %18 = tpu.matmul %16, %17, %cst_19 {dimension_numbers = #tpu.dot_dimension_numbers<[1], [0], [0], [1], [0, 0, 1, 1], [], []>} : vector<16x128xbf16>, vector<128x256xbf16>, vector<16x256xf32> -> vector<16x256xf32>
    %c0_20 = arith.constant 0 : index
    %c0_21 = arith.constant 0 : index
    %19 = vector.load %arg6[%c0_20, %c0_21] : memref<1x256xf32, #tpu.memory_space<vmem>>, vector<1x256xf32>
    %20 = vector.broadcast %19 : vector<1x256xf32> to vector<16x256xf32>
    %21 = arith.addf %18, %20 : vector<16x256xf32>
    %22 = vector.shape_cast %21 : vector<16x256xf32> to vector<1x16x256xf32>
    %23 = vector.broadcast %1 : f32 to vector<1x16x256xf32>
    %24 = arith.mulf %23, %22 : vector<1x16x256xf32>
    %c0_22 = arith.constant 0 : index
    %c0_23 = arith.constant 0 : index
    %c0_24 = arith.constant 0 : index
    %25 = vector.load %arg12[%c0_22, %c0_23, %c0_24] : memref<10x16x256xf32, #tpu.memory_space<vmem>>, vector<1x16x256xf32>
    tpu.vector_store %arg12[%c0_22, %c0_23, %c0_24], %24 {strides = array<i32>} : memref<10x16x256xf32, #tpu.memory_space<vmem>>, vector<1x16x256xf32>,
    %c0_25 = arith.constant 0 : index
    %c0_26 = arith.constant 0 : index
    %c0_27 = arith.constant 0 : index
    %c0_28 = arith.constant 0 : index
    %26 = vector.load %arg4[%c0_25, %c0_26, %c0_27, %c0_28] : memref<1x1x16x128xbf16, #tpu.memory_space<vmem>>, vector<1x1x16x128xbf16>
    %27 = vector.shape_cast %26 : vector<1x1x16x128xbf16> to vector<1x16x128xbf16>
    %28 = vector.shape_cast %27 : vector<1x16x128xbf16> to vector<16x128xbf16>
    %c0_29 = arith.constant 0 : index
    %c0_30 = arith.constant 0 : index
    %29 = vector.load %arg5[%c0_29, %c0_30] : memref<128x256xbf16, #tpu.memory_space<vmem>>, vector<128x256xbf16>
    %cst_31 = arith.constant dense<0.000000e+00> : vector<16x256xf32>
    %30 = tpu.matmul %28, %29, %cst_31 {dimension_numbers = #tpu.dot_dimension_numbers<[1], [0], [0], [1], [0, 0, 1, 1], [], []>} : vector<16x128xbf16>, vector<128x256xbf16>, vector<16x256xf32> -> vector<16x256xf32>
    %c0_32 = arith.constant 0 : index
    %c0_33 = arith.constant 0 : index
    %31 = vector.load %arg6[%c0_32, %c0_33] : memref<1x256xf32, #tpu.memory_space<vmem>>, vector<1x256xf32>
    %32 = vector.broadcast %31 : vector<1x256xf32> to vector<16x256xf32>
    %33 = arith.addf %30, %32 : vector<16x256xf32>
    %34 = vector.shape_cast %33 : vector<16x256xf32> to vector<1x16x256xf32>
    %35 = vector.broadcast %3 : f32 to vector<1x16x256xf32>
    %36 = arith.mulf %35, %34 : vector<1x16x256xf32>
    %c9 = arith.constant 9 : index
    %c0_34 = arith.constant 0 : index
    %c0_35 = arith.constant 0 : index
    %37 = vector.load %arg12[%c9, %c0_34, %c0_35] : memref<10x16x256xf32, #tpu.memory_space<vmem>>, vector<1x16x256xf32>
    tpu.vector_store %arg12[%c9, %c0_34, %c0_35], %36 {strides = array<i32>} : memref<10x16x256xf32, #tpu.memory_space<vmem>>, vector<1x16x256xf32>,
    %c0_36 = arith.constant 0 : index
    %c0_37 = arith.constant 0 : index
    %c0_38 = arith.constant 0 : index
    %38 = vector.load %arg12[%c0_36, %c0_37, %c0_38] : memref<10x16x256xf32, #tpu.memory_space<vmem>>, vector<10x16x256xf32>
    %c0_39 = arith.constant 0 : index
    %c0_40 = arith.constant 0 : index
    %c0_41 = arith.constant 0 : index
    %39 = vector.load %arg7[%c0_39, %c0_40, %c0_41] : memref<3x3x256xf32, #tpu.memory_space<vmem>>, vector<3x3x256xf32>
    %cst_42 = arith.constant 0.000000e+00 : f32
    %40 = vector.broadcast %cst_42 : f32 to vector<10x1x256xf32>
    %cst_43 = arith.constant 0.000000e+00 : f32
    %41 = vector.broadcast %cst_43 : f32 to vector<8x16x256xf32>
    %42 = vector.extract_strided_slice %38 {offsets = [0, 0, 0], sizes = [10, 15, 256], strides = [1, 1, 1]} : vector<10x16x256xf32> to vector<10x15x256xf32>
    %43 = tpu.concatenate %40, %42 in 1 : vector<10x1x256xf32>, vector<10x15x256xf32> -> vector<10x16x256xf32>
    %44 = vector.extract_strided_slice %43 {offsets = [0, 0, 0], sizes = [8, 16, 256], strides = [1, 1, 1]} : vector<10x16x256xf32> to vector<8x16x256xf32>
    %45 = vector.extract_strided_slice %39 {offsets = [0, 0, 0], sizes = [1, 1, 256], strides = [1, 1, 1]} : vector<3x3x256xf32> to vector<1x1x256xf32>
    %46 = vector.broadcast %45 : vector<1x1x256xf32> to vector<8x16x256xf32>
    %47 = arith.mulf %44, %46 : vector<8x16x256xf32>
    %48 = arith.addf %41, %47 : vector<8x16x256xf32>
    %49 = vector.extract_strided_slice %43 {offsets = [1, 0, 0], sizes = [8, 16, 256], strides = [1, 1, 1]} : vector<10x16x256xf32> to vector<8x16x256xf32>
    %50 = vector.extract_strided_slice %39 {offsets = [1, 0, 0], sizes = [1, 1, 256], strides = [1, 1, 1]} : vector<3x3x256xf32> to vector<1x1x256xf32>
    %51 = vector.broadcast %50 : vector<1x1x256xf32> to vector<8x16x256xf32>
    %52 = arith.mulf %49, %51 : vector<8x16x256xf32>
    %53 = arith.addf %48, %52 : vector<8x16x256xf32>
    %54 = vector.extract_strided_slice %43 {offsets = [2, 0, 0], sizes = [8, 16, 256], strides = [1, 1, 1]} : vector<10x16x256xf32> to vector<8x16x256xf32>
    %55 = vector.extract_strided_slice %39 {offsets = [2, 0, 0], sizes = [1, 1, 256], strides = [1, 1, 1]} : vector<3x3x256xf32> to vector<1x1x256xf32>
    %56 = vector.broadcast %55 : vector<1x1x256xf32> to vector<8x16x256xf32>
    %57 = arith.mulf %54, %56 : vector<8x16x256xf32>
    %58 = arith.addf %53, %57 : vector<8x16x256xf32>
    %59 = vector.extract_strided_slice %38 {offsets = [0, 0, 0], sizes = [8, 16, 256], strides = [1, 1, 1]} : vector<10x16x256xf32> to vector<8x16x256xf32>
    %60 = vector.extract_strided_slice %39 {offsets = [0, 1, 0], sizes = [1, 1, 256], strides = [1, 1, 1]} : vector<3x3x256xf32> to vector<1x1x256xf32>
    %61 = vector.broadcast %60 : vector<1x1x256xf32> to vector<8x16x256xf32>
    %62 = arith.mulf %59, %61 : vector<8x16x256xf32>
    %63 = arith.addf %58, %62 : vector<8x16x256xf32>
    %64 = vector.extract_strided_slice %38 {offsets = [1, 0, 0], sizes = [8, 16, 256], strides = [1, 1, 1]} : vector<10x16x256xf32> to vector<8x16x256xf32>
    %65 = vector.extract_strided_slice %39 {offsets = [1, 1, 0], sizes = [1, 1, 256], strides = [1, 1, 1]} : vector<3x3x256xf32> to vector<1x1x256xf32>
    %66 = vector.broadcast %65 : vector<1x1x256xf32> to vector<8x16x256xf32>
    %67 = arith.mulf %64, %66 : vector<8x16x256xf32>
    %68 = arith.addf %63, %67 : vector<8x16x256xf32>
    %69 = vector.extract_strided_slice %38 {offsets = [2, 0, 0], sizes = [8, 16, 256], strides = [1, 1, 1]} : vector<10x16x256xf32> to vector<8x16x256xf32>
    %70 = vector.extract_strided_slice %39 {offsets = [2, 1, 0], sizes = [1, 1, 256], strides = [1, 1, 1]} : vector<3x3x256xf32> to vector<1x1x256xf32>
    %71 = vector.broadcast %70 : vector<1x1x256xf32> to vector<8x16x256xf32>
    %72 = arith.mulf %69, %71 : vector<8x16x256xf32>
    %73 = arith.addf %68, %72 : vector<8x16x256xf32>
    %74 = vector.extract_strided_slice %38 {offsets = [0, 1, 0], sizes = [10, 15, 256], strides = [1, 1, 1]} : vector<10x16x256xf32> to vector<10x15x256xf32>
    %75 = tpu.concatenate %74, %40 in 1 : vector<10x15x256xf32>, vector<10x1x256xf32> -> vector<10x16x256xf32>
    %76 = vector.extract_strided_slice %75 {offsets = [0, 0, 0], sizes = [8, 16, 256], strides = [1, 1, 1]} : vector<10x16x256xf32> to vector<8x16x256xf32>
    %77 = vector.extract_strided_slice %39 {offsets = [0, 2, 0], sizes = [1, 1, 256], strides = [1, 1, 1]} : vector<3x3x256xf32> to vector<1x1x256xf32>
    %78 = vector.broadcast %77 : vector<1x1x256xf32> to vector<8x16x256xf32>
    %79 = arith.mulf %76, %78 : vector<8x16x256xf32>
    %80 = arith.addf %73, %79 : vector<8x16x256xf32>
    %81 = vector.extract_strided_slice %75 {offsets = [1, 0, 0], sizes = [8, 16, 256], strides = [1, 1, 1]} : vector<10x16x256xf32> to vector<8x16x256xf32>
    %82 = vector.extract_strided_slice %39 {offsets = [1, 2, 0], sizes = [1, 1, 256], strides = [1, 1, 1]} : vector<3x3x256xf32> to vector<1x1x256xf32>
    %83 = vector.broadcast %82 : vector<1x1x256xf32> to vector<8x16x256xf32>
    %84 = arith.mulf %81, %83 : vector<8x16x256xf32>
    %85 = arith.addf %80, %84 : vector<8x16x256xf32>
    %86 = vector.extract_strided_slice %75 {offsets = [2, 0, 0], sizes = [8, 16, 256], strides = [1, 1, 1]} : vector<10x16x256xf32> to vector<8x16x256xf32>
    %87 = vector.extract_strided_slice %39 {offsets = [2, 2, 0], sizes = [1, 1, 256], strides = [1, 1, 1]} : vector<3x3x256xf32> to vector<1x1x256xf32>
    %88 = vector.broadcast %87 : vector<1x1x256xf32> to vector<8x16x256xf32>
    %89 = arith.mulf %86, %88 : vector<8x16x256xf32>
    %90 = arith.addf %85, %89 : vector<8x16x256xf32>
    %c0_44 = arith.constant 0 : index
    %c0_45 = arith.constant 0 : index
    %c0_46 = arith.constant 0 : index
    %91 = vector.load %arg8[%c0_44, %c0_45, %c0_46] : memref<1x1x256xf32, #tpu.memory_space<vmem>>, vector<1x1x256xf32>
    %92 = vector.broadcast %91 : vector<1x1x256xf32> to vector<8x16x256xf32>
    %93 = arith.addf %90, %92 : vector<8x16x256xf32>
    %94 = vector.extract_strided_slice %93 {offsets = [0, 0, 0], sizes = [8, 16, 128], strides = [1, 1, 1]} : vector<8x16x256xf32> to vector<8x16x128xf32>
    %cst_47 = arith.constant 5.000000e-01 : f32
    %95 = vector.broadcast %cst_47 : f32 to vector<8x16x128xf32>
    %96 = arith.mulf %95, %94 : vector<8x16x128xf32>
    %cst_48 = arith.constant 0.707106769 : f32
    %97 = vector.broadcast %cst_48 : f32 to vector<8x16x128xf32>
    %98 = arith.mulf %94, %97 : vector<8x16x128xf32>
    %99 = math.absf %98 : vector<8x16x128xf32>
    %cst_49 = arith.constant 0.327591091 : f32
    %100 = vector.broadcast %cst_49 : f32 to vector<8x16x128xf32>
    %101 = arith.mulf %100, %99 : vector<8x16x128xf32>
    %cst_50 = arith.constant 1.000000e+00 : f32
    %102 = vector.broadcast %cst_50 : f32 to vector<8x16x128xf32>
    %103 = arith.addf %102, %101 : vector<8x16x128xf32>
    %cst_51 = arith.constant 1.000000e+00 : f32
    %104 = vector.broadcast %cst_51 : f32 to vector<8x16x128xf32>
    %105 = arith.divf %104, %103 : vector<8x16x128xf32>
    %cst_52 = arith.constant 1.06140542 : f32
    %106 = vector.broadcast %cst_52 : f32 to vector<8x16x128xf32>
    %107 = arith.mulf %105, %106 : vector<8x16x128xf32>
    %cst_53 = arith.constant -1.45315206 : f32
    %108 = vector.broadcast %cst_53 : f32 to vector<8x16x128xf32>
    %109 = arith.addf %108, %107 : vector<8x16x128xf32>
    %110 = arith.mulf %105, %109 : vector<8x16x128xf32>
    %cst_54 = arith.constant 1.42141378 : f32
    %111 = vector.broadcast %cst_54 : f32 to vector<8x16x128xf32>
    %112 = arith.addf %111, %110 : vector<8x16x128xf32>
    %113 = arith.mulf %105, %112 : vector<8x16x128xf32>
    %cst_55 = arith.constant -0.284496725 : f32
    %114 = vector.broadcast %cst_55 : f32 to vector<8x16x128xf32>
    %115 = arith.addf %114, %113 : vector<8x16x128xf32>
    %116 = arith.mulf %105, %115 : vector<8x16x128xf32>
    %cst_56 = arith.constant 0.254829586 : f32
    %117 = vector.broadcast %cst_56 : f32 to vector<8x16x128xf32>
    %118 = arith.addf %117, %116 : vector<8x16x128xf32>
    %119 = arith.mulf %105, %118 : vector<8x16x128xf32>
    %cst_57 = arith.constant 0.000000e+00 : f32
    %120 = vector.broadcast %cst_57 : f32 to vector<8x16x128xf32>
    %121 = arith.subf %120, %99 : vector<8x16x128xf32>
    %122 = arith.mulf %121, %99 : vector<8x16x128xf32>
    %123 = math.exp %122 : vector<8x16x128xf32>
    %124 = arith.mulf %119, %123 : vector<8x16x128xf32>
    %cst_58 = arith.constant 1.000000e+00 : f32
    %125 = vector.broadcast %cst_58 : f32 to vector<8x16x128xf32>
    %126 = arith.subf %125, %124 : vector<8x16x128xf32>
    %cst_59 = arith.constant 0.000000e+00 : f32
    %127 = vector.broadcast %cst_59 : f32 to vector<8x16x128xf32>
    %128 = arith.cmpf oge, %98, %127 : vector<8x16x128xf32>
    %cst_60 = arith.constant 0.000000e+00 : f32
    %129 = vector.broadcast %cst_60 : f32 to vector<8x16x128xf32>
    %130 = arith.subf %129, %126 : vector<8x16x128xf32>
    %131 = arith.select %128, %126, %130 : vector<8x16x128xi1>, vector<8x16x128xf32>
    %cst_61 = arith.constant 1.000000e+00 : f32
    %132 = vector.broadcast %cst_61 : f32 to vector<8x16x128xf32>
    %133 = arith.addf %132, %131 : vector<8x16x128xf32>
    %134 = arith.mulf %96, %133 : vector<8x16x128xf32>
    %135 = vector.extract_strided_slice %93 {offsets = [0, 0, 128], sizes = [8, 16, 128], strides = [1, 1, 1]} : vector<8x16x256xf32> to vector<8x16x128xf32>
    %136 = arith.mulf %134, %135 : vector<8x16x128xf32>
    %137 = arith.truncf %136 : vector<8x16x128xf32> to vector<8x16x128xbf16>
    %138 = vector.shape_cast %137 : vector<8x16x128xbf16> to vector<128x128xbf16>
    %c0_62 = arith.constant 0 : index
    %c0_63 = arith.constant 0 : index
    %139 = vector.load %arg9[%c0_62, %c0_63] : memref<128x128xbf16, #tpu.memory_space<vmem>>, vector<128x128xbf16>
    %cst_64 = arith.constant dense<0.000000e+00> : vector<128x128xf32>
    %140 = tpu.matmul %138, %139, %cst_64 {dimension_numbers = #tpu.dot_dimension_numbers<[1], [0], [0], [1], [0, 0, 1, 1], [], []>} : vector<128x128xbf16>, vector<128x128xbf16>, vector<128x128xf32> -> vector<128x128xf32>
    %c0_65 = arith.constant 0 : index
    %c0_66 = arith.constant 0 : index
    %141 = vector.load %arg10[%c0_65, %c0_66] : memref<1x128xf32, #tpu.memory_space<vmem>>, vector<1x128xf32>
    %142 = vector.broadcast %141 : vector<1x128xf32> to vector<128x128xf32>
    %143 = arith.addf %140, %142 : vector<128x128xf32>
    %144 = vector.shape_cast %143 : vector<128x128xf32> to vector<8x16x128xf32>
    %145 = arith.truncf %144 : vector<8x16x128xf32> to vector<8x16x128xbf16>
    %c0_67 = arith.constant 0 : index
    %c0_68 = arith.constant 0 : index
    %c0_69 = arith.constant 0 : index
    %c0_70 = arith.constant 0 : index
    %146 = vector.load %arg11[%c0_67, %c0_68, %c0_69, %c0_70] : memref<1x8x16x128xbf16, #tpu.memory_space<vmem>>, vector<1x8x16x128xbf16>
    %147 = vector.shape_cast %146 : vector<1x8x16x128xbf16> to vector<8x16x128xbf16>
    %148 = vector.shape_cast %145 : vector<8x16x128xbf16> to vector<1x8x16x128xbf16>
    tpu.vector_store %arg11[%c0_67, %c0_68, %c0_69, %c0_70], %148 {strides = array<i32>} : memref<1x8x16x128xbf16, #tpu.memory_space<vmem>>, vector<1x8x16x128xbf16>,
    return
  }
  func.func @transform_0(%arg0: i32, %arg1: i32) -> (i32, i32, i32, i32) {
    %c0_i32 = arith.constant 0 : i32
    %c0_i32_0 = arith.constant 0 : i32
    %c0_i32_1 = arith.constant 0 : i32
    return %arg0, %arg1, %c0_i32, %c0_i32_0 : i32, i32, i32, i32
  }
  func.func @transform_1(%arg0: i32, %arg1: i32) -> (i32, i32, i32, i32) {
    %c8_i32 = arith.constant 8 : i32
    %0 = arith.muli %arg1, %c8_i32 : i32
    %c1_i32 = arith.constant 1 : i32
    %1 = arith.subi %0, %c1_i32 : i32
    %c0_i32 = arith.constant 0 : i32
    %2 = arith.maxsi %1, %c0_i32 : i32
    %c0_i32_0 = arith.constant 0 : i32
    %c0_i32_1 = arith.constant 0 : i32
    %c0_i32_2 = arith.constant 0 : i32
    return %arg0, %2, %c0_i32_0, %c0_i32_1 : i32, i32, i32, i32
  }
  func.func @transform_2(%arg0: i32, %arg1: i32) -> (i32, i32, i32, i32) {
    %c8_i32 = arith.constant 8 : i32
    %0 = arith.muli %arg1, %c8_i32 : i32
    %c8_i32_0 = arith.constant 8 : i32
    %1 = arith.addi %0, %c8_i32_0 : i32
    %c15_i32 = arith.constant 15 : i32
    %2 = arith.minsi %1, %c15_i32 : i32
    %c0_i32 = arith.constant 0 : i32
    %c0_i32_1 = arith.constant 0 : i32
    %c0_i32_2 = arith.constant 0 : i32
    return %arg0, %2, %c0_i32, %c0_i32_1 : i32, i32, i32, i32
  }
  func.func @transform_3(%arg0: i32, %arg1: i32) -> (i32, i32) {
    %c0_i32 = arith.constant 0 : i32
    %c0_i32_0 = arith.constant 0 : i32
    %c0_i32_1 = arith.constant 0 : i32
    return %c0_i32, %c0_i32_0 : i32, i32
  }
  func.func @transform_4(%arg0: i32, %arg1: i32) -> (i32, i32) {
    %c0_i32 = arith.constant 0 : i32
    %c0_i32_0 = arith.constant 0 : i32
    %c0_i32_1 = arith.constant 0 : i32
    return %c0_i32, %c0_i32_0 : i32, i32
  }
  func.func @transform_5(%arg0: i32, %arg1: i32) -> (i32, i32, i32) {
    %c0_i32 = arith.constant 0 : i32
    %c0_i32_0 = arith.constant 0 : i32
    %c0_i32_1 = arith.constant 0 : i32
    %c0_i32_2 = arith.constant 0 : i32
    return %c0_i32, %c0_i32_0, %c0_i32_1 : i32, i32, i32
  }
  func.func @transform_6(%arg0: i32, %arg1: i32) -> (i32, i32, i32) {
    %c0_i32 = arith.constant 0 : i32
    %c0_i32_0 = arith.constant 0 : i32
    %c0_i32_1 = arith.constant 0 : i32
    %c0_i32_2 = arith.constant 0 : i32
    return %c0_i32, %c0_i32_0, %c0_i32_1 : i32, i32, i32
  }
  func.func @transform_7(%arg0: i32, %arg1: i32) -> (i32, i32) {
    %c0_i32 = arith.constant 0 : i32
    %c0_i32_0 = arith.constant 0 : i32
    %c0_i32_1 = arith.constant 0 : i32
    return %c0_i32, %c0_i32_0 : i32, i32
  }
  func.func @transform_8(%arg0: i32, %arg1: i32) -> (i32, i32) {
    %c0_i32 = arith.constant 0 : i32
    %c0_i32_0 = arith.constant 0 : i32
    %c0_i32_1 = arith.constant 0 : i32
    return %c0_i32, %c0_i32_0 : i32, i32
  }
  func.func @transform_9(%arg0: i32, %arg1: i32) -> (i32, i32, i32, i32) {
    %c0_i32 = arith.constant 0 : i32
    %c0_i32_0 = arith.constant 0 : i32
    %c0_i32_1 = arith.constant 0 : i32
    return %arg0, %arg1, %c0_i32, %c0_i32_0 : i32, i32, i32, i32
  }
}

</mosaic_0001>

<bundles_post_ra>
// kernel: tpu_custom_call.1
= control target key start
LH: loop header
LB: loop body
LE: loop exit
PB: predicated region body
PF: predicated region fallthrough
CT: control target
= control target key end

     0   :  { %s6901_s0 = inlined_call_operand.hbm [shape: bf16[2,16,16,128], index: 0, kind: input, shape index: {}]   ;;  %s6902_s1 = inlined_call_operand.hbm [shape: bf16[2,16,16,128], index: 1, kind: input, shape index: {}]   ;;  %s6903_s2 = inlined_call_operand.hbm [shape: bf16[2,16,16,128], index: 2, kind: input, shape index: {}]   ;;  %s6904_s3 = inlined_call_operand.hbm [shape: bf16[128,256], index: 3, kind: input, shape index: {}]   ;;  %s6905_s4 = inlined_call_operand.vmem [shape: f32[1,256], index: 4, kind: input, shape index: {}]   ;;  %s6906_s5 = inlined_call_operand.hbm [shape: f32[3,3,256], index: 5, kind: input, shape index: {}]   ;;  %s6907_s6 = inlined_call_operand.vmem [shape: f32[1,1,256], index: 6, kind: input, shape index: {}]   ;;  %s6908_s7 = inlined_call_operand.hbm [shape: bf16[128,128], index: 7, kind: input, shape index: {}]   ;;  %s6909_s8 = inlined_call_operand.vmem [shape: f32[1,128], index: 8, kind: input, shape index: {}]   ;;  %s6910_s9 = inlined_call_operand.hbm [shape: bf16[2,16,16,128], index: 9, kind: output, shape index: {}]  }
   0x1   :  { %7023 = sst [smem:[#allocation142_spill]] %s6901_s0 }
   0x2   :  { %7024 = sst [smem:[#allocation143_spill]] %s6902_s1 }
   0x3   :  { %7025 = sst [smem:[#allocation144_spill]] %s6903_s2 }
   0x4   :  { %7026 = sst [smem:[#allocation145_spill]] %s6904_s3 }
   0x5   :  { %7027 = sst [smem:[#allocation146_spill]] %s6905_s4 }
   0x6   :  { %7028 = sst [smem:[#allocation147_spill]] %s6906_s5 }
   0x7   :  { %7029 = sst [smem:[#allocation148_spill]] %s6907_s6 }
   0x8   :  { %7030 = sst [smem:[#allocation149_spill]] %s6908_s7 }
   0x9   :  { %7031 = sst [smem:[#allocation150_spill]] %s6909_s8 }
   0xa   :  { %7032 = sst [smem:[#allocation151_spill]] %s6910_s9 }
   0xb   :  { %14 = vsyncpa [#allocation4], 0 }
   0xc   :  { %16 = vsyncpa [#allocation4 + $0x1], 0 }
   0xd   :  { %17 = vsyncpa [#allocation7], 0 }
   0xe   :  { %19 = vsyncpa [#allocation7 + $0x1], 0 }
   0xf   :  { %20 = vsyncpa [#allocation10], 0 }
  0x10   :  { %21 = vsyncpa [#allocation13], 0 }
  0x11   :  { %22 = vsyncpa [#allocation5], 0 }
  0x12   :  { %24 = vsyncpa [#allocation5 + $0x1], 0  ;;  %s4265_s30 = smov 0   ;;  %s4267_s10 = smov 0  }
  0x13   :  { %s4269_s11 = smov 0   ;;  %s4271_s12 = smov 0  }
  0x14   :  { %s4273_s13 = smov 0   ;;  %s4275_s14 = smov 0  }
  0x15   :  { %s4277_s15 = smov 0   ;;  %s4279_s16 = smov 0  }
  0x16   :  { %s4281_s17 = smov 0   ;;  %s4283_s18 = smov 0  }
  0x17   :  { %s4285_s19 = smov 0   ;;  %s4287_s20 = smov 0  }
  0x18   :  { %s4289_s21 = smov 0   ;;  %s4291_s22 = smov 0  }
  0x19 LB: > { %7033 = sst [smem:[#allocation21_spill]] %s4152_s30  ;;  %s4336_s23 = sadd.s32 4294967295, %s4204_s22   ;;  %s4204_s22 = sphi %s4291_s22, %s30_s22   ;;  %s4200_s21 = sphi %s4289_s21, %s7497_s21   ;;  %s4196_s20 = sphi %s4287_s20, %s7496_s20   ;;  %s4192_s19 = sphi %s4285_s19, %s7495_s19   ;;  %s4188_s18 = sphi %s4283_s18, %s7494_s18   ;;  %s4184_s17 = sphi %s4281_s17, %s7503_s17   ;;  %s4180_s16 = sphi %s4279_s16, %s7502_s16   ;;  %s4176_s15 = sphi %s4277_s15, %s7501_s15   ;;  %s4172_s14 = sphi %s4275_s14, %s7500_s14   ;;  %s4168_s13 = sphi %s4273_s13, %s7491_s13   ;;  %s4164_s12 = sphi %s4271_s12, %s7490_s12   ;;  %s4160_s11 = sphi %s4269_s11, %s7499_s11   ;;  %s4156_s10 = sphi %s4267_s10, %s7498_s10   ;;  %s4152_s30 = sphi %s4265_s30, %s7489_s30  }
  0x1a   : > { %7034 = sst [smem:[#allocation22_spill]] %s4156_s10  ;;  %p3201_p0 = scmp.ge.s32.totalorder %s4204_s22, 1 }
  0x1b   : > { %7035 = sst [smem:[#allocation23_spill]] %s4168_s13  ;;  %p65_p1 = scmp.eq.s32.totalorder %s4336_s23, 0 }
  0x1c   : > { %7036 = sst [smem:[#allocation24_spill]] %s4172_s14  ;;  %p301_p2 = scmp.lt.s32.totalorder %s4204_s22, 5 }
  0x1d   : > { %7037 = sst [smem:[#allocation25_spill]] %s4188_s18  ;;  %s4206_s28 = smov [#allocation9]  }
  0x1e   : > { %7038 = sst [smem:[#allocation26_spill]] %s4192_s19  ;;  %p4344_p3 = pnand %p3201_p0, %p301_p2 }
  0x1f   : > { %7039 = sst [smem:[#allocation27_spill]] %s4196_s20  ;;  %s314_s29 = sshll.u32 %s4206_s28, 4  ;;  %s315_s29 = int_to_ptr.vmem [resolvable:$true] %s314_s29 }
  0x20   : > { %7040 = sst [smem:[#allocation28_spill]] %s4200_s21  ;;  %p3644_p4 = pneg %p4344_p3 }
  0x21   : > { %s7041_s3 = sld [smem:[#allocation145_spill]]  ;;  %s6912_s24 = smov 128  }
  0x22   : > { %s7042_s27 = scalar_select %p4344_p3, 1, 0 }
  0x23   : > { %p4352_p5 = pnand %p3644_p4, %p65_p1  ;;  %s6913_s25 = smov 8  }
  0x24   : > { %7043 = sst [smem:[#allocation29_spill]] %s7042_s27  ;;  %s42_s19 = sadd.s32 1, %s4200_s21 }
  0x25   : > { %p59_p7 = scmp.eq.s32.totalorder %s4204_s22, 0  ;;  %s3195_s28 = sshll.u32 %s4196_s20, 3 }
  0x26   : > { %s3196_s6 = sadd.s32 4294967295, %s3195_s28  ;;  %p94_p12 = scmp.ne.s32.totalorder %s4172_s14, %s4168_s13 }
  0x27   : > { %s312_s26 = sshll.u32 %s7041_s3, 4  ;;  %s39_s3 = sadd.s32 1, %s4196_s20  ;;  %s313_s26 = int_to_ptr.hbm [resolvable:$true] %s312_s26 }
  0x28   : > { %3647 = dma.hbm_to_vmem [thread:$0]  (!%p4352_p5), %s313_s26, 2048, %s315_s29, [#allocation10], %s6912_s24, %s6912_s24, %s6913_s25  }
  0x29   : > { %p40_p6 = scmp.ge.s32.totalorder %s39_s3, 2  ;;  %p76_p9 = scmp.gt.s32.totalorder %s3196_s6, 0 }
  0x2a   : > { %s87_s29 = sadd.s32 1, %s4172_s14  ;;  %p4386_p13 = por %p94_p12, %p59_p7 }
  0x2b   : > { %s7505_s3 = smov (%p40_p6, %s39_s3), 0  ;;  %s7507_s19 = smov (!%p40_p6, %s42_s19), %s4200_s21 }
  0x2c   : > { %7045 = sst [smem:[#allocation30_spill]] %s7505_s3  ;;  %s47_s8 = ssub.s32 %s4196_s20, %s7505_s3 }
  0x2d   : > { %p44_p8 = scmp.ge.s32.totalorder %s7507_s19, 2  ;;  %s3197_s26 = sshll.u32 %s7505_s3, 3 }
  0x2e   : > { %s7511_s6 = smov (!%p76_p9, %s3196_s6), 0  ;;  %s3198_s25 = sadd.s32 4294967295, %s3197_s26 }
  0x2f   : > { %s7509_s19 = smov (%p44_p8, %s7507_s19), 0  ;;  %p80_p10 = scmp.gt.s32.totalorder %s3198_s25, 0 }
  0x30   : > { %7046 = sst [smem:[#allocation31_spill]] %s7509_s19  ;;  %s4376_s24 = ssub.s32 %s4200_s21, %s7509_s19 }
  0x31   : > { %7047 = sst [smem:[#allocation32_spill]] %s4376_s24  ;;  %s4379_s4 = sor.u32 %s47_s8, %s4376_s24 }
  0x32   : > { %p49_p11 = scmp.eq.s32.totalorder %s4379_s4, 0  ;;  %s7513_s25 = smov (!%p80_p10, %s3198_s25), 0 }
  0x33   : > { %p100_p0 = scmp.ne.s32.totalorder %s4168_s13, %s4164_s12  ;;  %s83_s19 = ssub.s32 %s7511_s6, %s7513_s25 }
  0x34   : > { %s4392_s18 = sadd.s32 8, %s3195_s28  ;;  %s84_s8 = sor.u32 %s83_s19, %s4376_s24 }
  0x35   : > { %p4397_p2 = por %p100_p0, %p65_p1  ;;  %p85_p4 = scmp.eq.s32.totalorder %s84_s8, 0 }
  0x36   : > { %p112_p6 = scmp.lt.s32.totalorder %s4392_s18, 15  ;;  %s4402_s2 = sadd.s32 8, %s3197_s26 }
  0x37   : > { %s7049_s27 = scalar_select %p4397_p2, 1, 0 }
  0x38   : > { %7051 = sst [smem:[#allocation34_spill]] %s4402_s2  ;;  %p6933_p9 = scmp.lt.s32.totalorder %s4204_s22, 4 }
  0x39   : > { %7050 = sst [smem:[#allocation33_spill]] %s7049_s27  ;;  %s4410_s12 = sshll.u32 %s4200_s21, 5 }
  0x3a   : > { %s4405_s0 = scalar_select %p85_p4, %s4172_s14, %s87_s29  }
  0x3b   : > { %s390_s19 = sand.u32 1, %s4204_s22   ;;  %s392_s25 = sand.u32 1, %s4172_s14  }
  0x3c   : > { %7052 = sst [smem:[#allocation35_spill]] %s4405_s0  ;;  %s3211_s28 = sshll.u32 %s392_s25, 3 }
  0x3d   : > { %s3214_s13 = sshll.u32 %s7511_s6, 1  ;;  %s394_s27 = scalar_lea.vmem [#allocation6], %s3211_s28 }
  0x3e   : > { %s403_s24 = sadd.s32 %s3214_s13, %s4410_s12  ;;  %s408_s8 = sshll.u32 %s394_s27, 4  ;;  %s409_s8 = int_to_ptr.vmem [resolvable:$true] %s408_s8 }
  0x3f   : > { %s3216_s30 = sshll.u32 %s403_s24, 2  ;;  %s7053_s1 = sld [smem:[#allocation143_spill]] }
  0x40   : > { %p3658_p10 = pnand %p6933_p9, %p4386_p13  ;;  %s7054_s5 = sld [smem:[#allocation147_spill]] }
  0x41   : > { %s4425_s6 = scalar_lea.sflag [#allocation7], %s390_s19  ;;  %s6928_s13 = smov 64  }
  0x42   : > { %s6930_s10 = smov 4   ;;  %s4211_s0 = smov [#allocation11]  }
  0x43   : > { %s331_s2 = sshll.u32 %s4211_s0, 4  ;;  %s7055_s7 = sld [smem:[#allocation149_spill]]  ;;  %s332_s2 = int_to_ptr.vmem [resolvable:$true] %s331_s2 }
  0x44   : > { %s7056_s24 = smov 8   ;;  %s7057_s19 = smov 128  }
  0x45   : > { %s405_s29 = scalar_lea.hbm %s7053_s1, %s3216_s30  ;;  %s3194_s28 = sadd.s32 4294967294, %s4204_s22  }
  0x46   : > { %s406_s21 = sshll.u32 %s405_s29, 4  ;;  %s329_s14 = sshll.u32 %s7054_s5, 4  ;;  %s407_s21 = int_to_ptr.hbm [resolvable:$true] %s406_s21  ;;  %s330_s14 = int_to_ptr.hbm [resolvable:$true] %s329_s14 }
  0x47   : > { %3660 = dma.hbm_to_vmem [thread:$0]  (!%p3658_p10), %s407_s21, 128, %s409_s8, %s4425_s6, %s6928_s13, %s6928_s13, %s6930_s10  }
  0x48   : > { %3650 = dma.hbm_to_vmem [thread:$0]  (!%p4352_p5), %s330_s14, 384, %s332_s2, [#allocation10], %s7057_s19, %s7057_s19, %s7056_s24  }
  0x49   : > { %s346_s27 = sshll.u32 %s7055_s7, 4  ;;  %s4212_s21 = smov [#allocation12]   ;;  %s347_s27 = int_to_ptr.hbm [resolvable:$true] %s346_s27 }
  0x4a   : > { %s348_s25 = sshll.u32 %s4212_s21, 4  ;;  %s51_s8 = sadd.s32 1, %s4184_s17  ;;  %s349_s25 = int_to_ptr.vmem [resolvable:$true] %s348_s25 }
  0x4b   : > { %3653 = dma.hbm_to_vmem [thread:$0]  (!%p4352_p5), %s347_s27, 1024, %s349_s25, [#allocation13], %s6928_s13, %s6928_s13, %s6930_s10  }
  0x4c   : > { %p58_p12 = scmp.ne.s32.totalorder %s4184_s17, %s4180_s16  ;;  %p64_p0 = scmp.ne.s32.totalorder %s4180_s16, %s4176_s15 }
  0x4d   : > { %s4451_s26 = scalar_select %p49_p11, %s4184_s17, %s51_s8  }
  0x4e   : > { %p4455_p13 = por %p59_p7, %p58_p12  ;;  %p288_p4 = scmp.eq.s32.totalorder %s4336_s23, 3 }
  0x4f   : > { %7058 = sst [smem:[#allocation36_spill]] %s4451_s26  ;;  %p294_p10 = scmp.eq.s32.totalorder %s3194_s28, 3 }
  0x50   : > { %p4464_p8 = por %p65_p1, %p64_p0  ;;  %s365_s14 = sand.u32 1, %s4184_s17  }
  0x51   : > { %p4469_p5 = por %p288_p4, %p58_p12  ;;  %p4473_p11 = por %p294_p10, %p64_p0 }
  0x52   : > { %s7063_s2 = sld [smem:[#allocation34_spill]]  ;;  %s3206_s3 = sshll.u32 %s365_s14, 6 }
  0x53   : > { %s7064_s30 = sld [smem:[#allocation22_spill]]  ;;  %s3501_s27 = sshll.u32 %s4196_s20, 4 }
  0x54   : > { %s7065_s24 = sld [smem:[#allocation21_spill]]  ;;  %s375_s19 = sadd.s32 %s3501_s27, %s4410_s12 }
  0x55   : > { %s369_s21 = scalar_lea.vmem [#allocation3], %s3206_s3  ;;  %s7066_s28 = sld [smem:[#allocation32_spill]] }
  0x56   : > { %s380_s25 = sshll.u32 %s369_s21, 4  ;;  %s3210_s8 = sshll.u32 %s375_s19, 2  ;;  %s381_s25 = int_to_ptr.vmem [resolvable:$true] %s380_s25 }
  0x57   : > { %s7067_s1 = sld [smem:[#allocation142_spill]]  ;;  %p3655_p12 = pnand %p6933_p9, %p4455_p13 }
  0x58   : > { %s366_s20 = scalar_lea.sflag [#allocation4], %s365_s14  ;;  %s7068_s27 = smov 4  }
  0x59   : > { %s7069_s3 = smov 64   ;;  %s123_s19 = sadd.s32 1, %s4160_s11 }
  0x5a   : > { %s7515_s18 = smov (!%p112_p6, %s4392_s18), 15  ;;  %p7070_p0 = scmp.lt.s32.totalorder %s7063_s2, 15 }
  0x5b   : > { %p130_p4 = scmp.ne.s32.totalorder %s4160_s11, %s7064_s30  ;;  %p136_p10 = scmp.ne.s32.totalorder %s7064_s30, %s7065_s24 }
  0x5c   : > { %s7517_s2 = smov (!%p7070_p0, %s7063_s2), 15  ;;  %s420_s13 = sand.u32 1, %s4160_s11  }
  0x5d   : > { %s377_s5 = scalar_lea.hbm %s7067_s1, %s3210_s8  ;;  %s119_s1 = ssub.s32 %s7515_s18, %s7517_s2 }
  0x5e   : > { %s378_s7 = sshll.u32 %s377_s5, 4  ;;  %s120_s10 = sor.u32 %s119_s1, %s7066_s28  ;;  %s379_s7 = int_to_ptr.hbm [resolvable:$true] %s378_s7 }
  0x5f   : > { %3657 = dma.hbm_to_vmem [thread:$0]  (!%p3655_p12), %s379_s7, 1024, %s381_s25, %s366_s20, %s7069_s3, %s7069_s3, %s7068_s27  }
  0x60   : > { %p4504_p13 = por %p130_p4, %p59_p7  ;;  %p121_p9 = scmp.eq.s32.totalorder %s120_s10, 0 }
  0x61   : > { %p4510_p12 = por %p136_p10, %p65_p1  ;;  %s3217_s20 = sshll.u32 %s420_s13, 3 }
  0x62   : > { %s3219_s29 = sshll.u32 %s7515_s18, 1  ;;  %s422_s24 = scalar_lea.vmem [#allocation8], %s3217_s20 }
  0x63   : > { %s4515_s14 = scalar_select %p121_p9, %s4160_s11, %s123_s19  }
  0x64   : > { %s431_s2 = sadd.s32 %s3219_s29, %s4410_s12  ;;  %s436_s21 = sshll.u32 %s422_s24, 4  ;;  %s437_s21 = int_to_ptr.vmem [resolvable:$true] %s436_s21 }
  0x65   : > { %s3221_s30 = sshll.u32 %s431_s2, 2  ;;  %s7073_s8 = sld [smem:[#allocation144_spill]] }
  0x66   : > { %p7074_p7 = scmp.lt.s32.totalorder %s4204_s22, 4 }
  0x68   : > { %p3661_p6 = pnand %p7074_p7, %p4504_p13 }
  0x69   : > { %448 = sbr.rel (%p4344_p3) target bundleno = 861 (0x35d), region = 56 }
  0x6b   : > { %s433_s1 = scalar_lea.hbm %s7073_s8, %s3221_s30 }
  0x6c   : > { %s434_s26 = sshll.u32 %s433_s1, 4  ;;  %s435_s26 = int_to_ptr.hbm [resolvable:$true] %s434_s26 }
  0x6d   : > { %3663 = dma.hbm_to_vmem [thread:$0]  (!%p3661_p6), %s435_s26, 128, %s437_s21, %s4425_s6, %s7069_s3, %s7069_s3, %s7068_s27  }
  0x6e   : > { %s4532_s12 = sand.u32 1, %s4180_s16  }
  0x6f   : > { %s3223_s19 = sshll.u32 %s4532_s12, 6  ;;  %s451_s13 = scalar_lea.sflag [#allocation4], %s4532_s12 }
  0x70   : > { %s4538_s10 = scalar_lea.vmem [#allocation3], %s3223_s19 }
  0x71   : > { %4127 = dma.done.wait (%p4464_p8), %s451_s13, 1024  }
  0x72   : > { %4129 = vsyncadd (%p4464_p8), %s451_s13, 4294966272  ;;  %s7076_s6 = sld [smem:[#allocation23_spill]]  ;;  %s460_s27 = sand.u32 1, %s4336_s23  }
  0x73   : > { %s461_s20 = scalar_lea.sflag [#allocation7], %s460_s27 }
  0x78   : > { %s462_s3 = sand.u32 1, %s7076_s6  }
  0x79   : > { %s4546_s5 = sshll.u32 %s462_s3, 3 }
  0x7a   : > { %s464_s29 = scalar_lea.vmem [#allocation6], %s4546_s5 }
  0x7b   : > { %4131 = dma.done.wait (%p4397_p2), %s461_s20, 128  }
  0x7c   : > { %4133 = vsyncadd (%p4397_p2), %s461_s20, 4294967168  ;;  %s7078_s2 = sld [smem:[#allocation22_spill]] }
  0x82   : > { %s472_s30 = sand.u32 1, %s7078_s2  }
  0x83   : > { %s4554_s9 = sshll.u32 %s472_s30, 3 }
  0x84   : > { %s474_s24 = scalar_lea.vmem [#allocation8], %s4554_s9 }
  0x85   : > { %4135 = dma.done.wait (%p4510_p12), %s461_s20, 128  }
  0x86   : > { %4137 = vsyncadd (%p4510_p12), %s461_s20, 4294967168 }
  0x87   : > { %4139 = dma.done.wait (%p65_p1), [#allocation10], 2432  }
  0x88   : > { %4141 = vsyncadd (%p65_p1), [#allocation10], 4294964864 }
  0x89   : > { %4143 = dma.done.wait (%p65_p1), [#allocation13], 1024  }
  0x8a   : > { %4145 = vsyncadd (%p65_p1), [#allocation13], 4294966272  ;;  %v3320_v0 = vld [vmem:[#allocation9 + $0x70] sm:$0xf]  ;;  %v3525_v1 = vld [vmem:[#allocation9 + $0x74] sm:$0xf0] }
  0x8b   : > { %v3388_v2 = vld [vmem:[#allocation9 + $0x70] sm:$0xf]  ;;  %v3321_v3 = vor.u32 %v3525_v1, %v3320_v0  ;;  %v3542_v4 = vld [vmem:[#allocation9 + $0x74] sm:$0xf0]  ;;  %v3312_v5 = vld [vmem:[#allocation9 + $0x60] sm:$0xf] }
  0x8c   : > { %v3523_v6 = vld [vmem:[#allocation9 + $0x64] sm:$0xf0]  ;;  %v3389_v7 = vor.u32 %v3542_v4, %v3388_v2  ;;  %v3380_v8 = vld [vmem:[#allocation9 + $0x60] sm:$0xf]  ;;  %v3524_v10 = vld [vmem:[#allocation9 + $0x74] sm:$0xf] }
  0x8d   : > { %v3540_v9 = vld [vmem:[#allocation9 + $0x64] sm:$0xf0]  ;;  %715 = vmatpush.bf16.msra.mxu0 %v3321_v3  ;;  %v3313_v11 = vor.u32 %v3523_v6, %v3312_v5  ;;  %v3322_v12 = vld [vmem:[#allocation9 + $0x78] sm:$0xf0]  ;;  %v3304_v15 = vld [vmem:[#allocation9 + $0x50] sm:$0xf] }
  0x8e   : > { %956 = vmatpush.bf16.msra.mxu2 %v3389_v7  ;;  %v3381_v13 = vor.u32 %v3540_v9, %v3380_v8  ;;  %v3325_v14 = vor.u32 %v3524_v10, %v3322_v12  ;;  %v3521_v16 = vld [vmem:[#allocation9 + $0x54] sm:$0xf0]  ;;  %v3522_v17 = vld [vmem:[#allocation9 + $0x64] sm:$0xf]  ;;  %v3372_v18 = vld [vmem:[#allocation9 + $0x50] sm:$0xf] }
  0x8f   : > { %v3538_v19 = vld [vmem:[#allocation9 + $0x54] sm:$0xf0]  ;;  %v3314_v20 = vld [vmem:[#allocation9 + $0x68] sm:$0xf0]  ;;  %v3305_v22 = vor.u32 %v3521_v16, %v3304_v15  ;;  %v3520_v23 = vld [vmem:[#allocation9 + $0x54] sm:$0xf] }
  0x90   : > { %764 = vmatpush.bf16.msra.mxu1 %v3325_v14  ;;  %v3317_v21 = vor.u32 %v3522_v17, %v3314_v20  ;;  %v3306_v24 = vld [vmem:[#allocation9 + $0x58] sm:$0xf0]  ;;  %v3373_v25 = vor.u32 %v3538_v19, %v3372_v18  ;;  %v3296_v26 = vld [vmem:[#allocation9 + $0x40] sm:$0xf]  ;;  %v3519_v27 = vld [vmem:[#allocation9 + $0x44] sm:$0xf0] }
  0x91   : > { %716 = vmatpush.bf16.msra.mxu0 %v3313_v11  ;;  %v3364_v28 = vld [vmem:[#allocation9 + $0x40] sm:$0xf]  ;;  %v3536_v29 = vld [vmem:[#allocation9 + $0x44] sm:$0xf0]  ;;  %v3309_v30 = vor.u32 %v3520_v23, %v3306_v24  ;;  %v3297_v31 = vor.u32 %v3519_v27, %v3296_v26  ;;  %v3518_v32 = vld [vmem:[#allocation9 + $0x44] sm:$0xf] }
  0x92   : > { %957 = vmatpush.bf16.msra.mxu2 %v3381_v13  ;;  %v3298_v33 = vld [vmem:[#allocation9 + $0x48] sm:$0xf0]  ;;  %v3365_v34 = vor.u32 %v3536_v29, %v3364_v28  ;;  %v3288_v35 = vld [vmem:[#allocation9 + $0x30] sm:$0xf]  ;;  %v3517_v36 = vld [vmem:[#allocation9 + $0x34] sm:$0xf0] }
  0x93   : > { %v3356_v37 = vld [vmem:[#allocation9 + $0x30] sm:$0xf]  ;;  %v3534_v38 = vld [vmem:[#allocation9 + $0x34] sm:$0xf0]  ;;  %v3541_v39 = vld [vmem:[#allocation9 + $0x74] sm:$0xf]  ;;  %v3301_v41 = vor.u32 %v3518_v32, %v3298_v33  ;;  %v3289_v43 = vor.u32 %v3517_v36, %v3288_v35 }
  0x94   : > { %765 = vmatpush.bf16.msra.mxu1 %v3317_v21  ;;  %v3390_v40 = vld [vmem:[#allocation9 + $0x78] sm:$0xf0]  ;;  %v3280_v44 = vld [vmem:[#allocation9 + $0x20] sm:$0xf]  ;;  %v3516_v45 = vld [vmem:[#allocation9 + $0x34] sm:$0xf]  ;;  %v3357_v47 = vor.u32 %v3534_v38, %v3356_v37 }
  0x95   : > { %717 = vmatpush.bf16.msra.mxu0 %v3305_v22  ;;  %v3393_v42 = vor.u32 %v3541_v39, %v3390_v40  ;;  %v3290_v46 = vld [vmem:[#allocation9 + $0x38] sm:$0xf0]  ;;  %v3515_v48 = vld [vmem:[#allocation9 + $0x24] sm:$0xf0]  ;;  %v3539_v49 = vld [vmem:[#allocation9 + $0x64] sm:$0xf] }
  0x96   : > { %958 = vmatpush.bf16.msra.mxu2 %v3373_v25  ;;  %v3382_v50 = vld [vmem:[#allocation9 + $0x68] sm:$0xf0]  ;;  %v3348_v51 = vld [vmem:[#allocation9 + $0x20] sm:$0xf]  ;;  %v3532_v52 = vld [vmem:[#allocation9 + $0x24] sm:$0xf0]  ;;  %v3293_v54 = vor.u32 %v3516_v45, %v3290_v46  ;;  %v3281_v57 = vor.u32 %v3515_v48, %v3280_v44 }
  0x97   : > { %970 = vmatpush.bf16.msra.mxu3 %v3393_v42  ;;  %v3385_v53 = vor.u32 %v3539_v49, %v3382_v50  ;;  %v3537_v55 = vld [vmem:[#allocation9 + $0x54] sm:$0xf]  ;;  %v3374_v56 = vld [vmem:[#allocation9 + $0x58] sm:$0xf0]  ;;  %v3514_v58 = vld [vmem:[#allocation9 + $0x24] sm:$0xf]  ;;  %v3349_v60 = vor.u32 %v3532_v52, %v3348_v51 }
  0x98   : > { %766 = vmatpush.bf16.msra.mxu1 %v3309_v30  ;;  %v3282_v59 = vld [vmem:[#allocation9 + $0x28] sm:$0xf0]  ;;  %v3272_v61 = vld [vmem:[#allocation9 + $0x10] sm:$0xf]  ;;  %v3513_v62 = vld [vmem:[#allocation9 + $0x14] sm:$0xf0]  ;;  %v3377_v0 = vor.u32 %v3537_v55, %v3374_v56 }
  0x99   : > { %718 = vmatpush.bf16.msra.mxu0 %v3297_v31  ;;  %v3340_v63 = vld [vmem:[#allocation9 + $0x10] sm:$0xf]  ;;  %v3530_v1 = vld [vmem:[#allocation9 + $0x14] sm:$0xf0]  ;;  %v3535_v2 = vld [vmem:[#allocation9 + $0x44] sm:$0xf]  ;;  %v3285_v4 = vor.u32 %v3514_v58, %v3282_v59  ;;  %v3273_v5 = vor.u32 %v3513_v62, %v3272_v61 }
  0x9a   : > { %959 = vmatpush.bf16.msra.mxu2 %v3365_v34  ;;  %v3366_v3 = vld [vmem:[#allocation9 + $0x48] sm:$0xf0]  ;;  %v3512_v6 = vld [vmem:[#allocation9 + $0x14] sm:$0xf]  ;;  %v3274_v7 = vld [vmem:[#allocation9 + $0x18] sm:$0xf0]  ;;  %v3341_v8 = vor.u32 %v3530_v1, %v3340_v63 }
  0x9b   : > { %971 = vmatpush.bf16.msra.mxu3 %v3385_v53  ;;  %v3264_v9 = vld [vmem:[#allocation9] sm:$0xf]  ;;  %v3511_v10 = vld [vmem:[#allocation9 + $0x4] sm:$0xf0]  ;;  %v3369_v12 = vor.u32 %v3535_v2, %v3366_v3  ;;  %v3533_v14 = vld [vmem:[#allocation9 + $0x34] sm:$0xf]  ;;  %v3277_v16 = vor.u32 %v3512_v6, %v3274_v7 }
  0x9c   : > { %767 = vmatpush.bf16.msra.mxu1 %v3301_v41  ;;  %v3332_v11 = vld [vmem:[#allocation9] sm:$0xf]  ;;  %v3528_v13 = vld [vmem:[#allocation9 + $0x4] sm:$0xf0]  ;;  %v3358_v15 = vld [vmem:[#allocation9 + $0x38] sm:$0xf0]  ;;  %v3265_v17 = vor.u32 %v3511_v10, %v3264_v9 }
  0x9d   : > { %719 = vmatpush.bf16.msra.mxu0 %v3289_v43  ;;  %v3510_v18 = vld [vmem:[#allocation9 + $0x4] sm:$0xf]  ;;  %v3266_v19 = vld [vmem:[#allocation9 + $0x8] sm:$0xf0]  ;;  %v3333_v20 = vor.u32 %v3528_v13, %v3332_v11  ;;  %v3361_v21 = vor.u32 %v3533_v14, %v3358_v15  ;;  %v3529_v28 = vld [vmem:[#allocation9 + $0x14] sm:$0xf] }
  0x9e   : > { %960 = vmatpush.bf16.msra.mxu2 %v3357_v47  ;;  %v3531_v22 = vld [vmem:[#allocation9 + $0x24] sm:$0xf]  ;;  %v3350_v23 = vld [vmem:[#allocation9 + $0x28] sm:$0xf0]  ;;  %v3269_v25 = vor.u32 %v3510_v18, %v3266_v19  ;;  %v3342_v29 = vld [vmem:[#allocation9 + $0x18] sm:$0xf0] }
  0x9f   : > { %972 = vmatpush.bf16.msra.mxu3 %v3377_v0  ;;  %v3502_v24 = vld [vmem:[%s4538_s10] sm:$0xff]  ;;  %v3353_v27 = vor.u32 %v3531_v22, %v3350_v23  ;;  %v3345_v30 = vor.u32 %v3529_v28, %v3342_v29  ;;  %v3334_v32 = vld [vmem:[#allocation9 + $0x8] sm:$0xf0]  ;;  %v3504_v35 = vld [vmem:[%s4538_s10 + $0x10] sm:$0xff]  ;;  %s7079_s23 = sld [smem:[#allocation25_spill]]  ;;  %vm1224_vm0 = vcmask 1040384  }
  0xa0   : > { %768 = vmatpush.bf16.msra.mxu1 %v3293_v54  ;;  %v3526_v26 = vld [vmem:[%s464_s29] sm:$0xff]  ;;  %v3456_v36 = vld [vmem:[#allocation9 + $0x70] sm:$0xf]  ;;  %v3559_v37 = vld [vmem:[#allocation9 + $0x74] sm:$0xf0]  ;;  %s7080_s25 = sld [smem:[#allocation146_spill]] }
  0xa1   : > { %720 = vmatpush.bf16.msra.mxu0 %v3281_v57  ;;  %v3527_v31 = vld [vmem:[#allocation9 + $0x4] sm:$0xf]  ;;  %v3503_v34 = vld [vmem:[%s4538_s10 + $0x8] sm:$0xff]  ;;  %v3448_v38 = vld [vmem:[#allocation9 + $0x60] sm:$0xf]  ;;  %v3457_v39 = vor.u32 %v3559_v37, %v3456_v36  ;;  %vm1768_vm1 = vcmask 1046528  }
  0xa2   : > { %961 = vmatpush.bf16.msra.mxu2 %v3349_v60  ;;  %v3337_v33 = vor.u32 %v3527_v31, %v3334_v32  ;;  %v3557_v40 = vld [vmem:[#allocation9 + $0x64] sm:$0xf0]  ;;  %v3505_v42 = vld [vmem:[%s4538_s10 + $0x18] sm:$0xff]  ;;  %v3440_v43 = vld [vmem:[#allocation9 + $0x50] sm:$0xf]  ;;  %s7485_s20 = sld [smem:[#allocation150_spill]] }
  0xa3   : > { %973 = vmatpush.bf16.msra.mxu3 %v3369_v12  ;;  %v3449_v41 = vor.u32 %v3557_v40, %v3448_v38  ;;  %v3555_v44 = vld [vmem:[#allocation9 + $0x54] sm:$0xf0]  ;;  %v3432_v46 = vld [vmem:[#allocation9 + $0x40] sm:$0xf]  ;;  %v3553_v47 = vld [vmem:[#allocation9 + $0x44] sm:$0xf0] }
  0xa4   : > { %769 = vmatpush.bf16.msra.mxu1 %v3285_v4  ;;  %v3441_v45 = vor.u32 %v3555_v44, %v3440_v43  ;;  %v3433_v48 = vor.u32 %v3553_v47, %v3432_v46  ;;  %v3424_v49 = vld [vmem:[#allocation9 + $0x30] sm:$0xf]  ;;  %v3551_v50 = vld [vmem:[#allocation9 + $0x34] sm:$0xf0]  ;;  %v3558_v51 = vld [vmem:[#allocation9 + $0x74] sm:$0xf] }
  0xa5   : > { %721 = vmatpush.bf16.msra.mxu0 %v3273_v5  ;;  %v3458_v52 = vld [vmem:[#allocation9 + $0x78] sm:$0xf0]  ;;  %v3425_v54 = vor.u32 %v3551_v50, %v3424_v49  ;;  %v3416_v55 = vld [vmem:[#allocation9 + $0x20] sm:$0xf]  ;;  %v3549_v56 = vld [vmem:[#allocation9 + $0x24] sm:$0xf0] }
  0xa6   : > { %962 = vmatpush.bf16.msra.mxu2 %v3341_v8  ;;  %v3461_v53 = vor.u32 %v3558_v51, %v3458_v52  ;;  %v3417_v57 = vor.u32 %v3549_v56, %v3416_v55  ;;  %v3506_v58 = vld [vmem:[%s4538_s10 + $0x20] sm:$0xff]  ;;  %v3408_v59 = vld [vmem:[#allocation9 + $0x10] sm:$0xf]  ;;  %v3547_v60 = vld [vmem:[#allocation9 + $0x14] sm:$0xf0]  ;;  %p545_p1 = scmp.eq.s32.totalorder %s7079_s23, 0 }
  0xa7   : > { %974 = vmatpush.bf16.msra.mxu3 %v3361_v21  ;;  %v3556_v61 = vld [vmem:[#allocation9 + $0x64] sm:$0xf]  ;;  %v3409_v62 = vor.u32 %v3547_v60, %v3408_v59  ;;  %v3450_v63 = vld [vmem:[#allocation9 + $0x68] sm:$0xf0]  ;;  %v3400_v1 = vld [vmem:[#allocation9] sm:$0xf] }
  0xa8   : > { %770 = vmatpush.bf16.msra.mxu1 %v3277_v16  ;;  %v3453_v0 = vor.u32 %v3556_v61, %v3450_v63  ;;  %v3545_v2 = vld [vmem:[#allocation9 + $0x4] sm:$0xf0]  ;;  %v3554_v3 = vld [vmem:[#allocation9 + $0x54] sm:$0xf]  ;;  %v3442_v5 = vld [vmem:[#allocation9 + $0x58] sm:$0xf0] }
  0xa9   : > { %722 = vmatpush.bf16.msra.mxu0 %v3265_v17  ;;  %v3401_v4 = vor.u32 %v3545_v2, %v3400_v1  ;;  %v3445_v6 = vor.u32 %v3554_v3, %v3442_v5  ;;  %v3552_v7 = vld [vmem:[#allocation9 + $0x44] sm:$0xf]  ;;  %v3434_v8 = vld [vmem:[#allocation9 + $0x48] sm:$0xf0]  ;;  %v3543_v9 = vld [vmem:[%s474_s24] sm:$0xff]  ;;  %p547_p3 = scmp.eq.s32.totalorder %s7079_s23, 1 }
  0xaa   : > { %963 = vmatpush.bf16.msra.mxu2 %v3333_v20  ;;  %v3437_v10 = vor.u32 %v3552_v7, %v3434_v8  ;;  %v3550_v11 = vld [vmem:[#allocation9 + $0x34] sm:$0xf]  ;;  %v3426_v12 = vld [vmem:[#allocation9 + $0x38] sm:$0xf0]  ;;  %v3507_v13 = vld [vmem:[%s4538_s10 + $0x28] sm:$0xff]  ;;  %s6801_s29 = scalar_lea.vmem [#allocation14], %s3223_s19 }
  0xab   : > { %975 = vmatpush.bf16.msra.mxu3 %v3353_v27  ;;  %v3429_v14 = vor.u32 %v3550_v11, %v3426_v12  ;;  %v3548_v15 = vld [vmem:[#allocation9 + $0x24] sm:$0xf]  ;;  %v3418_v16 = vld [vmem:[#allocation9 + $0x28] sm:$0xf0]  ;;  %v3546_v18 = vld [vmem:[#allocation9 + $0x14] sm:$0xf] }
  0xac   : > { %723 = vmatmul.bf16.vlgmr.msra.gmra.mxu0 %v3502_v24  ;;  %771 = vmatpush.bf16.msra.mxu1 %v3269_v25  ;;  %v3421_v17 = vor.u32 %v3548_v15, %v3418_v16  ;;  %v3410_v19 = vld [vmem:[#allocation9 + $0x18] sm:$0xf0]  ;;  %v3544_v21 = vld [vmem:[#allocation9 + $0x4] sm:$0xf]  ;;  %v3402_v22 = vld [vmem:[#allocation9 + $0x8] sm:$0xf0] }
  0xad   : > { %964 = vmatmul.bf16.vlgmr.msra.gmra.mxu2 %v3526_v26  ;;  %v3413_v20 = vor.u32 %v3546_v18, %v3410_v19  ;;  %v3405_v23 = vor.u32 %v3544_v21, %v3402_v22  ;;  %v3509_v25 = vld [vmem:[%s4538_s10 + $0x38] sm:$0xff]  ;;  %v1181_v31 = vld [vmem:[#allocation11] sm:$0x77]  ;;  %s546_s1 = scalar_select %p545_p1, 0.0, 1.0 }
  0xae   : > { %1103 = vmatpush.bf16.msrb.mxu2 %v3457_v39  ;;  %v4592_v36 = vld [vmem:[%s7080_s25] sm:$0x3]  ;;  %v1346_v39 = vperm.slane %v1181_v31, 0  ;;  %v4608_v50 = vld [vmem:[#allocation11 + $0x10] sm:$0x77]  ;;  %v1889_v55 = vperm.slane %v1181_v31, 2 }
  0xaf   : > { %772 = vmatmul.bf16.vlgmr.msra.gmra.mxu1 %v3502_v24  ;;  %976 = vmatpush.bf16.msra.mxu3 %v3345_v30  ;;  %v3508_v24 = vld [vmem:[%s4538_s10 + $0x30] sm:$0xff]  ;;  %v581_v30 = vld [vmem:[%s7080_s25] sm:$0x3]  ;;  %v866_v43 = vperm.slane %v4592_v36, 0  ;;  %v1890_v61 = vperm.slane %v1181_v31, 6  ;;  %v1698_v63 = vperm.slane %v4608_v50, 1 }
  0xb0   : > { %v4604_v46 = vperm.slane %v1346_v39, 0  ;;  %v1488_v3 = vperm.slane %v4608_v50, 0  ;;  %v4631_v7 = vperm.slane %v1889_v55, 2  ;;  %s7193_s10 = sld [smem:[#allocation148_spill]]  ;;  %s3568_s2 = sshll.u32 %s7079_s23, 4 }
  0xb1   : > { %v4645_v16 = vperm.slane %v1698_v63, 1  ;;  %s548_s27 = scalar_select %p547_p3, 0.0, 1.0 }
  0xb2   : > { %1104 = vmatpush.bf16.msrb.mxu2 %v3449_v41  ;;  %7081 = vst [vmem:[#allocation37_spill] sm:$0xff] %v4604_v46  ;;  %v4650_v19 = vperm.slane %v1488_v3, 0  ;;  %s7486_s19 = sld [smem:[#allocation26_spill]]  ;;  %s3007_s23 = scalar_lea.sflag [#allocation5], %s4532_s12 }
  0xb3   : > { %977 = vmatpush.bf16.msra.mxu3 %v3337_v33  ;;  %v1182_v33 = vld [vmem:[#allocation11 + $0x8] sm:$0x77]  ;;  %7085 = vst [vmem:[#allocation41_spill] sm:$0xff] %v4631_v7  ;;  %s7487_s28 = sld [smem:[#allocation151_spill]] }
  0xb4   : > { %v1628_v40 = vperm.slane %v1182_v33, 1  ;;  %v1417_v41 = vperm.slane %v1182_v33, 0  ;;  %v1418_v49 = vperm.slane %v1182_v33, 4  ;;  %v1959_v59 = vperm.slane %v1182_v33, 2 }
  0xb6   : > { %978 = vmatmul.bf16.vlgmr.msra.gmra.mxu3 %v3526_v26  ;;  %1105 = vmatpush.bf16.msrb.mxu2 %v3441_v45  ;;  %v4606_v47 = vperm.slane %v1628_v40, 1  ;;  %v4610_v52 = vperm.slane %v1417_v41, 0  ;;  %v4623_v2 = vperm.slane %v1418_v49, 0  ;;  %v4638_v12 = vperm.slane %v1959_v59, 2 }
  0xb7   : > { %1117 = vmatpush.bf16.msrb.mxu3 %v3461_v53  ;;  %v1559_v53 = vperm.slane %v1181_v31, 5 }
  0xb8   : > { %7083 = vst [vmem:[#allocation39_spill] sm:$0xff] %v4623_v2  ;;  %s3497_s30 = sshll.u32 %s7486_s19, 5 }
  0xb9   : > { %v4627_v5 = vperm.slane %v1559_v53, 1  ;;  %7086 = vst [vmem:[#allocation42_spill] sm:$0xff] %v4638_v12  ;;  %s3019_s9 = sadd.s32 %s3568_s2, %s3497_s30 }
  0xba   : > { %1106 = vmatpush.bf16.msrb.mxu2 %v3433_v48  ;;  %v1347_v48 = vperm.slane %v1181_v31, 4  ;;  %s3498_s24 = sshll.u32 %s3019_s9, 2 }
  0xbb   : > { %1118 = vmatpush.bf16.msrb.mxu3 %v3453_v0  ;;  %s3021_s8 = scalar_lea.hbm %s7487_s28, %s3498_s24 }
  0xbc   : > { %728 = vmatmul.bf16.gmra.mxu0 %v3503_v34  ;;  %v4621_v1 = vperm.slane %v1347_v48, 0  ;;  %s3024_s18 = sshll.u32 %s3021_s8, 4  ;;  %s3025_s18 = int_to_ptr.hbm [resolvable:$true] %s3024_s18 }
  0xbd   : > { %s4056_s13 = sshra.s32 %s3025_s18, 4  ;;  %s4057_s13 = int_to_ptr.hbm [resolvable:$true] %s4056_s13 }
  0xbe   : > { %1107 = vmatpush.bf16.msrb.mxu2 %v3425_v54  ;;  %v1629_v54 = vperm.slane %v1182_v33, 5  ;;  %7082 = vst [vmem:[#allocation38_spill] sm:$0xff] %v4621_v1  ;;  %p4063_p0 = scmp.lt.s32.totalorder %s4057_s13, %s7487_s28 }
  0xbf   : > { %777 = vmatmul.bf16.gmra.mxu1 %v3503_v34  ;;  %1119 = vmatpush.bf16.msrb.mxu3 %v3445_v6  ;;  %v4587_v34 = vperm.slane %v581_v30, 0 }
  0xc0   : > { %v4629_v6 = vperm.slane %v1629_v54, 1 }
  0xc2   : > { %1108 = vmatpush.bf16.msrb.mxu2 %v3417_v57  ;;  %7084 = vst [vmem:[#allocation40_spill] sm:$0xff] %v4629_v6 }
  0xc3   : > { %1120 = vmatpush.bf16.msrb.mxu3 %v3437_v10 }
  0xc6   : > { %1109 = vmatpush.bf16.msrb.mxu2 %v3409_v62  ;;  %v1960_v62 = vperm.slane %v1182_v33, 6 }
  0xc7   : > { %1121 = vmatpush.bf16.msrb.mxu3 %v3429_v14  ;;  %v4641_v14 = vperm.slane %v1890_v61, 2 }
  0xc8   : > { %v4643_v15 = vperm.slane %v1960_v62, 2 }
  0xc9   : > { %7087 = vst [vmem:[#allocation43_spill] sm:$0xff] %v4641_v14 }
  0xca   : > { %1110 = vmatpush.bf16.msrb.mxu2 %v3401_v4  ;;  %v2029_v4 = vperm.slane %v4608_v50, 2  ;;  %7088 = vst [vmem:[#allocation44_spill] sm:$0xff] %v4643_v15 }
  0xcb   : > { %1122 = vmatpush.bf16.msrb.mxu3 %v3421_v17 }
  0xcc   : > { %733 = vmatmul.bf16.gmra.mxu0 %v3504_v35 }
  0xcd   : > { %1111 = vmatmul.bf16.vlgmr.msrb.gmra.mxu2 %v3543_v9 }
  0xcf   : > { %782 = vmatmul.bf16.gmra.mxu1 %v3504_v35  ;;  %1123 = vmatpush.bf16.msrb.mxu3 %v3413_v20  ;;  %v1558_v35 = vperm.slane %v1181_v31, 1  ;;  %v4652_v20 = vperm.slane %v2029_v4, 2 }
  0xd1   : > { %v4602_v45 = vperm.slane %v1558_v35, 1  ;;  %7089 = vst [vmem:[#allocation45_spill] sm:$0xff] %v4652_v20 }
  0xd3   : > { %1124 = vmatpush.bf16.msrb.mxu3 %v3405_v23 }
  0xd6   : > { %1125 = vmatmul.bf16.vlgmr.msrb.gmra.mxu3 %v3543_v9 }
  0xdc   : > { %738 = vmatmul.bf16.gmra.mxu0 %v3505_v42 }
  0xdf   : > { %787 = vmatmul.bf16.gmra.mxu1 %v3505_v42  ;;  %v4596_v42 = vperm.slane %v581_v30, 1 }
  0xec   : > { %743 = vmatmul.bf16.gmra.mxu0 %v3506_v58 }
  0xef   : > { %792 = vmatmul.bf16.gmra.mxu1 %v3506_v58  ;;  %v4615_v58 = vstv %s546_s1  ;;  %s3022_s1 = sshll.u32 %s6801_s29, 4  ;;  %s3023_s1 = int_to_ptr.vmem [resolvable:$true] %s3022_s1 }
  0xfc   : > { %748 = vmatmul.bf16.gmra.mxu0 %v3507_v13 }
  0xff   : > { %797 = vmatmul.bf16.gmra.mxu1 %v3507_v13 }
 0x10c   : > { %753 = vmatmul.bf16.gmra.mxu0 %v3508_v24 }
 0x10f   : > { %802 = vmatmul.bf16.gmra.mxu1 %v3508_v24 }
 0x11c   : > { %758 = vmatmul.bf16.gmra.mxu0 %v3509_v25 }
 0x11f   : > { %807 = vmatmul.bf16.gmra.mxu1 %v3509_v25  ;;  %v1699_v25 = vperm.slane %v4608_v50, 5 }
 0x129   : > { %v724_v26 = vpop.f32.mrf.mxu0 }
 0x12a   : > { %v4600_v44 = vadd.f32 %v724_v26, %v4587_v34 }
 0x12c   : > { %v773_v27 = vpop.f32.mrf.mxu1  ;;  %v1231_v60 = vrot.slane %v4600_v44, 7  ;;  %v4658_v22 = vmul.f32 %v4602_v45, %v4600_v44  ;;  %v4662_v23 = vmul.f32 %v4606_v47, %v4600_v44  ;;  %v1775_v24 = vrot.slane %v4600_v44, 1 }
 0x12d   : > { %v4613_v56 = vadd.f32 %v773_v27, %v4596_v42 }
 0x12e   : > { %v1327_v13 = vsel %vm1224_vm0, 0.0, %v1231_v60 }
 0x12f   : > { %v1232_v9 = vrot.slane %v4613_v56, 7  ;;  %v4667_v26 = vmul.f32 %v4604_v46, %v1327_v13  ;;  %v1423_v31 = vmul.f32 %v4610_v52, %v1327_v13  ;;  %v1778_v39 = vrot.slane %v4613_v56, 1 }
 0x130   : > { %v965_v37 = vpop.f32.mrf.mxu2 }
 0x131   : > { %v726_v28 = vpop.f32.mrf.mxu0  ;;  %v966_v57 = vadd.f32 %v965_v37, %v866_v43  ;;  %v1328_v27 = vsel %vm1224_vm0, 0.0, %v1232_v9  ;;  %v4680_v37 = vmul.f32 %v4629_v6, %v4613_v56 }
 0x132   : > { %v727_v11 = vadd.f32 %v726_v28, %v4587_v34  ;;  %v4691_v44 = vmul.f32 %v4623_v2, %v1328_v27 }
 0x133   : > { %v4635_v10 = vmul.f32 %v4615_v58, %v966_v57  ;;  %7091 = vst [vmem:[#allocation47_spill] sm:$0xff] %v4680_v37 }
 0x134   : > { %v4581_v29 = vpop.f32.mrf.mxu1  ;;  %v1233_v30 = vrot.slane %v727_v11, 7  ;;  %v1776_v33 = vrot.slane %v727_v11, 1  ;;  %v4694_v48 = vmul.f32 %v4602_v45, %v727_v11  ;;  %v4703_v55 = vmul.f32 %v4606_v47, %v727_v11 }
 0x135   : > { %v1225_v28 = vrot.slane %v4635_v10, 7  ;;  %v776_v35 = vadd.f32 %v4581_v29, %v4596_v42  ;;  %v4696_v29 = vperm.slane %v1699_v25, 1  ;;  %v1564_v63 = vmul.f32 %v4602_v45, %v4635_v10 }
 0x136   : > { %7092 = vst [vmem:[#allocation48_spill] sm:$0xff] %v4694_v48  ;;  %v1234_v54 = vsel %vm1224_vm0, %v1231_v60, %v1233_v30  ;;  %v1777_v57 = vsel %vm1768_vm1, %v1775_v24, %v1776_v33  ;;  %v1871_v59 = vsel %vm1768_vm1, %v1776_v33, 0.0  ;;  %v1769_v3 = vrot.slane %v4635_v10, 1 }
 0x137   : > { %7093 = vst [vmem:[#allocation49_spill] sm:$0xff] %v4696_v29  ;;  %v1325_v53 = vsel %vm1224_vm0, 0.0, %v1225_v28  ;;  %v1235_v61 = vrot.slane %v776_v35, 7  ;;  %v1779_v62 = vrot.slane %v776_v35, 1  ;;  %v1425_v13 = vmul.f32 %v4610_v52, %v1234_v54 }
 0x138   : > { %v967_v8 = vpop.f32.mrf.mxu2  ;;  %v1352_v11 = vmul.f32 %v4604_v46, %v1325_v53  ;;  %v4722_v24 = vmul.f32 %v4631_v7, %v1777_v57  ;;  %v4725_v25 = vmul.f32 %v4631_v7, %v1871_v59  ;;  %v4728_v10 = vmul.f32 %v4638_v12, %v1777_v57 }
 0x139   : > { %v729_v32 = vpop.f32.mrf.mxu0  ;;  %v968_v17 = vadd.f32 %v967_v8, %v866_v43  ;;  %v4688_v43 = vmul.f32 %v4621_v1, %v1328_v27  ;;  %v1236_v30 = vsel %vm1224_vm0, %v1232_v9, %v1235_v61  ;;  %v1780_v33 = vsel %vm1768_vm1, %v1778_v39, %v1779_v62 }
 0x13a   : > { %v4648_v18 = vadd.f32 %v729_v32, %v4587_v34  ;;  %v4674_v32 = vmul.f32 %v4627_v5, %v4613_v56  ;;  %7094 = vst [vmem:[#allocation50_spill] sm:$0xff] %v4722_v24  ;;  %v4745_v57 = vmul.f32 %v4629_v6, %v776_v35  ;;  %v1455_v61 = vadd.f32 %v1423_v31, %v1352_v11 }
 0x13b   : > { %v4684_v40 = vmul.f32 %v4615_v58, %v968_v17  ;;  %7095 = vst [vmem:[#allocation51_spill] sm:$0xff] %v4725_v25  ;;  %v979_v17 = vpop.f32.mrf.mxu3  ;;  %v4742_v25 = vmul.f32 %v4627_v5, %v776_v35  ;;  %v1872_v39 = vsel %vm1768_vm1, %v1779_v62, 0.0  ;;  %v4752_v48 = vmul.f32 %v4621_v1, %v1236_v30 }
 0x13c   : > { %v4594_v38 = vpop.f32.mrf.mxu1  ;;  %7090 = vst [vmem:[#allocation46_spill] sm:$0xff] %v4674_v32  ;;  %v1237_v41 = vrot.slane %v4648_v18, 7  ;;  %v4739_v32 = vmul.f32 %v4638_v12, %v1871_v59  ;;  %v4755_v59 = vmul.f32 %v4623_v2, %v1236_v30  ;;  %v4772_v30 = vmul.f32 %v4641_v14, %v1872_v39 }
 0x13d   : > { %v1227_v4 = vrot.slane %v4684_v40, 7  ;;  %7096 = vst [vmem:[#allocation52_spill] sm:$0xff] %v4742_v25  ;;  %v1770_v24 = vrot.slane %v4684_v40, 1  ;;  %v4758_v25 = vmul.f32 %v4641_v14, %v1780_v33  ;;  %v7104_v62 = vperm.slane %v4592_v36, 1 }
 0x13e   : > { %v1329_v60 = vsel %vm1224_vm0, 0.0, %v1237_v41  ;;  %7097 = vst [vmem:[#allocation53_spill] sm:$0xff] %v4745_v57 }
 0x13f   : > { %v1494_v53 = vmul.f32 %v4650_v19, %v1329_v60  ;;  %v1228_v9 = vsel %vm1224_vm0, %v1225_v28, %v1227_v4  ;;  %7098 = vst [vmem:[#allocation54_spill] sm:$0xff] %v4752_v48  ;;  %v1360_v57 = vmul.f32 %v4604_v46, %v1329_v60 }
 0x140   : > { %7099 = vst [vmem:[#allocation55_spill] sm:$0xff] %v4758_v25  ;;  %v1354_v28 = vmul.f32 %v4604_v46, %v1228_v9  ;;  %v1771_v9 = vsel %vm1768_vm1, %v1769_v3, %v1770_v24  ;;  %v980_v25 = vadd.f32 %v979_v17, %v7104_v62  ;;  %v1781_v3 = vrot.slane %v4648_v18, 1 }
 0x141   : > { %v731_v51 = vpop.f32.mrf.mxu0  ;;  %v1526_v31 = vadd.f32 %v1494_v53, %v1455_v61  ;;  %7101 = vst [vmem:[#allocation57_spill] sm:$0xff] %v4772_v30  ;;  %v1869_v61 = vsel %vm1768_vm1, %v1770_v24, 0.0  ;;  %v1704_v30 = vmul.f32 %v4645_v16, %v4648_v18  ;;  %v1566_v62 = vmul.f32 %v4602_v45, %v4684_v40 }
 0x142   : > { %v4706_v56 = vadd.f32 %v731_v51, %v4587_v34  ;;  %v4717_v51 = vmul.f32 %v4604_v46, %v1234_v54  ;;  %v4736_v54 = vadd.f32 %v4594_v38, %v4596_v42  ;;  %v4775_v38 = vmul.f32 %v4643_v15, %v1780_v33 }
 0x143   : > { %v4789_v33 = vmul.f32 %v4602_v45, %v4648_v18  ;;  %v1457_v24 = vadd.f32 %v1425_v13, %v1354_v28  ;;  %v4808_v48 = vmul.f32 %v4631_v7, %v1869_v61  ;;  %v4819_v13 = vmul.f32 %v4615_v58, %v980_v25  ;;  %v981_v28 = vpop.f32.mrf.mxu3 }
 0x144   : > { %v4619_v0 = vpop.f32.mrf.mxu1  ;;  %v1239_v27 = vrot.slane %v4706_v56, 7  ;;  %7102 = vst [vmem:[#allocation58_spill] sm:$0xff] %v4775_v38  ;;  %v7105_v12 = vrot.slane %v4736_v54, 7 }
 0x145   : > { %v4837_v25 = vadd.f32 %v4619_v0, %v4596_v42  ;;  %v4855_v0 = vmul.f32 %v4602_v45, %v4706_v56 }
 0x146   : > { %v4761_v35 = vsel %vm1224_vm0, %v1237_v41, %v1239_v27  ;;  %v4778_v41 = vmul.f32 %v4643_v15, %v1872_v39  ;;  %v1427_v27 = vmul.f32 %v4610_v52, %v1329_v60  ;;  %v4793_v39 = vmul.f32 %v4606_v47, %v4648_v18 }
 0x147   : > { %v1596_v15 = vadd.f32 %v1564_v63, %v1526_v31  ;;  %v4801_v38 = vsel %vm1224_vm0, 0.0, %v7105_v12  ;;  %v4816_v63 = vmul.f32 %v4627_v5, %v4736_v54  ;;  %v4825_v31 = vmul.f32 %v4629_v6, %v4736_v54 }
 0x148   : > { %7103 = vst [vmem:[#allocation59_spill] sm:$0xff] %v4778_v41  ;;  %v1895_v41 = vmul.f32 %v4631_v7, %v1771_v9  ;;  %v4812_v18 = vadd.f32 %v1427_v27, %v4667_v26  ;;  %v1428_v40 = vmul.f32 %v4623_v2, %v4801_v38  ;;  %v4829_v26 = vmul.f32 %v4696_v29, %v4736_v54  ;;  %v3567_v27 = vld [vmem:[#allocation12 + $0x38] sm:$0xff] }
 0x149   : > { %v4654_v21 = vpop.f32.mrf.mxu0  ;;  %7106 = vst [vmem:[#allocation60_spill] sm:$0xff] %v4816_v63  ;;  %v1666_v9 = vadd.f32 %v4662_v23, %v1596_v15  ;;  %v1782_v63 = vrot.slane %v4706_v56, 1  ;;  %v7112_v15 = vperm.slane %v4592_v36, 1  ;;  %2925 = vmatpush.bf16.msra.mxu2 %v3567_v27  ;;  %3616 = vmatpush.bf16.msra.mxu3 %v3567_v27  ;;  %v1706_v36 = vmul.f32 %v4645_v16, %v4706_v56 }
 0x14a   : > { %v4767_v4 = vadd.f32 %v4654_v21, %v4587_v34  ;;  %v1496_v21 = vmul.f32 %v4650_v19, %v4761_v35  ;;  %7107 = vst [vmem:[#allocation61_spill] sm:$0xff] %v4825_v31  ;;  %v4865_v37 = vadd.f32 %v1428_v40, %v4688_v43  ;;  %v4875_v2 = vmul.f32 %v4627_v5, %v4837_v25 }
 0x14b   : > { %7108 = vst [vmem:[#allocation62_spill] sm:$0xff] %v4829_v26  ;;  %v982_v23 = vadd.f32 %v981_v28, %v7112_v15  ;;  %v1736_v15 = vadd.f32 %v1704_v30, %v1666_v9  ;;  %v1362_v43 = vmul.f32 %v4604_v46, %v4761_v35  ;;  %v4883_v40 = vsel %vm1768_vm1, %v1781_v3, %v1782_v63 }
 0x14c   : > { %v4698_v49 = vpop.f32.mrf.mxu1  ;;  %7100 = vst [vmem:[#allocation56_spill] sm:$0xff] %v4767_v4  ;;  %v1243_v17 = vrot.slane %v4767_v4, 7  ;;  %v1528_v12 = vadd.f32 %v1496_v21, %v1457_v24  ;;  %v4847_v24 = vmul.f32 %v4621_v1, %v4801_v38  ;;  %v4890_v9 = vsel %vm1768_vm1, %v1782_v63, 0.0 }
 0x14d   : > { %7114 = vst [vmem:[#allocation67_spill] sm:$0xff] %v4865_v37  ;;  %v4886_v37 = vmul.f32 %v4615_v58, %v982_v23  ;;  %v4906_v63 = vmul.f32 %v4629_v6, %v4837_v25  ;;  %v4910_v23 = vmul.f32 %v4696_v29, %v4837_v25 }
 0x14e   : > { %v4840_v61 = vsel %vm1224_vm0, 0.0, %v1243_v17  ;;  %7111 = vst [vmem:[#allocation65_spill] sm:$0xff] %v4847_v24  ;;  %v1598_v14 = vadd.f32 %v1566_v62, %v1528_v12  ;;  %v1226_v24 = vrot.slane %v4819_v13, 7  ;;  %v3566_v12 = vld [vmem:[#allocation12 + $0x30] sm:$0xff] }
 0x14f   : > { %v1431_v28 = vmul.f32 %v4610_v52, %v4840_v61  ;;  %7115 = vst [vmem:[#allocation68_spill] sm:$0xff] %v4875_v2  ;;  %2926 = vmatpush.bf16.msra.mxu2 %v3566_v12  ;;  %3617 = vmatpush.bf16.msra.mxu3 %v3566_v12  ;;  %v4923_v12 = vmul.f32 %v4652_v20, %v4883_v40 }
 0x150   : > { %7116 = vst [vmem:[#allocation69_spill] sm:$0xff] %v4883_v40  ;;  %v1668_v30 = vadd.f32 %v4703_v55, %v1598_v14  ;;  %v3565_v14 = vld [vmem:[#allocation12 + $0x28] sm:$0xff]  ;;  %v1927_v55 = vadd.f32 %v1895_v41, %v1736_v15  ;;  %v3564_v40 = vld [vmem:[#allocation12 + $0x20] sm:$0xff] }
 0x151   : > { %v736_v8 = vpop.f32.mrf.mxu0  ;;  %7117 = vst [vmem:[#allocation70_spill] sm:$0xff] %v4890_v9 }
 0x152   : > { %v4832_v60 = vadd.f32 %v736_v8, %v4587_v34  ;;  %v1784_v8 = vrot.slane %v4736_v54, 1  ;;  %7119 = vst [vmem:[#allocation72_spill] sm:$0xff] %v4906_v63  ;;  %v7123_v63 = vperm.slane %v4608_v50, 4 }
 0x153   : > { %7120 = vst [vmem:[#allocation73_spill] sm:$0xff] %v4910_v23  ;;  %2927 = vmatpush.bf16.msra.mxu2 %v3565_v14  ;;  %3618 = vmatpush.bf16.msra.mxu3 %v3565_v14  ;;  %v4959_v14 = vadd.f32 %v4698_v49, %v4596_v42  ;;  %v4973_v49 = vmul.f32 %v4606_v47, %v4767_v4 }
 0x154   : > { %v4769_v11 = vpop.f32.mrf.mxu1  ;;  %7109 = vst [vmem:[#allocation63_spill] sm:$0xff] %v4832_v60  ;;  %v1245_v62 = vrot.slane %v4832_v60, 7  ;;  %v4928_v23 = vperm.slane %v7123_v63, 0 }
 0x155   : > { %7122 = vst [vmem:[#allocation75_spill] sm:$0xff] %v4923_v12 }
 0x156   : > { %7124 = vst [vmem:[#allocation76_spill] sm:$0xff] %v4928_v23 }
 0x157   : > { %7128 = vst [vmem:[#allocation80_spill] sm:$0xff] %v4959_v14  ;;  %2928 = vmatpush.bf16.msra.mxu2 %v3564_v40  ;;  %3619 = vmatpush.bf16.msra.mxu3 %v3564_v40 }
 0x159   : > { %v739_v53 = vpop.f32.mrf.mxu0 }
 0x15a   : > { %v4843_v21 = vadd.f32 %v739_v53, %v4587_v34  ;;  %v4859_v53 = vmul.f32 %v4606_v47, %v4706_v56  ;;  %v1429_v56 = vmul.f32 %v4610_v52, %v4761_v35  ;;  %v4897_v35 = vsel %vm1224_vm0, %v1243_v17, %v1245_v62 }
 0x15c   : > { %7110 = vst [vmem:[#allocation64_spill] sm:$0xff] %v4843_v21  ;;  %v4862_v26 = vpop.f32.mrf.mxu1  ;;  %v1249_v27 = vrot.slane %v4843_v21, 7  ;;  %v1463_v21 = vadd.f32 %v1431_v28, %v1360_v57  ;;  %v1785_v57 = vrot.slane %v4837_v25, 1  ;;  %v4914_v17 = vadd.f32 %v1429_v56, %v4717_v51 }
 0x15d   : > { %7113 = vst [vmem:[#allocation66_spill] sm:$0xff] %v4859_v53  ;;  %v1326_v53 = vsel %vm1224_vm0, 0.0, %v1226_v24  ;;  %v4918_v28 = vmul.f32 %v4631_v7, %v4890_v9  ;;  %v1433_v51 = vmul.f32 %v4610_v52, %v4897_v35  ;;  %v1738_v56 = vadd.f32 %v1706_v36, %v1668_v30 }
 0x15e   : > { %v4894_v2 = vsel %vm1224_vm0, 0.0, %v1249_v27  ;;  %v1353_v15 = vmul.f32 %v4621_v1, %v1326_v53  ;;  %v4941_v53 = vadd.f32 %v4728_v10, %v1927_v55  ;;  %v4944_v63 = vsel %vm1768_vm1, %v1784_v8, %v1785_v57 }
 0x15f   : > { %v1502_v58 = vmul.f32 %v4650_v19, %v4894_v2  ;;  %7121 = vst [vmem:[#allocation74_spill] sm:$0xff] %v4918_v28  ;;  %v4947_v12 = vsel %vm1768_vm1, %v1785_v57, 0.0  ;;  %v1498_v36 = vmul.f32 %v4650_v19, %v4840_v61  ;;  %v1495_v57 = vmul.f32 %v4928_v23, %v4801_v38 }
 0x160   : > { %7126 = vst [vmem:[#allocation78_spill] sm:$0xff] %v4944_v63  ;;  %v1456_v55 = vadd.f32 %v4691_v44, %v1353_v15  ;;  %v6948_v15 = vrot.slane %v4959_v14, 7 }
 0x161   : > { %v741_v31 = vpop.f32.mrf.mxu0  ;;  %v1534_v41 = vadd.f32 %v1502_v58, %v1463_v21  ;;  %v4934_v21 = vmul.f32 %v4652_v20, %v4890_v9  ;;  %7127 = vst [vmem:[#allocation79_spill] sm:$0xff] %v4947_v12  ;;  %v1929_v9 = vadd.f32 %v4808_v48, %v1738_v56  ;;  %v1530_v38 = vadd.f32 %v1498_v36, %v4812_v18 }
 0x162   : > { %v4902_v3 = vadd.f32 %v741_v31, %v4587_v34  ;;  %v1229_v31 = vrot.slane %v4886_v37, 7  ;;  %v1364_v48 = vmul.f32 %v4604_v46, %v4840_v61  ;;  %v7130_v56 = vrot.slane %v4736_v54, 7 }
 0x163   : > { %7125 = vst [vmem:[#allocation77_spill] sm:$0xff] %v4934_v21  ;;  %v4937_v58 = vadd.f32 %v4789_v33, %v1534_v41  ;;  %v4955_v33 = vmul.f32 %v4602_v45, %v4767_v4  ;;  %v1465_v41 = vadd.f32 %v1433_v51, %v1362_v43  ;;  %v1565_v43 = vmul.f32 %v4627_v5, %v4819_v13 }
 0x164   : > { %7118 = vst [vmem:[#allocation71_spill] sm:$0xff] %v4902_v3  ;;  %v1251_v28 = vrot.slane %v4902_v3, 7  ;;  %v4951_v30 = vpop.f32.mrf.mxu1  ;;  %v1230_v10 = vsel %vm1224_vm0, %v1226_v24, %v1229_v31  ;;  %v4977_v24 = vmul.f32 %v4645_v16, %v4767_v4  ;;  %v1772_v31 = vrot.slane %v4819_v13, 1 }
 0x165   : > { %v1355_v40 = vmul.f32 %v4621_v1, %v1230_v10  ;;  %v7129_v51 = vrot.slane %v4837_v25, 7  ;;  %v1527_v18 = vadd.f32 %v1495_v57, %v1456_v55  ;;  %v1500_v36 = vmul.f32 %v4650_v19, %v4897_v35  ;;  %v3562_v55 = vld [vmem:[#allocation12 + $0x10] sm:$0xff] }
 0x166   : > { %v4963_v8 = vsel %vm1224_vm0, %v1249_v27, %v1251_v28  ;;  %v3563_v27 = vld [vmem:[#allocation12 + $0x18] sm:$0xff]  ;;  %v5004_v25 = vadd.f32 %v4739_v32, %v1929_v9  ;;  %v5008_v54 = vmul.f32 %v4627_v5, %v4959_v14  ;;  %v5012_v10 = vmul.f32 %v4629_v6, %v4959_v14 }
 0x167   : > { %v1504_v12 = vmul.f32 %v4650_v19, %v4963_v8  ;;  %v4993_v44 = vsel %vm1224_vm0, %v7130_v56, %v7129_v51  ;;  %2929 = vmatpush.bf16.msra.mxu2 %v3563_v27  ;;  %3620 = vmatpush.bf16.msra.mxu3 %v3563_v27  ;;  %v1458_v57 = vadd.f32 %v4755_v59, %v1355_v40 }
 0x168   : > { %7132 = vst [vmem:[#allocation82_spill] sm:$0xff] %v5004_v25  ;;  %v1497_v32 = vmul.f32 %v4928_v23, %v4993_v44  ;;  %v5026_v27 = vmul.f32 %v4696_v29, %v4959_v14  ;;  %v1532_v59 = vadd.f32 %v1500_v36, %v4914_v17  ;;  %v3561_v17 = vld [vmem:[#allocation12 + $0x8] sm:$0xff]  ;;  %v7148_v25 = vld [vmem:[#allocation53_spill] sm:$0xff] }
 0x169   : > { %v744_v62 = vpop.f32.mrf.mxu0  ;;  %v1536_v28 = vadd.f32 %v1504_v12, %v1465_v41  ;;  %7133 = vst [vmem:[#allocation83_spill] sm:$0xff] %v5008_v54  ;;  %v1332_v41 = vsel %vm1224_vm0, 0.0, %v6948_v15  ;;  %v1773_v15 = vrot.slane %v4886_v37, 1 }
 0x16a   : > { %v5001_v61 = vadd.f32 %v744_v62, %v4587_v34  ;;  %7134 = vst [vmem:[#allocation84_spill] sm:$0xff] %v5012_v10  ;;  %v1600_v62 = vadd.f32 %v4658_v22, %v1530_v38  ;;  %v1597_v22 = vadd.f32 %v1565_v43, %v1527_v18  ;;  %v1578_v38 = vmul.f32 %v4602_v45, %v4832_v60 }
 0x16b   : > { %v4998_v12 = vadd.f32 %v4855_v0, %v1536_v28  ;;  %v1435_v0 = vmul.f32 %v4610_v52, %v4894_v2  ;;  %7135 = vst [vmem:[#allocation85_spill] sm:$0xff] %v5026_v27  ;;  %2930 = vmatpush.bf16.msra.mxu2 %v3562_v55  ;;  %3621 = vmatpush.bf16.msra.mxu3 %v3562_v55  ;;  %v7138_v27 = vld [vmem:[#allocation39_spill] sm:$0xff] }
 0x16c   : > { %7131 = vst [vmem:[#allocation81_spill] sm:$0xff] %v5001_v61  ;;  %v1255_v9 = vrot.slane %v5001_v61, 7  ;;  %v5038_v56 = vpop.f32.mrf.mxu1  ;;  %v5043_v28 = vadd.f32 %v4769_v11, %v4596_v42  ;;  %v1670_v18 = vadd.f32 %v4793_v39, %v1600_v62  ;;  %v1529_v36 = vadd.f32 %v1497_v32, %v1458_v57  ;;  %v7140_v62 = vld [vmem:[#allocation48_spill] sm:$0xff] }
 0x16d   : > { %v1567_v10 = vmul.f32 %v4627_v5, %v4886_v37  ;;  %v1437_v55 = vmul.f32 %v4610_v52, %v4963_v8  ;;  %v5053_v54 = vmul.f32 %v4621_v1, %v1332_v41  ;;  %v1432_v11 = vmul.f32 %v7138_v27, %v1332_v41 }
 0x16e   : > { %v5036_v40 = vsel %vm1224_vm0, 0.0, %v1255_v9  ;;  %7137 = vst [vmem:[#allocation87_spill] sm:$0xff] %v5043_v28  ;;  %v1366_v39 = vmul.f32 %v4604_v46, %v4897_v35  ;;  %v1602_v57 = vadd.f32 %v7140_v62, %v1532_v59  ;;  %v6953_v37 = vrot.slane %v4832_v60, 1  ;;  %v7147_v62 = vld [vmem:[#allocation43_spill] sm:$0xff] }
 0x16f   : > { %v1506_v43 = vmul.f32 %v4650_v19, %v5036_v40  ;;  %2931 = vmatpush.bf16.msra.mxu2 %v3561_v17  ;;  %3622 = vmatpush.bf16.msra.mxu3 %v3561_v17  ;;  %v1774_v32 = vsel %vm1768_vm1, %v1772_v31, %v1773_v15  ;;  %v1247_v63 = vrot.slane %v5043_v28, 7  ;;  %v5072_v35 = vadd.f32 %v4862_v26, %v4596_v42 }
 0x170   : > { %v1469_v59 = vadd.f32 %v1437_v55, %v1366_v39  ;;  %v5077_v31 = vadd.f32 %v4977_v24, %v1670_v18  ;;  %v1430_v55 = vmul.f32 %v7138_v27, %v4993_v44  ;;  %v7145_v24 = vld [vmem:[#allocation66_spill] sm:$0xff]  ;;  %v1870_v39 = vsel %vm1768_vm1, %v1773_v15, 0.0 }
 0x171   : > { %v746_v13 = vpop.f32.mrf.mxu0  ;;  %7141 = vst [vmem:[#allocation39_spill] sm:$0xff] %v5072_v35  ;;  %v1672_v18 = vadd.f32 %v7145_v24, %v1602_v57  ;;  %v1363_v15 = vmul.f32 %v4621_v1, %v4993_v44 }
 0x172   : > { %v5030_v51 = vadd.f32 %v746_v13, %v4587_v34  ;;  %v1467_v13 = vadd.f32 %v1435_v0, %v1364_v48  ;;  %v7139_v0 = vld [vmem:[#allocation47_spill] sm:$0xff] }
 0x173   : > { %v1667_v20 = vadd.f32 %v7139_v0, %v1597_v22  ;;  %v1599_v22 = vadd.f32 %v1567_v10, %v1529_v36  ;;  %7142 = vst [vmem:[#allocation47_spill] sm:$0xff] %v5077_v31  ;;  %v1499_v0 = vmul.f32 %v4928_v23, %v1332_v41  ;;  %v7143_v10 = vld [vmem:[#allocation62_spill] sm:$0xff]  ;;  %v5094_v41 = vsel %vm1768_vm1, %v6953_v37, 0.0  ;;  %v7158_v37 = vld [vmem:[#allocation73_spill] sm:$0xff] }
 0x174   : > { %7136 = vst [vmem:[#allocation86_spill] sm:$0xff] %v5030_v51  ;;  %v1538_v4 = vadd.f32 %v1506_v43, %v1467_v13  ;;  %v1257_v48 = vrot.slane %v5030_v51, 7  ;;  %v3560_v43 = vld [vmem:[#allocation12] sm:$0xff]  ;;  %v1896_v31 = vmul.f32 %v7147_v62, %v1774_v32  ;;  %v5105_v57 = vpop.f32.mrf.mxu1 }
 0x175   : > { %2932 = vmatpush.bf16.msra.mxu2 %v3560_v43  ;;  %v1737_v26 = vadd.f32 %v7143_v10, %v1667_v20  ;;  %3623 = vmatpush.bf16.msra.mxu3 %v3560_v43  ;;  %7146 = vst [vmem:[#allocation48_spill] sm:$0xff] %v5094_v41  ;;  %v1669_v20 = vadd.f32 %v7148_v25, %v1599_v22 }
 0x176   : > { %v5065_v21 = vadd.f32 %v4955_v33, %v1538_v4  ;;  %v5068_v13 = vsel %vm1224_vm0, %v1255_v9, %v1257_v48  ;;  %v5082_v4 = vmul.f32 %v4606_v47, %v4832_v60  ;;  %v1710_v33 = vmul.f32 %v4645_v16, %v4832_v60  ;;  %v7144_v9 = vld [vmem:[#allocation65_spill] sm:$0xff] }
 0x177   : > { %v1508_v17 = vmul.f32 %v4650_v19, %v5068_v13  ;;  %v1464_v36 = vadd.f32 %v1432_v11, %v7144_v9  ;;  %v7149_v11 = vrot.slane %v4959_v14, 7  ;;  %v5115_v25 = vadd.f32 %v4951_v30, %v4596_v42 }
 0x178   : > { %v5129_v44 = vadd.f32 %v1710_v33, %v1672_v18  ;;  %v1928_v24 = vadd.f32 %v1896_v31, %v1737_v26  ;;  %v5134_v30 = vmul.f32 %v4629_v6, %v5043_v28  ;;  %v7161_v26 = vld [vmem:[#allocation64_spill] sm:$0xff]  ;;  %v1674_v14 = vadd.f32 %v4973_v49, %v4937_v58 }
 0x179   : > { %v1540_v48 = vadd.f32 %v1508_v17, %v1469_v59  ;;  %v1248_v10 = vsel %vm1224_vm0, %v7149_v11, %v1247_v63  ;;  %v1250_v59 = vrot.slane %v5072_v35, 7  ;;  %v7150_v17 = vld [vmem:[#allocation67_spill] sm:$0xff]  ;;  %7152 = vst [vmem:[#allocation65_spill] sm:$0xff] %v5115_v25  ;;  %v5119_v63 = vmul.f32 %v4631_v7, %v5094_v41 }
 0x17a   : > { %v5108_v9 = vadd.f32 %v1499_v0, %v7150_v17  ;;  %v1434_v32 = vmul.f32 %v7138_v27, %v1248_v10  ;;  %v5127_v0 = vmul.f32 %v4627_v5, %v5043_v28  ;;  %7156 = vst [vmem:[#allocation67_spill] sm:$0xff] %v5129_v44  ;;  %v1367_v11 = vmul.f32 %v4621_v1, %v1248_v10  ;;  %v749_v17 = vpop.f32.mrf.mxu0 }
 0x17b   : > { %v5103_v43 = vadd.f32 %v1578_v38, %v1540_v48  ;;  %7153 = vst [vmem:[#allocation66_spill] sm:$0xff] %v5119_v63  ;;  %v7154_v38 = vld [vmem:[#allocation54_spill] sm:$0xff]  ;;  %v1898_v48 = vmul.f32 %v7147_v62, %v1870_v39  ;;  %v1739_v63 = vadd.f32 %v7158_v37, %v1669_v20  ;;  %v5142_v39 = vmul.f32 %v4696_v29, %v5043_v28  ;;  %v7168_v28 = vld [vmem:[#allocation59_spill] sm:$0xff] }
 0x17c   : > { %7151 = vst [vmem:[#allocation62_spill] sm:$0xff] %v5108_v9  ;;  %v5122_v22 = vadd.f32 %v1430_v55, %v7154_v38  ;;  %v5138_v55 = vmul.f32 %v4928_v23, %v1248_v10  ;;  %v1334_v33 = vsel %vm1224_vm0, 0.0, %v1250_v59  ;;  %v5145_v18 = vadd.f32 %v1434_v32, %v1363_v15 }
 0x17d   : > { %7155 = vst [vmem:[#allocation53_spill] sm:$0xff] %v5127_v0  ;;  %v5150_v38 = vmul.f32 %v4602_v45, %v7161_v26  ;;  %v1253_v62 = vrot.slane %v5115_v25, 7  ;;  %v5155_v37 = vmul.f32 %v4606_v47, %v7161_v26  ;;  %v1712_v20 = vmul.f32 %v4645_v16, %v7161_v26 }
 0x17e   : > { %7157 = vst [vmem:[#allocation54_spill] sm:$0xff] %v5134_v30  ;;  %v1368_v32 = vmul.f32 %v4604_v46, %v4894_v2  ;;  %v1436_v31 = vmul.f32 %v7138_v27, %v1334_v33  ;;  %v1503_v30 = vmul.f32 %v4928_v23, %v1334_v33  ;;  %v5167_v0 = vadd.f32 %v5038_v56, %v4596_v42 }
 0x17f   : > { %7159 = vst [vmem:[#allocation73_spill] sm:$0xff] %v5142_v39  ;;  %v5173_v10 = vmul.f32 %v4627_v5, %v5072_v35  ;;  %v5177_v15 = vmul.f32 %v4629_v6, %v5072_v35  ;;  %v1369_v2 = vmul.f32 %v4621_v1, %v1334_v33  ;;  %v5182_v26 = vmul.f32 %v4696_v29, %v5072_v35 }
 0x180   : > { %7160 = vst [vmem:[#allocation88_spill] sm:$0xff] %v5145_v18  ;;  %v1930_v18 = vadd.f32 %v1898_v48, %v1739_v63  ;;  %v1254_v63 = vsel %vm1224_vm0, %v1250_v59, %v1253_v62  ;;  %v5188_v58 = vmul.f32 %v4602_v45, %v4902_v3  ;;  %v5192_v49 = vmul.f32 %v4606_v47, %v4902_v3 }
 0x181   : > { %7162 = vst [vmem:[#allocation89_spill] sm:$0xff] %v5167_v0  ;;  %v7165_v48 = vrot.slane %v4902_v3, 1  ;;  %v1468_v56 = vadd.f32 %v1436_v31, %v5053_v54  ;;  %v5201_v35 = vadd.f32 %v1503_v30, %v1464_v36  ;;  %v1714_v62 = vmul.f32 %v4645_v16, %v4902_v3 }
 0x182   : > { %7163 = vst [vmem:[#allocation90_spill] sm:$0xff] %v5177_v15  ;;  %v1438_v15 = vmul.f32 %v7138_v27, %v1254_v63  ;;  %v1256_v59 = vrot.slane %v5167_v0, 7  ;;  %v5207_v39 = vadd.f32 %v7168_v28, %v1930_v18  ;;  %v5209_v41 = vadd.f32 %v1712_v20, %v1674_v14  ;;  %v751_v28 = vpop.f32.mrf.mxu0 }
 0x183   : > { %7164 = vst [vmem:[#allocation91_spill] sm:$0xff] %v5182_v26  ;;  %v5197_v33 = vsel %vm1768_vm1, %v7165_v48, 0.0  ;;  %v798_v26 = vpop.f32.mrf.mxu1  ;;  %v1370_v48 = vmul.f32 %v4604_v46, %v4963_v8  ;;  %v5215_v9 = vmul.f32 %v4627_v5, %v5115_v25  ;;  %v5222_v36 = vmul.f32 %v4621_v1, %v1254_v63 }
 0x184   : > { %7166 = vst [vmem:[#allocation92_spill] sm:$0xff] %v5197_v33  ;;  %v5219_v54 = vmul.f32 %v4631_v7, %v5197_v33  ;;  %v5225_v30 = vmul.f32 %v4928_v23, %v1254_v63  ;;  %v5229_v14 = vmul.f32 %v4629_v6, %v5115_v25  ;;  %v1676_v8 = vadd.f32 %v5082_v4, %v4998_v12 }
 0x185   : > { %7167 = vst [vmem:[#allocation93_spill] sm:$0xff] %v5201_v35  ;;  %v5233_v18 = vadd.f32 %v1438_v15, %v1367_v11  ;;  %v5237_v31 = vmul.f32 %v4696_v29, %v5115_v25  ;;  %v5242_v63 = vmul.f32 %v4602_v45, %v5001_v61  ;;  %v1336_v33 = vsel %vm1224_vm0, 0.0, %v1256_v59 }
 0x186   : > { %7169 = vst [vmem:[#allocation59_spill] sm:$0xff] %v5207_v39  ;;  %v5251_v12 = vmul.f32 %v4606_v47, %v5001_v61  ;;  %v1716_v4 = vmul.f32 %v4645_v16, %v5001_v61  ;;  %v5257_v15 = vadd.f32 %v751_v28, %v4587_v34  ;;  %v1439_v20 = vmul.f32 %v4610_v52, %v5036_v40 }
 0x187   : > { %7170 = vst [vmem:[#allocation94_spill] sm:$0xff] %v5209_v41  ;;  %v7176_v41 = vld [vmem:[#allocation58_spill] sm:$0xff]  ;;  %v5270_v35 = vadd.f32 %v749_v17, %v4587_v34  ;;  %v1440_v11 = vmul.f32 %v7138_v27, %v1336_v33  ;;  %v1507_v28 = vmul.f32 %v4928_v23, %v1336_v33  ;;  %v5279_v25 = vmul.f32 %v4604_v46, %v5036_v40 }
 0x188   : > { %7171 = vst [vmem:[#allocation95_spill] sm:$0xff] %v5225_v30  ;;  %v5290_v17 = vadd.f32 %v798_v26, %v4596_v42  ;;  %v1441_v40 = vmul.f32 %v4610_v52, %v5068_v13  ;;  %v1263_v61 = vrot.slane %v5257_v15, 7  ;;  %v5301_v30 = vmul.f32 %v4602_v45, %v5030_v51 }
 0x189   : > { %7172 = vst [vmem:[#allocation96_spill] sm:$0xff] %v5229_v14  ;;  %v5246_v14 = vadd.f32 %v7176_v41, %v1928_v24  ;;  %v5263_v41 = vmul.f32 %v4627_v5, %v5167_v0  ;;  %v5267_v24 = vadd.f32 %v5105_v57, %v4596_v42  ;;  %v5287_v57 = vmul.f32 %v4696_v29, %v5167_v0 }
 0x18a   : > { %7173 = vst [vmem:[#allocation97_spill] sm:$0xff] %v5233_v18  ;;  %v1261_v26 = vrot.slane %v5270_v35, 7  ;;  %v1472_v3 = vadd.f32 %v1440_v11, %v1369_v2  ;;  %v7189_v11 = vld [vmem:[#allocation42_spill] sm:$0xff] }
 0x18b   : > { %7174 = vst [vmem:[#allocation98_spill] sm:$0xff] %v5237_v31  ;;  %v5272_v31 = vadd.f32 %v1714_v62, %v1676_v8  ;;  %v5293_v62 = vmul.f32 %v4621_v1, %v1336_v33  ;;  %v800_v18 = vpop.f32.mrf.mxu1  ;;  %v1678_v33 = vadd.f32 %v5155_v37, %v5065_v21  ;;  %v5307_v8 = vadd.f32 %v1507_v28, %v1468_v56 }
 0x18c   : > { %7175 = vst [vmem:[#allocation99_spill] sm:$0xff] %v5242_v63  ;;  %v5326_v21 = vmul.f32 %v4604_v46, %v5068_v13  ;;  %v1473_v37 = vadd.f32 %v1441_v40, %v1370_v48  ;;  %v5333_v2 = vsel %vm1224_vm0, %v1261_v26, %v1263_v61  ;;  %v1337_v13 = vsel %vm1224_vm0, 0.0, %v1261_v26 }
 0x18d   : > { %7177 = vst [vmem:[#allocation58_spill] sm:$0xff] %v5246_v14  ;;  %v5322_v14 = vadd.f32 %v800_v18, %v4596_v42  ;;  %v5345_v48 = vadd.f32 %v1716_v4, %v1678_v33  ;;  %v5350_v61 = vmul.f32 %v4629_v6, %v5267_v24  ;;  %v7198_v33 = vld [vmem:[#allocation77_spill] sm:$0xff]  ;;  %v1720_v63 = vmul.f32 %v4645_v16, %v5270_v35 }
 0x18e   : > { %7178 = vst [vmem:[#allocation100_spill] sm:$0xff] %v5263_v41  ;;  %v5283_v41 = vmul.f32 %v4629_v6, %v5167_v0  ;;  %v7185_v0 = vrot.slane %v5030_v51, 1 }
 0x18f   : > { %7179 = vst [vmem:[#allocation101_spill] sm:$0xff] %v5267_v24  ;;  %v1265_v4 = vrot.slane %v5322_v14, 7 }
 0x190   : > { %7180 = vst [vmem:[#allocation102_spill] sm:$0xff] %v5270_v35  ;;  %v5312_v39 = vsel %vm1768_vm1, %v7185_v0, 0.0  ;;  %v5330_v0 = vmul.f32 %v4627_v5, %v5267_v24 }
 0x191   : > { %7181 = vst [vmem:[#allocation103_spill] sm:$0xff] %v5272_v31  ;;  %v1471_v31 = vadd.f32 %v1439_v20, %v1368_v32  ;;  %v5316_v32 = vmul.f32 %v4606_v47, %v5030_v51  ;;  %v1718_v20 = vmul.f32 %v4645_v16, %v5030_v51  ;;  %v5337_v56 = vmul.f32 %v4631_v7, %v5312_v39 }
 0x192   : > { %7182 = vst [vmem:[#allocation104_spill] sm:$0xff] %v5287_v57  ;;  %v1259_v57 = vrot.slane %v5267_v24, 7  ;;  %v5341_v18 = vmul.f32 %v7189_v11, %v5312_v39  ;;  %v5377_v51 = vmul.f32 %v4602_v45, %v5270_v35  ;;  %v1443_v7 = vmul.f32 %v4610_v52, %v1337_v13 }
 0x193   : > { %7183 = vst [vmem:[#allocation105_spill] sm:$0xff] %v5301_v30  ;;  %v1262_v30 = vrot.slane %v5290_v17, 7 }
 0x194   : > { %7184 = vst [vmem:[#allocation106_spill] sm:$0xff] %v5307_v8  ;;  %v1260_v28 = vsel %vm1224_vm0, %v1256_v59, %v1259_v57  ;;  %v1512_v59 = vmul.f32 %v4650_v19, %v5333_v2  ;;  %v1680_v57 = vadd.f32 %v5192_v49, %v5103_v43  ;;  %v5381_v8 = vmul.f32 %v4606_v47, %v5270_v35  ;;  %v7196_v43 = vld [vmem:[#allocation75_spill] sm:$0xff] }
 0x195   : > { %7186 = vst [vmem:[#allocation107_spill] sm:$0xff] %v5312_v39  ;;  %v1442_v40 = vmul.f32 %v7138_v27, %v1260_v28  ;;  %v1338_v39 = vsel %vm1224_vm0, 0.0, %v1262_v30  ;;  %v5366_v26 = vmul.f32 %v4928_v23, %v1260_v28  ;;  %v2067_v49 = vadd.f32 %v7196_v43, %v4941_v53 }
 0x196   : > { %7187 = vst [vmem:[#allocation108_spill] sm:$0xff] %v5330_v0  ;;  %v5354_v0 = vmul.f32 %v4696_v29, %v5267_v24  ;;  %v1511_v11 = vmul.f32 %v4928_v23, %v1338_v39  ;;  %v1544_v44 = vadd.f32 %v1512_v59, %v1473_v37  ;;  %v5397_v53 = vadd.f32 %v1718_v20, %v1680_v57 }
 0x197   : > { %7188 = vst [vmem:[#allocation109_spill] sm:$0xff] %v5337_v56  ;;  %v5357_v56 = vmul.f32 %v4621_v1, %v1260_v28  ;;  %v7197_v28 = vld [vmem:[#allocation82_spill] sm:$0xff]  ;;  %v7201_v43 = vperm.slane %v4608_v50, 6  ;;  %v1809_v35 = vrot.slane %v5322_v14, 1 }
 0x198   : > { %7190 = vst [vmem:[#allocation110_spill] sm:$0xff] %v5345_v48  ;;  %v5373_v48 = vld [vmem:[%s7193_s10] sm:$0x3]  ;;  %v2069_v24 = vadd.f32 %v7198_v33, %v7197_v28  ;;  %v5400_v33 = vmul.f32 %v4604_v46, %v1337_v13  ;;  %v1543_v50 = vadd.f32 %v1511_v11, %v1472_v3  ;;  %v1614_v59 = vadd.f32 %v5188_v58, %v1544_v44  ;;  %v803_v58 = vpop.f32.mrf.mxu1  ;;  %s4058_s10 = scalar_lea.hbm %s4057_s13, 64 }
 0x199   : > { %7191 = vst [vmem:[#allocation111_spill] sm:$0xff] %v5354_v0  ;;  %v1510_v0 = vmul.f32 %v4650_v19, %v1337_v13  ;;  %v5395_v60 = vperm.slane %v5373_v48, 0  ;;  %v5404_v28 = vperm.slane %v7201_v43, 2  ;;  %v1444_v3 = vmul.f32 %v7138_v27, %v1338_v39  ;;  %p4059_p2 = scmp.ne.s32.totalorder %s4057_s13, %s4058_s10 }
 0x19a   : > { %7192 = vst [vmem:[#allocation112_spill] sm:$0xff] %v5366_v26  ;;  %v1474_v26 = vadd.f32 %v1442_v40, %v5222_v36  ;;  %v754_v40 = vpop.f32.mrf.mxu0  ;;  %v5441_v11 = vmul.f32 %v4602_v45, %v5257_v15  ;;  %v5445_v44 = vmul.f32 %v4606_v47, %v5257_v15 }
 0x19b   : > { %7194 = vst [vmem:[#allocation113_spill] sm:$0xff] %v5377_v51  ;;  %v1542_v36 = vadd.f32 %v1510_v0, %v1471_v31  ;;  %v5408_v51 = vmul.f32 %v4627_v5, %v5290_v17  ;;  %v5415_v20 = vadd.f32 %v5395_v60, %v2067_v49  ;;  %v5418_v37 = vadd.f32 %v5395_v60, %v2069_v24  ;;  %p4060_p8 = pnand %p4059_p2, %p4469_p5 }
 0x19c   : > { %7195 = vst [vmem:[#allocation114_spill] sm:$0xff] %v5381_v8  ;;  %v1266_v8 = vsel %vm1224_vm0, %v1262_v30, %v1265_v4  ;;  %v5412_v30 = vmul.f32 %v4629_v6, %v5290_v17  ;;  %v5421_v31 = vadd.f32 %v1443_v7, %v5279_v25  ;;  %v1721_v0 = vmul.f32 %v4696_v29, %v5290_v17 }
 0x19d   : > { %7199 = vst [vmem:[#allocation75_spill] sm:$0xff] %v5397_v53  ;;  %v1513_v13 = vmul.f32 %v4928_v23, %v1266_v8  ;;  %v5428_v4 = vadd.f32 %v754_v40, %v4587_v34  ;;  %v5431_v57 = vmul.f32 0.70710677, %v5415_v20  ;;  %v5434_v24 = vmul.f32 0.70710677, %v5418_v37  ;;  %p4061_p9 = pneg %p4060_p8 }
 0x19e   : > { %7200 = vst [vmem:[#allocation82_spill] sm:$0xff] %v5400_v33  ;;  %v1612_v7 = vadd.f32 %v5150_v38, %v1542_v36  ;;  %v1808_v25 = vrot.slane %v5290_v17, 1  ;;  %v5455_v38 = vmul.f32 %v4621_v1, %v1338_v39  ;;  %v1613_v17 = vadd.f32 %v5173_v10, %v1543_v50  ;;  %v7208_v50 = vld [vmem:[#allocation78_spill] sm:$0xff] }
 0x19f   : > { %7202 = vst [vmem:[#allocation77_spill] sm:$0xff] %v5404_v28  ;;  %v5449_v49 = vand.u32 2147483647, %v5431_v57  ;;  %v5452_v40 = vand.u32 2147483647, %v5434_v24  ;;  %v1722_v36 = vmul.f32 %v4645_v16, %v5257_v15  ;;  %v1545_v43 = vadd.f32 %v1513_v13, %v1474_v26 }
 0x1a0   : > { %7203 = vst [vmem:[#allocation115_spill] sm:$0xff] %v5408_v51  ;;  %v1682_v33 = vadd.f32 %v5251_v12, %v1612_v7  ;;  %v5466_v39 = vadd.f32 %v1444_v3, %v5293_v62  ;;  %v5469_v10 = vadd.f32 %v803_v58, %v4596_v42  ;;  %v5473_v26 = vmul.f32 %v5404_v28, %v7208_v50 }
 0x1a1   : > { %7204 = vst [vmem:[#allocation116_spill] sm:$0xff] %v5412_v30  ;;  %v1684_v30 = vadd.f32 %v5316_v32, %v1614_v59  ;;  %v2186_v51 = vmul.f32 0.3275911, %v5452_v40  ;;  %v1445_v32 = vmul.f32 %v4610_v52, %v5333_v2  ;;  %v7209_v13 = vrot.slane %v5257_v15, 1 }
 0x1a2   : > { %7205 = vst [vmem:[#allocation117_spill] sm:$0xff] %v5441_v11  ;;  %v2185_v11 = vmul.f32 0.3275911, %v5449_v49  ;;  %v1683_v62 = vadd.f32 %v5283_v41, %v1613_v17  ;;  %v5489_v7 = vmul.f32 %v4604_v46, %v5333_v2  ;;  %v1446_v3 = vmul.f32 %v7138_v27, %v1266_v8  ;;  %v7215_v41 = vld [vmem:[#allocation45_spill] sm:$0xff] }
 0x1a3   : > { %7206 = vst [vmem:[#allocation118_spill] sm:$0xff] %v5455_v38  ;;  %v5480_v59 = vsel %vm1768_vm1, %v7209_v13, 0.0  ;;  %v5484_v12 = vadd.f32 1.0, %v2186_v51  ;;  %v1615_v58 = vadd.f32 %v5215_v9, %v1545_v43  ;;  %v1754_v38 = vadd.f32 %v1722_v36, %v1684_v30 }
 0x1a4   : > { %7207 = vst [vmem:[#allocation119_spill] sm:$0xff] %v5469_v10  ;;  %v5482_v53 = vadd.f32 1.0, %v2185_v11  ;;  %v7212_v13 = vrot.slane %v5428_v4, 7  ;;  %v5500_v51 = vadd.f32 %v1720_v63, %v1682_v33  ;;  %v5504_v2 = vmul.f32 %v7215_v41, %v5480_v59 }
 0x1a5   : > { %7210 = vst [vmem:[#allocation120_spill] sm:$0xff] %v5480_v59  ;;  %v5509_v9 = vadd.f32 %v1445_v32, %v5326_v21  ;;  %v5512_v30 = vmul.f32 %v4621_v1, %v1266_v8  ;;  %v5516_v36 = vmul.f32 %v4627_v5, %v5322_v14  ;;  %v5520_v63 = vmul.f32 %v4629_v6, %v5322_v14  ;;  %v7246_v1 = vld [vmem:[#allocation42_spill] sm:$0xff] }
 0x1a6   : > { %7211 = vst [vmem:[#allocation121_spill] sm:$0xff] %v5489_v7  ;;  %v5497_v11 = vsel %vm1224_vm0, 0.0, %v7212_v13  ;;  %3798 = vrcp.f32 %v5482_v53  ;;  %v5522_v33 = vadd.f32 %v1721_v0, %v1683_v62  ;;  %v1685_v43 = vadd.f32 %v5350_v61, %v1615_v58  ;;  %v756_v58 = vpop.f32.mrf.mxu0 }
 0x1a7   : > { %7213 = vst [vmem:[#allocation122_spill] sm:$0xff] %v5497_v11  ;;  %3800 = vrcp.f32 %v5484_v12  ;;  %v1723_v13 = vmul.f32 %v4696_v29, %v5322_v14  ;;  %v1514_v21 = vmul.f32 %v4650_v19, %v5497_v11  ;;  %v1945_v8 = vadd.f32 %v5219_v54, %v1754_v38 }
 0x1a8   : > { %7214 = vst [vmem:[#allocation123_spill] sm:$0xff] %v5500_v51  ;;  %v5531_v32 = vadd.f32 %v1446_v3, %v5357_v56  ;;  %v5534_v17 = vsel %vm1768_vm1, %v1808_v25, %v1809_v35  ;;  %v5541_v61 = vmul.f32 %v4602_v45, %v5428_v4  ;;  %v5545_v14 = vmul.f32 %v4606_v47, %v5428_v4 }
 0x1a9   : > { %7216 = vst [vmem:[#allocation45_spill] sm:$0xff] %v5504_v2  ;;  %v5549_v54 = vmul.f32 %v4645_v16, %v5428_v4  ;;  %v7226_v56 = vrot.slane %v5469_v10, 7  ;;  %v5563_v62 = vmul.f32 %v4627_v5, %v5469_v10  ;;  %v5567_v3 = vmul.f32 %v4629_v6, %v5469_v10 }
 0x1aa   : > { %7217 = vst [vmem:[#allocation124_spill] sm:$0xff] %v5512_v30  ;;  %v5574_v2 = vmul.f32 %v4696_v29, %v5469_v10  ;;  %vm2222_vm4 = vweird.f32 %v5482_v53  ;;  %vm2237_vm6 = vweird.f32 %v5484_v12  ;;  %vm2697_vm10 = vcmp.ge.f32.partialorder %v5431_v57, 0.0 }
 0x1ab   : > { %7218 = vst [vmem:[#allocation125_spill] sm:$0xff] %v5516_v36  ;;  %v5554_v0 = vsel %vm1224_vm0, 0.0, %v7226_v56  ;;  %v5569_v56 = vadd.f32 %v1723_v13, %v1685_v43  ;;  %v5589_v13 = vadd.f32 %v756_v58, %v4587_v34  ;;  %v7237_v36 = vld [vmem:[#allocation50_spill] sm:$0xff]  ;;  %v2243_v58 = vand.u32 2147483648, %v5484_v12 }
 0x1ac   : > { %7219 = vst [vmem:[#allocation126_spill] sm:$0xff] %v5520_v63  ;;  %v5537_v63 = vsel %vm1768_vm1, %v1809_v35, 0.0  ;;  %v3799_v25 = vpop.eup %3798  ;;  %v5558_v35 = vmul.f32 %v4610_v52, %v5497_v11  ;;  %v1515_v51 = vmul.f32 %v4928_v23, %v5554_v0  ;;  %vm2698_vm11 = vcmp.ge.f32.partialorder %v5434_v24, 0.0 }
 0x1ad   : > { %7220 = vst [vmem:[#allocation127_spill] sm:$0xff] %v5522_v33  ;;  %v2218_v38 = vmul.f32 %v3799_v25, %v5482_v53  ;;  %v5578_v33 = vadd.f32 %v5341_v18, %v1945_v8  ;;  %v2228_v18 = vand.u32 2147483648, %v5482_v53  ;;  %vm2223_vm2 = vweird.f32 %v3799_v25 }
 0x1ae   : > { %7221 = vst [vmem:[#allocation128_spill] sm:$0xff] %v5531_v32  ;;  %v805_v32 = vpop.f32.mrf.mxu1  ;;  %vm2224_vm5 = vmor %vm2222_vm4, %vm2223_vm2 }
 0x1af   : > { %7222 = vst [vmem:[#allocation129_spill] sm:$0xff] %v5534_v17  ;;  %v1546_v17 = vadd.f32 %v1514_v21, %v5421_v31  ;;  %v5592_v21 = vadd.f32 %v805_v32, %v4596_v42  ;;  %v2226_v31 = vand.u32 2147483647, %v5482_v53  ;;  %v2241_v32 = vand.u32 2147483647, %v5484_v12 }
 0x1b0   : > { %7223 = vst [vmem:[#allocation130_spill] sm:$0xff] %v5537_v63  ;;  %v3801_v63 = vpop.eup %3800 }
 0x1b1   : > { %7224 = vst [vmem:[#allocation131_spill] sm:$0xff] %v5541_v61  ;;  %v2233_v43 = vmul.f32 %v3801_v63, %v5484_v12  ;;  %vm2238_vm3 = vweird.f32 %v3801_v63  ;;  %vm2227_vm7 = vcmp.eq.f32.partialorder %v2226_v31, 8.507059e+37  ;;  %vm2242_vm9 = vcmp.eq.f32.partialorder %v2241_v32, 8.507059e+37  ;;  %v7248_v31 = vld [vmem:[#allocation99_spill] sm:$0xff] }
 0x1b2   : > { %7225 = vst [vmem:[#allocation132_spill] sm:$0xff] %v5545_v14  ;;  %v7240_v14 = vld [vmem:[#allocation56_spill] sm:$0xff]  ;;  %vm2239_vm8 = vmor %vm2237_vm6, %vm2238_vm3  ;;  %v2602_v12 = vsub.f32 0.0, %v5452_v40 }
 0x1b3   : > { %7227 = vst [vmem:[#allocation133_spill] sm:$0xff] %v5554_v0  ;;  %v2234_v8 = vsub.f32 1.0, %v2233_v43  ;;  %v7241_v43 = vrot.slane %v7240_v14, 1 }
 0x1b4   : > { %7228 = vst [vmem:[#allocation134_spill] sm:$0xff] %v5558_v35 }
 0x1b5   : > { %7229 = vst [vmem:[#allocation135_spill] sm:$0xff] %v5563_v62  ;;  %v5582_v62 = vmul.f32 %v7138_v27, %v5554_v0  ;;  %v2235_v7 = vmul.f32 %v3801_v63, %v2234_v8  ;;  %v2229_v8 = vor.u32 1.1754944e-38, %v2228_v18  ;;  %v1616_v18 = vadd.f32 %v7248_v31, %v1546_v17  ;;  %v7253_v31 = vld [vmem:[#allocation48_spill] sm:$0xff] }
 0x1b6   : > { %7230 = vst [vmem:[#allocation136_spill] sm:$0xff] %v5567_v3  ;;  %v2041_v11 = vmul.f32 %v7215_v41, %v7253_v31 }
 0x1b7   : > { %7231 = vst [vmem:[#allocation137_spill] sm:$0xff] %v5569_v56  ;;  %v7236_v56 = vld [vmem:[#allocation47_spill] sm:$0xff]  ;;  %v2236_v35 = vadd.f32 %v3801_v63, %v2235_v7 }
 0x1b8   : > { %7232 = vst [vmem:[#allocation138_spill] sm:$0xff] %v5574_v2  ;;  %v2219_v2 = vsub.f32 1.0, %v2218_v38  ;;  %v1931_v30 = vadd.f32 %v7237_v36, %v7236_v56  ;;  %v7238_v38 = vld [vmem:[#allocation63_spill] sm:$0xff]  ;;  %v7245_v56 = vld [vmem:[#allocation69_spill] sm:$0xff] }
 0x1b9   : > { %7233 = vst [vmem:[#allocation139_spill] sm:$0xff] %v5578_v33  ;;  %v1533_v33 = vadd.f32 %v5138_v55, %v5122_v22  ;;  %v7239_v61 = vrot.slane %v7238_v38, 1  ;;  %v7243_v55 = vld [vmem:[#allocation67_spill] sm:$0xff]  ;;  %v1969_v0 = vmul.f32 %v7246_v1, %v7245_v56  ;;  %v2601_v38 = vsub.f32 0.0, %v5449_v49 }
 0x1ba   : > { %7234 = vst [vmem:[#allocation140_spill] sm:$0xff] %v5582_v62  ;;  %v2220_v3 = vmul.f32 %v3799_v25, %v2219_v2  ;;  %v7244_v2 = vld [vmem:[#allocation51_spill] sm:$0xff]  ;;  %v2240_v53 = vsel %vm2239_vm8, %v3801_v63, %v2236_v35  ;;  %v5630_v35 = vadd.f32 %v1515_v51, %v5466_v39  ;;  %v2618_v51 = vmul.f32 %v2602_v12, %v5452_v40  ;;  %v7265_v12 = vld [vmem:[#allocation73_spill] sm:$0xff] }
 0x1bb   : > { %7235 = vst [vmem:[#allocation141_spill] sm:$0xff] %v5592_v21  ;;  %v5607_v62 = vsel %vm1768_vm1, %v7241_v43, %v7239_v61  ;;  %v1933_v36 = vadd.f32 %v7244_v2, %v7243_v55  ;;  %v2244_v61 = vor.u32 1.1754944e-38, %v2243_v58  ;;  %v7247_v55 = vld [vmem:[#allocation70_spill] sm:$0xff]  ;;  %v7250_v58 = vld [vmem:[#allocation79_spill] sm:$0xff] }
 0x1bc   : > { %7242 = vst [vmem:[#allocation47_spill] sm:$0xff] %v5607_v62  ;;  %v2221_v22 = vadd.f32 %v3799_v25, %v2220_v3  ;;  %v2001_v3 = vadd.f32 %v1969_v0, %v1931_v30  ;;  %v1971_v2 = vmul.f32 %v7246_v1, %v7247_v55  ;;  %v1269_v30 = vrot.slane %v5589_v13, 7  ;;  %v7252_v55 = vld [vmem:[#allocation46_spill] sm:$0xff] }
 0x1bd   : > { %v5620_v46 = vsel %vm2242_vm9, %v2244_v61, %v2240_v53  ;;  %7249 = vst [vmem:[#allocation50_spill] sm:$0xff] %v5630_v35  ;;  %v5634_v32 = vmul.f32 %v5404_v28, %v7250_v58  ;;  %v2617_v61 = vmul.f32 %v2601_v38, %v5449_v49  ;;  %v7251_v53 = vld [vmem:[#allocation62_spill] sm:$0xff]  ;;  %v5655_v38 = vmul.f32 %v4606_v47, %v5589_v13 }
 0x1be   : > { %v2225_v14 = vsel %vm2224_vm5, %v3799_v25, %v2221_v22  ;;  %v2039_v25 = vmul.f32 %v7215_v41, %v5607_v62  ;;  %v2458_v0 = vmul.f32 1.0614054, %v5620_v46  ;;  %v2003_v63 = vadd.f32 %v1971_v2, %v1933_v36  ;;  %v7255_v2 = vld [vmem:[#allocation52_spill] sm:$0xff] }
 0x1bf   : > { %v5616_v43 = vsel %vm2227_vm7, %v2229_v8, %v2225_v14  ;;  %v1601_v17 = vadd.f32 %v7252_v55, %v7251_v53  ;;  %v5643_v36 = vmul.f32 %v4602_v45, %v5589_v13  ;;  %7257 = vst [vmem:[#allocation56_spill] sm:$0xff] %v5655_v38  ;;  %v7258_v45 = vld [vmem:[#allocation114_spill] sm:$0xff]  ;;  %v2633_v55 = vmul.f32 1.442695, %v2617_v61 }
 0x1c0   : > { %v2457_v7 = vmul.f32 1.0614054, %v5616_v43  ;;  %v2071_v8 = vadd.f32 %v2039_v25, %v2001_v3  ;;  %v2474_v14 = vadd.f32 -1.4531521, %v2458_v0  ;;  %v7256_v3 = vrot.slane %v5428_v4, 7 }
 0x1c1   : > { %7254 = vst [vmem:[#allocation63_spill] sm:$0xff] %v5643_v36  ;;  %v2073_v0 = vadd.f32 %v2041_v11, %v2003_v63  ;;  %v1686_v53 = vadd.f32 %v7258_v45, %v1616_v18  ;;  %v2635_v18 = vmul.f32 1.442695, %v2618_v51  ;;  %v7260_v63 = vld [vmem:[#allocation72_spill] sm:$0xff]  ;;  %v1271_v35 = vrot.slane %v5592_v21, 7  ;;  %v7276_v36 = vld [vmem:[#allocation87_spill] sm:$0xff] }
 0x1c2   : > { %v2473_v22 = vadd.f32 -1.4531521, %v2457_v7  ;;  %v1603_v7 = vadd.f32 %v7255_v2, %v1533_v33  ;;  %v5651_v49 = vsel %vm1224_vm0, %v7256_v3, %v1269_v30  ;;  %v2490_v25 = vmul.f32 %v2474_v14, %v5620_v46  ;;  %v7259_v2 = vld [vmem:[#allocation61_spill] sm:$0xff] }
 0x1c3   : > { %v5664_v33 = vadd.f32 %v5395_v60, %v2071_v8  ;;  %v1671_v3 = vadd.f32 %v7259_v2, %v1601_v17  ;;  %v1516_v14 = vmul.f32 %v4650_v19, %v5651_v49  ;;  %v5675_v8 = vmul.f32 %v4627_v5, %v5592_v21 }
 0x1c4   : > { %v2489_v39 = vmul.f32 %v2473_v22, %v5616_v43  ;;  %v5661_v22 = vmul.f32 %v4645_v16, %v5589_v13  ;;  %v2506_v30 = vadd.f32 1.4214138, %v2490_v25  ;;  %v1673_v45 = vadd.f32 %v7260_v63, %v1603_v7 }
 0x1c5   : > { %7261 = vst [vmem:[#allocation67_spill] sm:$0xff] %v5675_v8  ;;  %v5679_v61 = vadd.f32 %v5395_v60, %v2073_v0  ;;  %v5683_v17 = vmul.f32 %v4629_v6, %v5592_v21  ;;  %v5687_v51 = vmul.f32 %v4696_v29, %v5592_v21  ;;  %v5690_v25 = vmul.f32 0.70710677, %v5664_v33 }
 0x1c6   : > { %v2505_v40 = vadd.f32 1.4214138, %v2489_v39  ;;  %v2522_v39 = vmul.f32 %v2506_v30, %v5620_v46  ;;  %3802 = vpow2.f32 %v2633_v55  ;;  %v7264_v30 = vld [vmem:[#allocation85_spill] sm:$0xff]  ;;  %v1548_v0 = vadd.f32 %v1516_v14, %v5509_v9 }
 0x1c7   : > { %7262 = vst [vmem:[#allocation51_spill] sm:$0xff] %v5683_v17  ;;  %v1741_v2 = vadd.f32 %v7264_v30, %v1671_v3  ;;  %3804 = vpow2.f32 %v2635_v18  ;;  %v1743_v8 = vadd.f32 %v7265_v12, %v1673_v45  ;;  %v5698_v17 = vadd.f32 %v5549_v54, %v1686_v53  ;;  %v7271_v18 = vld [vmem:[#allocation58_spill] sm:$0xff]  ;;  %v7273_v30 = vld [vmem:[#allocation44_spill] sm:$0xff] }
 0x1c8   : > { %v2521_v11 = vmul.f32 %v2505_v40, %v5616_v43  ;;  %7263 = vst [vmem:[#allocation69_spill] sm:$0xff] %v5687_v51  ;;  %v2538_v40 = vadd.f32 -0.28449672, %v2522_v39  ;;  %v5706_v55 = vmul.f32 0.70710677, %v5679_v61  ;;  %v7267_v3 = vrot.slane %v5589_v13, 1 }
 0x1c9   : > { %7266 = vst [vmem:[#allocation42_spill] sm:$0xff] %v5698_v17  ;;  %v7269_v14 = vrot.slane %v5469_v10, 7  ;;  %v5719_v53 = vand.u32 2147483647, %v5690_v25  ;;  %v2068_v45 = vadd.f32 %v5473_v26, %v7271_v18  ;;  %v1970_v51 = vmul.f32 %v7273_v30, %v7208_v50 }
 0x1ca   : > { %v2537_v7 = vadd.f32 -0.28449672, %v2521_v11  ;;  %v5702_v11 = vmul.f32 %v4610_v52, %v5651_v49  ;;  %v2554_v5 = vmul.f32 %v2538_v40, %v5620_v46  ;;  %v5711_v9 = vsel %vm1768_vm1, %v7267_v3, 0.0  ;;  %v7274_v3 = vld [vmem:[#allocation105_spill] sm:$0xff] }
 0x1cb   : > { %7268 = vst [vmem:[#allocation70_spill] sm:$0xff] %v5711_v9  ;;  %v5716_v12 = vsel %vm1224_vm0, %v7269_v14, %v1271_v35  ;;  %v1618_v17 = vadd.f32 %v7274_v3, %v1548_v0  ;;  %v7275_v9 = vld [vmem:[#allocation57_spill] sm:$0xff]  ;;  %v7277_v26 = vrot.slane %v7276_v36, 1  ;;  %v2187_v3 = vmul.f32 0.3275911, %v5719_v53 }
 0x1cc   : > { %v2553_v63 = vmul.f32 %v2537_v7, %v5616_v43  ;;  %7270 = vst [vmem:[#allocation99_spill] sm:$0xff] %v5716_v12  ;;  %v2570_v39 = vadd.f32 0.2548296, %v2554_v5  ;;  %v7272_v7 = vld [vmem:[#allocation55_spill] sm:$0xff]  ;;  %v1934_v35 = vadd.f32 %v7275_v9, %v1743_v8  ;;  %v3803_v14 = vpop.eup %3802  ;;  %v7278_v5 = vld [vmem:[#allocation80_spill] sm:$0xff]  ;;  %v5755_v36 = vmul.f32 %v7138_v27, %v5716_v12 }
 0x1cd   : > { %v1932_v40 = vadd.f32 %v7272_v7, %v1741_v2  ;;  %v7279_v18 = vrot.slane %v7278_v5, 1  ;;  %v7281_v7 = vmov %v7277_v26  ;;  %v3805_v8 = vpop.eup %3804  ;;  %v7283_v9 = vld [vmem:[#allocation59_spill] sm:$0xff]  ;;  %vm2699_vm6 = vcmp.ge.f32.partialorder %v5690_v25, 0.0 }
 0x1ce   : > { %v2569_v54 = vadd.f32 0.2548296, %v2553_v63  ;;  %v1972_v63 = vmul.f32 %v7273_v30, %v7250_v58  ;;  %v2586_v38 = vmul.f32 %v2570_v39, %v5620_v46  ;;  %v5742_v0 = vsel %vm1768_vm1, %v7281_v7, 0.0 }
 0x1cf   : > { %v5737_v2 = vsel %vm1768_vm1, %v7279_v18, %v7277_v26  ;;  %7282 = vst [vmem:[#allocation46_spill] sm:$0xff] %v5742_v0  ;;  %v5750_v46 = vperm.slane %v5373_v48, 1  ;;  %v7285_v26 = vrot.slane %v5592_v21, 1  ;;  %v2002_v7 = vadd.f32 %v1970_v51, %v1932_v40 }
 0x1d0   : > { %v2585_v10 = vmul.f32 %v2569_v54, %v5616_v43  ;;  %7280 = vst [vmem:[#allocation62_spill] sm:$0xff] %v5737_v2  ;;  %v5745_v43 = vand.u32 2147483647, %v5706_v55  ;;  %v2070_v54 = vadd.f32 %v5634_v32, %v7283_v9  ;;  %v2666_v18 = vmul.f32 %v3805_v8, %v2586_v38 }
 0x1d1   : > { %7284 = vst [vmem:[#allocation48_spill] sm:$0xff] %v5750_v46  ;;  %v5760_v5 = vsel %vm1768_vm1, %v7285_v26, 0.0  ;;  %v2004_v32 = vadd.f32 %v1972_v63, %v1934_v35  ;;  %v2040_v48 = vmul.f32 %v5404_v28, %v5737_v2  ;;  %v5769_v9 = vmul.f32 %v4928_v23, %v5716_v12 }
 0x1d2   : > { %v2665_v39 = vmul.f32 %v3803_v14, %v2585_v10  ;;  %7286 = vst [vmem:[#allocation52_spill] sm:$0xff] %v5760_v5  ;;  %v2042_v10 = vmul.f32 %v5404_v28, %v5742_v0  ;;  %v1688_v14 = vadd.f32 %v5445_v44, %v1618_v17  ;;  %v2682_v21 = vsub.f32 1.0, %v2666_v18  ;;  %v5783_v17 = vld [vmem:[%s7080_s25] sm:$0x3]  ;;  %v7289_v28 = vld [vmem:[#allocation41_spill] sm:$0xff] }
 0x1d3   : > { %7287 = vst [vmem:[#allocation114_spill] sm:$0xff] %v5769_v9  ;;  %v2188_v26 = vmul.f32 0.3275911, %v5745_v43  ;;  %v2106_v38 = vadd.f32 %v5750_v46, %v2068_v45  ;;  %v2108_v51 = vadd.f32 %v5750_v46, %v2070_v54  ;;  %v5775_v35 = vadd.f32 1.0, %v2187_v3  ;;  %v759_v54 = vpop.f32.mrf.mxu0  ;;  %v7314_v0 = vld [vmem:[#allocation134_spill] sm:$0xff] }
 0x1d4   : > { %v2681_v30 = vsub.f32 1.0, %v2665_v39  ;;  %v2137_v63 = vmul.f32 0.5, %v5415_v20  ;;  %v2138_v8 = vmul.f32 0.5, %v5418_v37  ;;  %v2714_v44 = vsub.f32 0.0, %v2682_v21 }
 0x1d5   : > { %v2072_v39 = vadd.f32 %v2040_v48, %v2002_v7  ;;  %v2074_v3 = vadd.f32 %v2042_v10, %v2004_v32  ;;  %v5787_v18 = vadd.f32 %v5661_v22, %v1688_v14  ;;  %v5789_v5 = vadd.f32 1.0, %v2188_v26  ;;  %v7291_v32 = vld [vmem:[#allocation102_spill] sm:$0xff]  ;;  %v1112_v10 = vpop.f32.mrf.mxu2 }
 0x1d6   : > { %v2713_v40 = vsub.f32 0.0, %v2681_v30  ;;  %v2730_v20 = vsel %vm2698_vm11, %v2682_v21, %v2714_v44  ;;  %v6992_v9 = vperm.slane %v5783_v17, 0  ;;  %3806 = vrcp.f32 %v5775_v35 }
 0x1d7   : > { %7288 = vst [vmem:[#allocation61_spill] sm:$0xff] %v5787_v18  ;;  %v2746_v57 = vadd.f32 1.0, %v2730_v20  ;;  %v5795_v24 = vmul.f32 %v7289_v28, %v7245_v56  ;;  %v5798_v7 = vadd.f32 %v759_v54, %v4587_v34  ;;  %v7290_v22 = vrot.slane %v5257_v15, 1 }
 0x1d8   : > { %v2729_v45 = vsel %vm2697_vm10, %v2681_v30, %v2713_v40  ;;  %v7292_v21 = vrot.slane %v7291_v32, 1  ;;  %v2603_v14 = vsub.f32 0.0, %v5719_v53  ;;  %v5811_v56 = vadd.f32 %v5750_v46, %v2072_v39 }
 0x1d9   : > { %v2745_v37 = vadd.f32 1.0, %v2729_v45  ;;  %v2762_v26 = vmul.f32 %v2746_v57, %v2138_v8  ;;  %v5814_v40 = vadd.f32 %v5750_v46, %v2074_v3  ;;  %v5820_v44 = vmul.f32 0.5, %v5679_v61 }
 0x1da   : > { %v5805_v48 = vsel %vm1768_vm1, %v7292_v21, %v7290_v22  ;;  %7294 = vst [vmem:[#allocation85_spill] sm:$0xff] %v5811_v56  ;;  %v2258_v45 = vand.u32 2147483648, %v5775_v35  ;;  %3808 = vrcp.f32 %v5789_v5  ;;  %v1113_v39 = vadd.f32 %v1112_v10, %v6992_v9  ;;  %v7325_v56 = vld [vmem:[#allocation60_spill] sm:$0xff] }
 0x1db   : > { %v2761_v30 = vmul.f32 %v2745_v37, %v2137_v63  ;;  %7293 = vst [vmem:[#allocation72_spill] sm:$0xff] %v5805_v48  ;;  %v5817_v63 = vmul.f32 0.5, %v5664_v33  ;;  %v2778_v54 = vmul.f32 %v2762_v26, %v2108_v51  ;;  %v5826_v8 = vmul.f32 %v7289_v28, %v5805_v48 }
 0x1dc   : > { %7295 = vst [vmem:[#allocation73_spill] sm:$0xff] %v5814_v40  ;;  %v2256_v3 = vand.u32 2147483647, %v5775_v35  ;;  %v5832_v20 = vstv %s548_s27  ;;  %v2619_v61 = vmul.f32 %v2603_v14, %v5719_v53  ;;  %v3807_v37 = vpop.eup %3806  ;;  %v5837_v51 = vmul.f32 %v7215_v41, %v5805_v48  ;;  %v7311_v48 = vld [vmem:[#allocation122_spill] sm:$0xff]  ;;  %s4062_s27 = scalar_lea.hbm %s7487_s28, 256 }
 0x1dd   : > { %7296 = vst [vmem:[#allocation58_spill] sm:$0xff] %v5817_v63  ;;  %v2777_v15 = vmul.f32 %v2761_v30, %v2106_v38  ;;  %v2794_v57 = vpack.c.bf16 %v2778_v54, %v2778_v54  ;;  %v808_v30 = vpop.f32.mrf.mxu1  ;;  %v5841_v22 = vmul.f32 %v7289_v28, %v5480_v59  ;;  %v5845_v32 = vmul.f32 %v7246_v1, %v5607_v62  ;;  %v7309_v59 = vld [vmem:[#allocation64_spill] sm:$0xff]  ;;  %v1114_v12 = vpop.f32.mrf.mxu2  ;;  %p4064_p4 = scmp.lt.s32.totalorder %s4062_s27, %s4058_s10 }
 0x1de   : > { %7297 = vst [vmem:[#allocation55_spill] sm:$0xff] %v5820_v44  ;;  %v5848_v21 = vadd.f32 %v808_v30, %v4596_v42  ;;  %vm2252_vm12 = vweird.f32 %v5775_v35  ;;  %v2259_v53 = vor.u32 1.1754944e-38, %v2258_v45  ;;  %v5854_v14 = vmul.f32 %v7246_v1, %v7253_v31 }
 0x1df   : > { %v2793_v33 = vpack.c.bf16 %v2777_v15, %v2777_v15  ;;  %7298 = vst [vmem:[#allocation105_spill] sm:$0xff] %v5837_v51  ;;  %v2846_v15 = vunpack.c.l.b16 %v2794_v57  ;;  %v5857_v54 = vmul.f32 %v5832_v20, %v1113_v39  ;;  %v7301_v9 = vrot.slane %v5589_v13, 1  ;;  %v7307_v57 = vld [vmem:[#allocation71_spill] sm:$0xff]  ;;  %v7312_v51 = vld [vmem:[#allocation37_spill] sm:$0xff]  ;;  %p4065_p10 = por %p4064_p4, %p4063_p0 }
 0x1e0   : > { %7299 = vst [vmem:[#allocation57_spill] sm:$0xff] %v5841_v22  ;;  %v7302_v38 = vrot.slane %v5428_v4, 1  ;;  %v3809_v18 = vpop.eup %3808  ;;  %v7304_v45 = vrot.slane %v5798_v7, 7  ;;  %v2248_v31 = vmul.f32 %v3807_v37, %v5775_v35  ;;  %vm5870_vm13 = vcmp.eq.f32.partialorder %v2256_v3, 8.507059e+37 }
 0x1e1   : > { %7300 = vst [vmem:[#allocation87_spill] sm:$0xff] %v5848_v21  ;;  %v2845_v26 = vunpack.c.l.b16 %v2793_v33  ;;  %v5874_v39 = vmul.f32 1.442695, %v2619_v61  ;;  %v7308_v13 = vrot.slane %v7307_v57, 1  ;;  %v7310_v4 = vrot.slane %v7309_v59, 1  ;;  %v7328_v33 = vld [vmem:[#allocation113_spill] sm:$0xff]  ;;  %p4066_p13 = pnand %p4065_p10, %p4061_p9 }
 0x1e2   : > { %v5864_v30 = vsel %vm1768_vm1, %v7302_v38, %v7301_v9  ;;  %v1341_v10 = vsel %vm1224_vm0, 0.0, %v7304_v45  ;;  %v1380_v46 = vmul.f32 %v7312_v51, %v7311_v48  ;;  %vm2267_vm14 = vweird.f32 %v5789_v5  ;;  %v7313_v45 = vld [vmem:[#allocation82_spill] sm:$0xff]  ;;  %v7315_v48 = vld [vmem:[#allocation133_spill] sm:$0xff] }
 0x1e3   : > { %7303 = vst [vmem:[#allocation80_spill] sm:$0xff] %v5864_v30  ;;  %v5881_v9 = vsel %vm1768_vm1, %v7310_v4, %v7308_v13  ;;  %v2861_v38 = vpack.c.b16 %v2846_v15, %v2845_v26  ;;  %v2271_v3 = vand.u32 2147483647, %v5789_v5  ;;  %v1479_v2 = vadd.f32 %v7314_v0, %v7313_v45  ;;  %v7316_v13 = vld [vmem:[#allocation38_spill] sm:$0xff] }
 0x1e4   : > { %v5891_v61 = vmul.f32 %v7289_v28, %v5864_v30  ;;  %v2249_v57 = vsub.f32 1.0, %v2248_v31  ;;  %v1518_v26 = vmul.f32 %v4650_v19, %v1341_v10  ;;  %v1381_v4 = vmul.f32 %v7316_v13, %v7315_v48  ;;  %v7317_v15 = vld [vmem:[#allocation118_spill] sm:$0xff]  ;;  %v7318_v30 = vld [vmem:[#allocation140_spill] sm:$0xff]  ;;  %v761_v48 = vpop.f32.mrf.mxu0 }
 0x1e5   : > { %2933 = vmatmul.bf16.vlgmr.msra.gmra.mxu2 %v2861_v38  ;;  %v2263_v62 = vmul.f32 %v3809_v18, %v5789_v5  ;;  %v5901_v0 = vmul.f32 %v4606_v47, %v5798_v7  ;;  %v5905_v45 = vmul.f32 %v4645_v16, %v5798_v7  ;;  %vm2253_vm15 = vweird.f32 %v3807_v37 }
 0x1e6   : > { %v2250_v59 = vmul.f32 %v3807_v37, %v2249_v57  ;;  %v1451_v31 = vmul.f32 %v4610_v52, %v1341_v10  ;;  %v1480_v58 = vadd.f32 %v7318_v30, %v7317_v15  ;;  %v7319_v40 = vrot.slane %v5848_v21, 7  ;;  %vm2254_vm2 = vmor %vm2252_vm12, %vm2253_vm15  ;;  %v7322_v15 = vld [vmem:[#allocation88_spill] sm:$0xff] }
 0x1e7   : > { %v2264_v50 = vsub.f32 1.0, %v2263_v62  ;;  %v5916_v13 = vmul.f32 %v4629_v6, %v5848_v21  ;;  %v2273_v28 = vand.u32 2147483648, %v5789_v5  ;;  %v1550_v10 = vadd.f32 %v1518_v26, %v1479_v2 }
 0x1e8   : > { %v1342_v22 = vsel %vm1224_vm0, 0.0, %v7319_v40  ;;  %v2251_v57 = vadd.f32 %v3807_v37, %v2250_v59  ;;  %v7321_v38 = vrot.slane %v5857_v54, 7  ;;  %vm2268_vm3 = vweird.f32 %v3809_v18  ;;  %v7324_v59 = vld [vmem:[#allocation93_spill] sm:$0xff] }
 0x1e9   : > { %7320 = vst [vmem:[#allocation59_spill] sm:$0xff] %v5916_v13  ;;  %v2265_v62 = vmul.f32 %v3809_v18, %v2264_v50  ;;  %v5925_v40 = vadd.f32 %v761_v48, %v4587_v34  ;;  %v7323_v13 = vld [vmem:[#allocation95_spill] sm:$0xff]  ;;  %v5931_v63 = vadd.f32 %v7325_v56, %v7324_v59  ;;  %v1483_v2 = vadd.f32 %v1451_v31, %v1380_v46  ;;  %vm2269_vm4 = vmor %vm2267_vm14, %vm2268_vm3  ;;  %v7327_v48 = vld [vmem:[#allocation68_spill] sm:$0xff] }
 0x1ea   : > { %v1343_v44 = vsel %vm1224_vm0, 0.0, %v7321_v38  ;;  %v2255_v30 = vsel %vm2254_vm2, %v3807_v37, %v2251_v57  ;;  %v1537_v6 = vadd.f32 %v7323_v13, %v7322_v15  ;;  %v7326_v26 = vperm.slane %v5783_v17, 0 }
 0x1eb   : > { %v5937_v35 = vsel %vm5870_vm13, %v2259_v53, %v2255_v30  ;;  %v2266_v50 = vadd.f32 %v3809_v18, %v2265_v62  ;;  %v1522_v34 = vmul.f32 %v4650_v19, %v1343_v44  ;;  %v2274_v37 = vor.u32 1.1754944e-38, %v2273_v28 }
 0x1ec   : > { %v1115_v38 = vadd.f32 %v1114_v12, %v7326_v26  ;;  %v2459_v13 = vmul.f32 1.0614054, %v5937_v35  ;;  %v5944_v56 = vadd.f32 %v7327_v48, %v1537_v6  ;;  %v1452_v46 = vmul.f32 %v7138_v27, %v1342_v22  ;;  %v7333_v48 = vld [vmem:[#allocation132_spill] sm:$0xff] }
 0x1ed   : > { %v5949_v12 = vmul.f32 %v4696_v29, %v5848_v21  ;;  %v2270_v53 = vsel %vm2269_vm4, %v3809_v18, %v2266_v50  ;;  %vm2272_vm5 = vcmp.eq.f32.partialorder %v2271_v3, 8.507059e+37  ;;  %v1620_v31 = vadd.f32 %v7328_v33, %v1550_v10  ;;  %v7329_v10 = vld [vmem:[#allocation94_spill] sm:$0xff] }
 0x1ee   : > { %v1275_v44 = vrot.slane %v5925_v40, 7  ;;  %v5953_v5 = vsel %vm2272_vm5, %v2274_v37, %v2270_v53  ;;  %v2475_v28 = vadd.f32 -1.4531521, %v2459_v13  ;;  %v1519_v57 = vmul.f32 %v4928_v23, %v1342_v22  ;;  %v7331_v37 = vld [vmem:[#allocation103_spill] sm:$0xff]  ;;  %v7332_v13 = vld [vmem:[#allocation74_spill] sm:$0xff] }
 0x1ef   : > { %v5958_v62 = vmul.f32 %v5832_v20, %v1115_v38  ;;  %v2460_v30 = vmul.f32 1.0614054, %v5953_v5  ;;  %v1554_v15 = vadd.f32 %v1522_v34, %v1483_v2  ;;  %v1732_v18 = vmul.f32 %v4645_v16, %v5857_v54 }
 0x1f0   : > { %v2491_v3 = vmul.f32 %v2475_v28, %v5937_v35  ;;  %v1935_v59 = vadd.f32 %v5795_v24, %v7329_v10  ;;  %v1823_v26 = vrot.slane %v5857_v54, 1  ;;  %v5967_v50 = vadd.f32 %v1452_v46, %v1381_v4 }
 0x1f1   : > { %v2476_v22 = vadd.f32 -1.4531521, %v2460_v30  ;;  %v1937_v38 = vadd.f32 %v7332_v13, %v7331_v37  ;;  %v1690_v53 = vadd.f32 %v7333_v48, %v1620_v31  ;;  %v7334_v2 = vrot.slane %v5798_v7, 7  ;;  %v810_v30 = vpop.f32.mrf.mxu1  ;;  %v7336_v37 = vld [vmem:[#allocation131_spill] sm:$0xff]  ;;  %v7337_v13 = vld [vmem:[#allocation121_spill] sm:$0xff] }
 0x1f2   : > { %7330 = vst [vmem:[#allocation102_spill] sm:$0xff] %v5967_v50  ;;  %v2507_v33 = vadd.f32 1.4214138, %v2491_v3  ;;  %v7335_v28 = vsub.f32 0.0, %v5745_v43  ;;  %v1551_v24 = vadd.f32 %v1519_v57, %v1480_v58  ;;  %v1382_v4 = vmul.f32 %v7312_v51, %v5651_v49 }
 0x1f3   : > { %v1276_v34 = vsel %vm1224_vm0, %v7334_v2, %v1275_v44  ;;  %v1281_v46 = vrot.slane %v5958_v62, 7  ;;  %v2492_v10 = vmul.f32 %v2476_v22, %v5953_v5  ;;  %v1624_v31 = vadd.f32 %v7336_v37, %v1554_v15 }
 0x1f4   : > { %v2620_v6 = vmul.f32 %v7335_v28, %v5745_v43  ;;  %v1481_v48 = vadd.f32 %v5702_v11, %v7337_v13  ;;  %v2523_v44 = vmul.f32 %v2507_v33, %v5937_v35  ;;  %v2005_v3 = vadd.f32 %v5845_v32, %v1935_v59 }
 0x1f5   : > { %v1453_v43 = vmul.f32 %v4610_v52, %v1276_v34  ;;  %v1520_v58 = vmul.f32 %v4650_v19, %v1276_v34  ;;  %v2508_v57 = vadd.f32 1.4214138, %v2492_v10  ;;  %v2007_v49 = vadd.f32 %v5854_v14, %v1937_v38  ;;  %v7340_v52 = vld [vmem:[#allocation92_spill] sm:$0xff] }
 0x1f6   : > { %v5991_v51 = vadd.f32 %v810_v30, %v4596_v42  ;;  %v2539_v22 = vadd.f32 -0.28449672, %v2523_v44  ;;  %v2639_v2 = vmul.f32 1.442695, %v2620_v6  ;;  %v2043_v15 = vmul.f32 %v7215_v41, %v5881_v9  ;;  %v7341_v42 = vld [vmem:[#allocation115_spill] sm:$0xff] }
 0x1f7   : > { %v7339_v11 = vrot.slane %v5857_v54, 7  ;;  %v2524_v32 = vmul.f32 %v2508_v57, %v5953_v5  ;;  %3810 = vpow2.f32 %v5874_v39  ;;  %v2045_v59 = vmul.f32 %v7215_v41, %v7340_v52  ;;  %v7346_v57 = vld [vmem:[#allocation136_spill] sm:$0xff]  ;;  %v7367_v54 = vld [vmem:[#allocation125_spill] sm:$0xff] }
 0x1f8   : > { %7338 = vst [vmem:[#allocation71_spill] sm:$0xff] %v5991_v51  ;;  %v1760_v14 = vadd.f32 %v5905_v45, %v1690_v53  ;;  %v1621_v38 = vadd.f32 %v7341_v42, %v1551_v24  ;;  %v2555_v6 = vmul.f32 %v2539_v22, %v5937_v35  ;;  %v2075_v34 = vadd.f32 %v2043_v15, %v2005_v3  ;;  %v7344_v3 = vld [vmem:[#allocation106_spill] sm:$0xff]  ;;  %v7347_v42 = vld [vmem:[#allocation117_spill] sm:$0xff] }
 0x1f9   : > { %v1282_v33 = vsel %vm1224_vm0, %v7339_v11, %v1281_v46  ;;  %v1694_v28 = vadd.f32 %v5901_v0, %v1624_v31  ;;  %v1664_v30 = vmul.f32 %v4606_v47, %v5925_v40  ;;  %v2540_v46 = vadd.f32 -0.28449672, %v2524_v32  ;;  %v7343_v31 = vld [vmem:[#allocation112_spill] sm:$0xff] }
 0x1fa   : > { %v2077_v10 = vadd.f32 %v2045_v59, %v2007_v49  ;;  %v1485_v37 = vadd.f32 %v1453_v43, %v1382_v4  ;;  %v1524_v39 = vmul.f32 %v4650_v19, %v1282_v33  ;;  %v2571_v13 = vadd.f32 0.2548296, %v2555_v6  ;;  %v7342_v4 = vld [vmem:[#allocation97_spill] sm:$0xff]  ;;  %v7345_v43 = vld [vmem:[#allocation83_spill] sm:$0xff] }
 0x1fb   : > { %3812 = vpow2.f32 %v2639_v2  ;;  %v1552_v44 = vadd.f32 %v1520_v58, %v1481_v48  ;;  %v1277_v45 = vrot.slane %v5991_v51, 7  ;;  %v2556_v53 = vmul.f32 %v2540_v46, %v5953_v5 }
 0x1fc   : > { %v6013_v24 = vadd.f32 %v5395_v60, %v2075_v34  ;;  %v2587_v0 = vmul.f32 %v2571_v13, %v5937_v35  ;;  %v6017_v47 = vadd.f32 %v5395_v60, %v2077_v10  ;;  %v1541_v19 = vadd.f32 %v7343_v31, %v7342_v4 }
 0x1fd   : > { %v6023_v48 = vadd.f32 %v7345_v43, %v7344_v3  ;;  %v3811_v58 = vpop.eup %3810  ;;  %v1691_v49 = vadd.f32 %v7346_v57, %v1621_v38  ;;  %v1730_v22 = vmul.f32 %v4645_v16, %v5925_v40  ;;  %v1818_v2 = vrot.slane %v5925_v40, 1 }
 0x1fe   : > { %v2572_v15 = vadd.f32 0.2548296, %v2556_v53  ;;  %v6030_v35 = vadd.f32 %v5826_v8, %v1760_v14  ;;  %v1556_v11 = vadd.f32 %v1524_v39, %v1485_v37  ;;  %v2667_v33 = vmul.f32 %v3811_v58, %v2587_v0  ;;  %v7349_v37 = vld [vmem:[#allocation53_spill] sm:$0xff]  ;;  %v7352_v53 = vld [vmem:[#allocation63_spill] sm:$0xff]  ;;  %v7355_v58 = vld [vmem:[#allocation56_spill] sm:$0xff] }
 0x1ff   : > { %v6033_v32 = vmul.f32 0.70710677, %v6013_v24  ;;  %v1764_v59 = vadd.f32 %v1732_v18, %v1694_v28  ;;  %v1622_v6 = vadd.f32 %v7347_v42, %v1552_v44  ;;  %v6038_v38 = vmul.f32 0.70710677, %v6017_v47 }
 0x200   : > { %v2588_v34 = vmul.f32 %v2572_v15, %v5953_v5  ;;  %v7348_v40 = vrot.slane %v5848_v21, 7  ;;  %v2683_v8 = vsub.f32 1.0, %v2667_v33  ;;  %v6047_v39 = vadd.f32 %v7349_v37, %v1541_v19 }
 0x201   : > { %v3813_v46 = vpop.eup %3812  ;;  %v6044_v14 = vand.u32 2147483647, %v6033_v32  ;;  %v6050_v18 = vadd.f32 %v5949_v12, %v1691_v49  ;;  %v7351_v5 = vrot.slane %v5798_v7, 1  ;;  %v1885_v13 = vsel %vm1768_vm1, %v1818_v2, 0.0  ;;  %v7354_v12 = vld [vmem:[#allocation124_spill] sm:$0xff] }
 0x202   : > { %v1278_v10 = vsel %vm1224_vm0, %v7348_v40, %v1277_v45  ;;  %v2668_v44 = vmul.f32 %v3813_v46, %v2588_v34  ;;  %v1626_v0 = vadd.f32 %v7352_v53, %v1556_v11  ;;  %v2715_v45 = vsub.f32 0.0, %v2683_v8  ;;  %v7358_v40 = vld [vmem:[#allocation58_spill] sm:$0xff] }
 0x203   : > { %7350 = vst [vmem:[#allocation64_spill] sm:$0xff] %v6050_v18  ;;  %v1819_v28 = vsel %vm1768_vm1, %v7351_v5, %v1818_v2  ;;  %v6058_v4 = vand.u32 2147483647, %v6038_v38  ;;  %v2189_v31 = vmul.f32 0.3275911, %v6044_v14  ;;  %v6062_v19 = vadd.f32 %v5891_v61, %v1764_v59  ;;  %v7403_v18 = vld [vmem:[#allocation75_spill] sm:$0xff] }
 0x204   : > { %v1482_v3 = vadd.f32 %v5755_v36, %v7354_v12  ;;  %v1521_v7 = vmul.f32 %v4928_v23, %v1278_v10  ;;  %v2684_v43 = vsub.f32 1.0, %v2668_v44  ;;  %v1692_v57 = vadd.f32 %v7355_v58, %v1622_v6  ;;  %v7363_v12 = vld [vmem:[#allocation41_spill] sm:$0xff]  ;;  %v7368_v58 = vld [vmem:[#allocation84_spill] sm:$0xff] }
 0x205   : > { %7353 = vst [vmem:[#allocation122_spill] sm:$0xff] %v6062_v19  ;;  %v6069_v49 = vmul.f32 %v7246_v1, %v1819_v28  ;;  %v2731_v2 = vsel %vm2699_vm6, %v2683_v8, %v2715_v45  ;;  %v2190_v15 = vmul.f32 0.3275911, %v6058_v4  ;;  %v6075_v11 = vmul.f32 %v7246_v1, %v1885_v13  ;;  %v7435_v19 = vld [vmem:[#allocation42_spill] sm:$0xff] }
 0x206   : > { %v1824_v61 = vrot.slane %v5958_v62, 1  ;;  %v2716_v33 = vsub.f32 0.0, %v2684_v43  ;;  %v2747_v36 = vadd.f32 1.0, %v2731_v2  ;;  %v1696_v59 = vadd.f32 %v1664_v30, %v1626_v0  ;;  %v7369_v2 = vld [vmem:[#allocation57_spill] sm:$0xff] }
 0x207   : > { %7356 = vst [vmem:[#allocation37_spill] sm:$0xff] %v6069_v49  ;;  %vm2700_vm7 = vcmp.ge.f32.partialorder %v5706_v55, 0.0  ;;  %v6079_v42 = vadd.f32 1.0, %v2189_v31  ;;  %v6081_v6 = vadd.f32 1.0, %v2190_v15  ;;  %v6084_v34 = vmul.f32 %v7215_v41, %v1819_v28  ;;  %v7360_v28 = vld [vmem:[#allocation85_spill] sm:$0xff]  ;;  %v7362_v31 = vld [vmem:[#allocation70_spill] sm:$0xff] }
 0x208   : > { %7357 = vst [vmem:[#allocation82_spill] sm:$0xff] %v6075_v11  ;;  %v1553_v25 = vadd.f32 %v1521_v7, %v1482_v3  ;;  %v2732_v46 = vsel %vm2700_vm7, %v2684_v43, %v2716_v33  ;;  %v2763_v8 = vmul.f32 %v2747_v36, %v7358_v40  ;;  %v1762_v37 = vadd.f32 %v1730_v22, %v1692_v57  ;;  %v7365_v7 = vld [vmem:[#allocation38_spill] sm:$0xff]  ;;  %v7371_v33 = vld [vmem:[#allocation73_spill] sm:$0xff]  ;;  %v7373_v40 = vld [vmem:[#allocation40_spill] sm:$0xff] }
 0x209   : > { %v1734_v5 = vmul.f32 %v4645_v16, %v5958_v62  ;;  %v2748_v44 = vadd.f32 1.0, %v2732_v46  ;;  %3814 = vrcp.f32 %v6079_v42  ;;  %v6091_v55 = vmul.f32 %v7215_v41, %v1885_v13  ;;  %v7361_v16 = vld [vmem:[#allocation55_spill] sm:$0xff] }
 0x20a   : > { %v1825_v30 = vsel %vm1768_vm1, %v1823_v26, %v1824_v61  ;;  %v2779_v53 = vmul.f32 %v2763_v8, %v7360_v28  ;;  %3816 = vrcp.f32 %v6081_v6  ;;  %v1887_v22 = vsel %vm1768_vm1, %v1824_v61, 0.0  ;;  %v7364_v13 = vld [vmem:[#allocation99_spill] sm:$0xff] }
 0x20b   : > { %7359 = vst [vmem:[#allocation134_spill] sm:$0xff] %v6091_v55  ;;  %v1766_v0 = vadd.f32 %v1734_v5, %v1696_v59  ;;  %v7009_v45 = vrot.slane %v5991_v51, 1  ;;  %v2764_v62 = vmul.f32 %v2748_v44, %v7361_v16  ;;  %v1925_v3 = vmul.f32 %v7363_v12, %v7362_v31  ;;  %v7380_v16 = vld [vmem:[#allocation51_spill] sm:$0xff] }
 0x20c   : > { %v6105_v43 = vmul.f32 %v7365_v7, %v7364_v13  ;;  %v1623_v26 = vadd.f32 %v7367_v54, %v1553_v25  ;;  %v1675_v57 = vadd.f32 %v7368_v58, %v5931_v63  ;;  %v6111_v15 = vadd.f32 %v7369_v2, %v1762_v37  ;;  %v7376_v63 = vld [vmem:[#allocation54_spill] sm:$0xff]  ;;  %v7382_v13 = vld [vmem:[#allocation91_spill] sm:$0xff]  ;;  %v7383_v54 = vld [vmem:[#allocation65_spill] sm:$0xff] }
 0x20d   : > { %v6114_v61 = vmul.f32 %v7215_v41, %v1825_v30  ;;  %v2780_v36 = vmul.f32 %v2764_v62, %v7371_v33  ;;  %v2795_v59 = vpack.c.bf16 %v2779_v53, %v2779_v53  ;;  %v6118_v46 = vmul.f32 %v7215_v41, %v1887_v22  ;;  %v7385_v58 = vld [vmem:[#allocation39_spill] sm:$0xff]  ;;  %v7387_v33 = vld [vmem:[#allocation78_spill] sm:$0xff] }
 0x20e   : > { %7366 = vst [vmem:[#allocation133_spill] sm:$0xff] %v6105_v43  ;;  %v6122_v8 = vmul.f32 %v7373_v40, %v5991_v51  ;;  %v6126_v25 = vmul.f32 %v4696_v29, %v5991_v51  ;;  %v1677_v37 = vadd.f32 %v7376_v63, %v5944_v56  ;;  %v6130_v44 = vadd.f32 %v1925_v3, %v1766_v0  ;;  %v7388_v40 = vld [vmem:[#allocation43_spill] sm:$0xff] }
 0x20f   : > { %7370 = vst [vmem:[#allocation118_spill] sm:$0xff] %v6114_v61  ;;  %v3815_v5 = vpop.eup %3814  ;;  %v6133_v30 = vmul.f32 %v7138_v27, %v1278_v10  ;;  %v6138_v28 = vsel %vm1768_vm1, %v7009_v45, 0.0  ;;  %v2796_v53 = vpack.c.bf16 %v2780_v36, %v2780_v36  ;;  %v6141_v62 = vadd.f32 %v7380_v16, %v1623_v26  ;;  %v7389_v16 = vld [vmem:[#allocation98_spill] sm:$0xff] }
 0x210   : > { %7372 = vst [vmem:[#allocation140_spill] sm:$0xff] %v6118_v46  ;;  %v3817_v22 = vpop.eup %3816  ;;  %v1745_v7 = vadd.f32 %v7382_v13, %v1675_v57  ;;  %v7384_v56 = vrot.slane %v7383_v54, 1  ;;  %v7386_v0 = vrot.slane %v7385_v58, 1  ;;  %v2278_v27 = vmul.f32 %v3815_v5, %v6079_v42  ;;  %v7390_v13 = vld [vmem:[#allocation79_spill] sm:$0xff] }
 0x211   : > { %7374 = vst [vmem:[#allocation88_spill] sm:$0xff] %v6122_v8  ;;  %v2847_v10 = vunpack.c.l.b16 %v2795_v59  ;;  %v2848_v2 = vunpack.c.l.b16 %v2796_v53  ;;  %v1904_v36 = vmul.f32 %v7388_v40, %v7387_v33  ;;  %v2293_v63 = vmul.f32 %v3817_v22, %v6081_v6 }
 0x212   : > { %7375 = vst [vmem:[#allocation95_spill] sm:$0xff] %v6126_v25  ;;  %v6149_v3 = vsel %vm1768_vm1, %v7386_v0, %v7384_v56  ;;  %v1747_v57 = vadd.f32 %v7389_v16, %v1677_v37  ;;  %v1906_v45 = vmul.f32 %v7388_v40, %v7390_v13  ;;  %v2279_v58 = vsub.f32 1.0, %v2278_v27  ;;  %v7392_v16 = vld [vmem:[#allocation86_spill] sm:$0xff] }
 0x213   : > { %7377 = vst [vmem:[#allocation93_spill] sm:$0xff] %v6130_v44  ;;  %v2862_v8 = vpack.c.b16 %v2848_v2, %v2847_v10  ;;  %v2286_v56 = vand.u32 2147483647, %v6079_v42  ;;  %v2288_v0 = vand.u32 2147483648, %v6079_v42  ;;  %v2294_v59 = vsub.f32 1.0, %v2293_v63  ;;  %v7394_v10 = vld [vmem:[#allocation81_spill] sm:$0xff] }
 0x214   : > { %7378 = vst [vmem:[#allocation60_spill] sm:$0xff] %v6133_v30  ;;  %v2280_v53 = vmul.f32 %v3815_v5, %v2279_v58  ;;  %vm2283_vm8 = vweird.f32 %v3815_v5  ;;  %v2303_v33 = vand.u32 2147483648, %v6081_v6  ;;  %vm2298_vm9 = vweird.f32 %v3817_v22  ;;  %v7396_v58 = vld [vmem:[#allocation110_spill] sm:$0xff]  ;;  %v7436_v44 = vld [vmem:[#allocation61_spill] sm:$0xff] }
 0x215   : > { %7379 = vst [vmem:[#allocation68_spill] sm:$0xff] %v6138_v28  ;;  %v7391_v28 = vld [vmem:[#allocation47_spill] sm:$0xff]  ;;  %2938 = vmatmul.bf16.gmra.mxu2 %v2862_v8  ;;  %v2295_v26 = vmul.f32 %v3817_v22, %v2294_v59  ;;  %v2301_v37 = vand.u32 2147483647, %v6081_v6  ;;  %v7393_v27 = vrot.slane %v7392_v16, 1  ;;  %v7395_v2 = vrot.slane %v7394_v10, 1 }
 0x216   : > { %7381 = vst [vmem:[#allocation113_spill] sm:$0xff] %v6141_v62  ;;  %v1907_v21 = vmul.f32 %v7363_v12, %v7391_v28  ;;  %v2281_v63 = vadd.f32 %v3815_v5, %v2280_v53  ;;  %vm2282_vm10 = vweird.f32 %v6079_v42  ;;  %v1977_v28 = vmul.f32 %v7246_v1, %v5881_v9 }
 0x217   : > { %v6170_v13 = vsel %vm1768_vm1, %v7395_v2, %v7393_v27  ;;  %vm2284_vm11 = vmor %vm2282_vm10, %vm2283_vm8  ;;  %vm2287_vm12 = vcmp.eq.f32.partialorder %v2286_v56, 8.507059e+37  ;;  %v2289_v8 = vor.u32 1.1754944e-38, %v2288_v0  ;;  %v2296_v59 = vadd.f32 %v3817_v22, %v2295_v26 }
 0x218   : > { %v1939_v51 = vadd.f32 %v1907_v21, %v7396_v58  ;;  %vm2297_vm13 = vweird.f32 %v6081_v6  ;;  %v2285_v16 = vsel %vm2284_vm11, %v3815_v5, %v2281_v63  ;;  %v2304_v10 = vor.u32 1.1754944e-38, %v2303_v33  ;;  %v1126_v5 = vpop.f32.mrf.mxu3  ;;  %v7397_v33 = vld [vmem:[#allocation62_spill] sm:$0xff]  ;;  %v7398_v63 = vld [vmem:[#allocation44_spill] sm:$0xff] }
 0x219   : > { %vm2299_vm14 = vmor %vm2297_vm13, %vm2298_vm9  ;;  %v2047_v53 = vmul.f32 %v7215_v41, %v6170_v13  ;;  %v6179_v27 = vsel %vm2287_vm12, %v2289_v8, %v2285_v16  ;;  %vm2302_vm15 = vcmp.eq.f32.partialorder %v2301_v37, 8.507059e+37  ;;  %v2605_v21 = vsub.f32 0.0, %v6044_v14 }
 0x21a   : > { %v2009_v29 = vadd.f32 %v1977_v28, %v1939_v51  ;;  %v2300_v42 = vsel %vm2299_vm14, %v3817_v22, %v2296_v59  ;;  %v2461_v56 = vmul.f32 1.0614054, %v6179_v27  ;;  %v2606_v26 = vsub.f32 0.0, %v6058_v4  ;;  %v7399_v28 = vld [vmem:[#allocation46_spill] sm:$0xff] }
 0x21b   : > { %v6182_v2 = vsel %vm2302_vm15, %v2304_v10, %v2300_v42  ;;  %v1911_v51 = vmul.f32 %v7363_v12, %v5881_v9  ;;  %v1936_v0 = vadd.f32 %v1904_v36, %v1745_v7  ;;  %v1974_v58 = vmul.f32 %v7398_v63, %v7397_v33  ;;  %v7402_v42 = vld [vmem:[#allocation123_spill] sm:$0xff] }
 0x21c   : > { %v2079_v6 = vadd.f32 %v2047_v53, %v2009_v29  ;;  %v2462_v22 = vmul.f32 1.0614054, %v6182_v2  ;;  %v1938_v37 = vadd.f32 %v1906_v45, %v1747_v57  ;;  %v1976_v8 = vmul.f32 %v7398_v63, %v7399_v28 }
 0x21d   : > { %v2477_v59 = vadd.f32 -1.4531521, %v2461_v56  ;;  %v7400_v29 = vperm.slane %v5783_v17, 1  ;;  %v7401_v53 = vrot.slane %v7383_v54, 1  ;;  %v2621_v36 = vmul.f32 %v2605_v21, %v6044_v14 }
 0x21e   : > { %v6194_v16 = vadd.f32 %v5395_v60, %v2079_v6  ;;  %v2478_v7 = vadd.f32 -1.4531521, %v2462_v22  ;;  %v1943_v45 = vadd.f32 %v1911_v51, %v7402_v42  ;;  %v2622_v56 = vmul.f32 %v2606_v26, %v6058_v4  ;;  %v7404_v6 = vld [vmem:[#allocation66_spill] sm:$0xff]  ;;  %v7407_v42 = vld [vmem:[#allocation107_spill] sm:$0xff] }
 0x21f   : > { %v1127_v10 = vadd.f32 %v1126_v5, %v7400_v29  ;;  %v6201_v9 = vsel %vm1768_vm1, %v7401_v53, 0.0  ;;  %v2493_v57 = vmul.f32 %v2477_v59, %v6179_v27  ;;  %v1941_v61 = vadd.f32 %v7404_v6, %v7403_v18  ;;  %v7405_v5 = vld [vmem:[#allocation77_spill] sm:$0xff] }
 0x220   : > { %v2006_v50 = vadd.f32 %v1974_v58, %v1936_v0  ;;  %v2044_v29 = vmul.f32 %v7405_v5, %v6149_v3  ;;  %v2494_v54 = vmul.f32 %v2478_v7, %v6182_v2  ;;  %v6213_v53 = vmul.f32 0.70710677, %v6194_v16 }
 0x221   : > { %v1912_v14 = vmul.f32 %v7388_v40, %v6149_v3  ;;  %v2008_v21 = vadd.f32 %v1976_v8, %v1938_v37  ;;  %v2509_v51 = vadd.f32 1.4214138, %v2493_v57  ;;  %v1979_v4 = vmul.f32 %v7246_v1, %v7340_v52  ;;  %v7408_v57 = vld [vmem:[#allocation141_spill] sm:$0xff] }
 0x222   : > { %v6220_v26 = vmul.f32 %v5832_v20, %v1127_v10  ;;  %v2046_v18 = vmul.f32 %v7405_v5, %v6201_v9  ;;  %v2510_v0 = vadd.f32 1.4214138, %v2494_v54  ;;  %v2641_v58 = vmul.f32 1.442695, %v2621_v36  ;;  %v7410_v54 = vld [vmem:[#allocation119_spill] sm:$0xff] }
 0x223   : > { %v2525_v22 = vmul.f32 %v2509_v51, %v6179_v27  ;;  %v2643_v59 = vmul.f32 1.442695, %v2622_v56  ;;  %v2011_v7 = vadd.f32 %v1979_v4, %v1941_v61  ;;  %v2049_v6 = vmul.f32 %v7215_v41, %v7407_v42  ;;  %v7413_v61 = vld [vmem:[#allocation127_spill] sm:$0xff] }
 0x224   : > { %7406 = vst [vmem:[#allocation94_spill] sm:$0xff] %v6220_v26  ;;  %v1914_v37 = vmul.f32 %v7388_v40, %v6201_v9  ;;  %v2076_v8 = vadd.f32 %v2044_v29, %v2006_v50  ;;  %v2526_v52 = vmul.f32 %v2510_v0, %v6182_v2  ;;  %v6231_v10 = vand.u32 2147483647, %v6213_v53  ;;  %v1128_v50 = vpop.f32.mrf.mxu3 }
 0x225   : > { %v7409_v46 = vrot.slane %v7408_v57, 1  ;;  %v7411_v36 = vrot.slane %v7410_v54, 1  ;;  %v6241_v56 = vadd.f32 %v1912_v14, %v7413_v61  ;;  %v2541_v4 = vadd.f32 -0.28449672, %v2525_v22  ;;  %v7415_v14 = vld [vmem:[#allocation48_spill] sm:$0xff] }
 0x226   : > { %v2081_v42 = vadd.f32 %v2049_v6, %v2011_v7  ;;  %v7015_v25 = vrot.slane %v6220_v26, 7  ;;  %v2542_v29 = vadd.f32 -0.28449672, %v2526_v52  ;;  %3818 = vpow2.f32 %v2641_v58  ;;  %v7418_v61 = vld [vmem:[#allocation96_spill] sm:$0xff]  ;;  %v7422_v26 = vld [vmem:[#allocation111_spill] sm:$0xff] }
 0x227   : > { %v6238_v51 = vsel %vm1768_vm1, %v7411_v36, %v7409_v46  ;;  %v2191_v0 = vmul.f32 0.3275911, %v6231_v10  ;;  %v2078_v62 = vadd.f32 %v2046_v18, %v2008_v21  ;;  %v2557_v57 = vmul.f32 %v2541_v4, %v6179_v27  ;;  %v7414_v46 = vld [vmem:[#allocation137_spill] sm:$0xff]  ;;  %v7417_v18 = vld [vmem:[#allocation90_spill] sm:$0xff] }
 0x228   : > { %7412 = vst [vmem:[#allocation103_spill] sm:$0xff] %v6238_v51  ;;  %3820 = vpow2.f32 %v2643_v59  ;;  %v6247_v54 = vadd.f32 %v5395_v60, %v2081_v42  ;;  %v6250_v36 = vadd.f32 %v1914_v37, %v7414_v46  ;;  %v6253_v22 = vadd.f32 %v7415_v14, %v2076_v8 }
 0x229   : > { %v2558_v7 = vmul.f32 %v2542_v29, %v6182_v2  ;;  %v6256_v6 = vadd.f32 1.0, %v2191_v0  ;;  %v7416_v58 = vperm.slane %v5783_v17, 1  ;;  %v2573_v21 = vadd.f32 0.2548296, %v2557_v57 }
 0x22a   : > { %v1679_v59 = vadd.f32 %v7417_v18, %v6023_v48  ;;  %v1681_v4 = vadd.f32 %v7418_v61, %v6047_v39  ;;  %v1981_v37 = vmul.f32 %v7246_v1, %v6170_v13  ;;  %v6267_v8 = vmul.f32 0.70710677, %v6247_v54 }
 0x22b   : > { %v1129_v52 = vadd.f32 %v1128_v50, %v7416_v58  ;;  %v2574_v42 = vadd.f32 0.2548296, %v2558_v7  ;;  %3822 = vrcp.f32 %v6256_v6  ;;  %v6273_v17 = vsel %vm1224_vm0, 0.0, %v7015_v25  ;;  %v7421_v25 = vld [vmem:[#allocation104_spill] sm:$0xff] }
 0x22c   : > { %7419 = vst [vmem:[#allocation74_spill] sm:$0xff] %v6273_v17  ;;  %v2116_v50 = vadd.f32 %v7415_v14, %v2078_v62  ;;  %v2141_v48 = vmul.f32 0.5, %v6013_v24  ;;  %v2589_v39 = vmul.f32 %v2573_v21, %v6179_v27  ;;  %v3819_v29 = vpop.eup %3818  ;;  %v2142_v0 = vmul.f32 0.5, %v6017_v47 }
 0x22d   : > { %v2590_v57 = vmul.f32 %v2574_v42, %v6182_v2  ;;  %v6281_v46 = vand.u32 2147483647, %v6267_v8  ;;  %v2013_v7 = vadd.f32 %v1981_v37, %v1943_v45  ;;  %v6284_v18 = vmul.f32 %v5832_v20, %v1129_v52  ;;  %v7423_v20 = vld [vmem:[#allocation101_spill] sm:$0xff] }
 0x22e   : > { %v3821_v58 = vpop.eup %3820  ;;  %v2669_v61 = vmul.f32 %v3819_v29, %v2589_v39  ;;  %v1749_v62 = vadd.f32 %v7421_v25, %v1679_v59  ;;  %v1751_v24 = vadd.f32 %v7422_v26, %v1681_v4  ;;  %v1908_v27 = vmul.f32 %v7388_v40, %v7397_v33  ;;  %v7425_v52 = vld [vmem:[#allocation89_spill] sm:$0xff] }
 0x22f   : > { %7420 = vst [vmem:[#allocation132_spill] sm:$0xff] %v6284_v18  ;;  %v2670_v30 = vmul.f32 %v3821_v58, %v2590_v57  ;;  %v1910_v47 = vmul.f32 %v7388_v40, %v7399_v28  ;;  %v2192_v2 = vmul.f32 0.3275911, %v6281_v46  ;;  %vm2701_vm2 = vcmp.ge.f32.partialorder %v6033_v32, 0.0  ;;  %v7428_v37 = vld [vmem:[#allocation105_spill] sm:$0xff] }
 0x230   : > { %v2685_v21 = vsub.f32 1.0, %v2669_v61  ;;  %vm2702_vm3 = vcmp.ge.f32.partialorder %v6038_v38, 0.0  ;;  %v7424_v45 = vrot.slane %v7423_v20, 1  ;;  %v7426_v25 = vrot.slane %v7425_v52, 1 }
 0x231   : > { %v3823_v59 = vpop.eup %3822  ;;  %v2686_v4 = vsub.f32 1.0, %v2670_v30  ;;  %v6307_v42 = vadd.f32 1.0, %v2192_v2  ;;  %v2083_v39 = vadd.f32 %v7428_v37, %v2013_v7  ;;  %v1978_v57 = vmul.f32 %v7398_v63, %v6149_v3  ;;  %v7430_v37 = vld [vmem:[#allocation45_spill] sm:$0xff] }
 0x232   : > { %v6300_v26 = vsel %vm1768_vm1, %v7426_v25, %v7424_v45  ;;  %v7427_v33 = vmov %v7424_v45  ;;  %v2717_v29 = vsub.f32 0.0, %v2685_v21  ;;  %v1980_v58 = vmul.f32 %v7398_v63, %v6201_v9  ;;  %v7429_v9 = vld [vmem:[#allocation139_spill] sm:$0xff] }
 0x233   : > { %v6305_v28 = vsel %vm1768_vm1, %v7427_v33, 0.0  ;;  %v2308_v61 = vmul.f32 %v3823_v59, %v6256_v6  ;;  %v2718_v45 = vsub.f32 0.0, %v2686_v4  ;;  %v1940_v30 = vadd.f32 %v1908_v27, %v1749_v62 }
 0x234   : > { %v1942_v52 = vadd.f32 %v1910_v47, %v1751_v24  ;;  %3824 = vrcp.f32 %v6307_v42  ;;  %v2733_v2 = vsel %vm2701_vm2, %v2685_v21, %v2717_v29  ;;  %v2318_v7 = vand.u32 2147483648, %v6256_v6 }
 0x235   : > { %v2309_v20 = vsub.f32 1.0, %v2308_v61  ;;  %v2607_v25 = vsub.f32 0.0, %v6231_v10  ;;  %v2734_v3 = vsel %vm2702_vm3, %v2686_v4, %v2718_v45  ;;  %v2749_v33 = vadd.f32 1.0, %v2733_v2 }
 0x236   : > { %v2085_v43 = vadd.f32 %v7430_v37, %v7429_v9  ;;  %v6325_v62 = vadd.f32 %v5395_v60, %v2083_v39  ;;  %v2750_v24 = vadd.f32 1.0, %v2734_v3  ;;  %vm2313_vm4 = vweird.f32 %v3823_v59 }
 0x237   : > { %v2310_v27 = vmul.f32 %v3823_v59, %v2309_v20  ;;  %v2316_v32 = vand.u32 2147483647, %v6256_v6  ;;  %v2765_v47 = vmul.f32 %v2749_v33, %v2141_v48  ;;  %v2010_v21 = vadd.f32 %v1978_v57, %v1940_v30 }
 0x238   : > { %v2048_v29 = vmul.f32 %v7405_v5, %v6300_v26  ;;  %v2050_v38 = vmul.f32 %v7405_v5, %v6305_v28  ;;  %v2766_v4 = vmul.f32 %v2750_v24, %v2142_v0  ;;  %vm2312_vm5 = vweird.f32 %v6256_v6 }
 0x239   : > { %v2311_v61 = vadd.f32 %v3823_v59, %v2310_v27  ;;  %v6334_v39 = vadd.f32 %v5395_v60, %v2085_v43  ;;  %v2781_v2 = vmul.f32 %v2765_v47, %v6253_v22  ;;  %vm2314_vm6 = vmor %vm2312_vm5, %vm2313_vm4  ;;  %v2319_v20 = vor.u32 1.1754944e-38, %v2318_v7 }
 0x23a   : > { %v3825_v45 = vpop.eup %3824  ;;  %v2623_v48 = vmul.f32 %v2607_v25, %v6231_v10  ;;  %v6339_v57 = vmul.f32 0.70710677, %v6325_v62  ;;  %v2782_v30 = vmul.f32 %v2766_v4, %v2116_v50  ;;  %vm2317_vm7 = vcmp.eq.f32.partialorder %v2316_v32, 8.507059e+37 }
 0x23b   : > { %v2315_v3 = vsel %vm2314_vm6, %v3823_v59, %v2311_v61  ;;  %v2323_v0 = vmul.f32 %v3825_v45, %v6307_v42  ;;  %v2797_v33 = vpack.c.bf16 %v2781_v2, %v2781_v2  ;;  %v2331_v43 = vand.u32 2147483647, %v6307_v42 }
 0x23c   : > { %v6342_v6 = vsel %vm2317_vm7, %v2319_v20, %v2315_v3  ;;  %v2608_v9 = vsub.f32 0.0, %v6281_v46  ;;  %v2798_v22 = vpack.c.bf16 %v2782_v30, %v2782_v30  ;;  %v6348_v10 = vmul.f32 0.70710677, %v6334_v39 }
 0x23d   : > { %v2324_v37 = vsub.f32 1.0, %v2323_v0  ;;  %v2463_v7 = vmul.f32 1.0614054, %v6342_v6  ;;  %v2849_v25 = vunpack.c.l.b16 %v2797_v33  ;;  %vm2328_vm8 = vweird.f32 %v3825_v45 }
 0x23e   : > { %v2333_v50 = vand.u32 2147483648, %v6307_v42  ;;  %v6352_v59 = vand.u32 2147483647, %v6339_v57  ;;  %v2850_v24 = vunpack.c.l.b16 %v2798_v22  ;;  %v6355_v47 = vand.u32 2147483647, %v6348_v10 }
 0x23f   : > { %v2325_v27 = vmul.f32 %v3825_v45, %v2324_v37  ;;  %v2479_v32 = vadd.f32 -1.4531521, %v2463_v7  ;;  %v2012_v4 = vadd.f32 %v1980_v58, %v1942_v52  ;;  %vm2327_vm9 = vweird.f32 %v6307_v42 }
 0x240   : > { %v2624_v61 = vmul.f32 %v2608_v9, %v6281_v46  ;;  %v2193_v2 = vmul.f32 0.3275911, %v6352_v59  ;;  %v2863_v20 = vpack.c.b16 %v2850_v24, %v2849_v25  ;;  %v2194_v0 = vmul.f32 0.3275911, %v6355_v47  ;;  %vm2329_vm10 = vmor %vm2327_vm9, %vm2328_vm8 }
 0x241   : > { %v2326_v30 = vadd.f32 %v3825_v45, %v2325_v27  ;;  %v2495_v3 = vmul.f32 %v2479_v32, %v6342_v6  ;;  %v2080_v33 = vadd.f32 %v2048_v29, %v2010_v21  ;;  %v2334_v22 = vor.u32 1.1754944e-38, %v2333_v50  ;;  %v7431_v50 = vld [vmem:[#allocation72_spill] sm:$0xff] }
 0x242   : > { %v2645_v37 = vmul.f32 1.442695, %v2623_v48  ;;  %v6363_v7 = vadd.f32 1.0, %v2193_v2  ;;  %2943 = vmatmul.bf16.gmra.mxu2 %v2863_v20  ;;  %vm2332_vm11 = vcmp.eq.f32.partialorder %v2331_v43, 8.507059e+37  ;;  %v6365_v46 = vadd.f32 1.0, %v2194_v0 }
 0x243   : > { %v2330_v58 = vsel %vm2329_vm10, %v3825_v45, %v2326_v30  ;;  %v2511_v42 = vadd.f32 1.4214138, %v2495_v3  ;;  %v2082_v52 = vadd.f32 %v2050_v38, %v2012_v4  ;;  %v2647_v25 = vmul.f32 1.442695, %v2624_v61 }
 0x244   : > { %v6367_v9 = vsel %vm2332_vm11, %v2334_v22, %v2330_v58  ;;  %3826 = vrcp.f32 %v6363_v7  ;;  %v1982_v21 = vmul.f32 %v7398_v63, %v6300_v26  ;;  %v1984_v45 = vmul.f32 %v7398_v63, %v6305_v28 }
 0x245   : > { %v2464_v29 = vmul.f32 1.0614054, %v6367_v9  ;;  %v2527_v48 = vmul.f32 %v2511_v42, %v6342_v6  ;;  %3828 = vrcp.f32 %v6365_v46  ;;  %v6378_v43 = vmul.f32 0.5, %v6194_v16  ;;  %v7432_v16 = vld [vmem:[#allocation120_spill] sm:$0xff] }
 0x246   : > { %v1915_v38 = vmul.f32 %v7363_v12, %v6170_v13  ;;  %v1985_v24 = vmul.f32 %v7246_v1, %v7431_v50  ;;  %v6385_v27 = vadd.f32 %v7415_v14, %v2080_v33  ;;  %3830 = vpow2.f32 %v2645_v37  ;;  %v7434_v37 = vld [vmem:[#allocation130_spill] sm:$0xff] }
 0x247   : > { %v2480_v32 = vadd.f32 -1.4531521, %v2464_v29  ;;  %v2543_v4 = vadd.f32 -0.28449672, %v2527_v48  ;;  %v6388_v61 = vadd.f32 %v7415_v14, %v2082_v52  ;;  %v6391_v2 = vmul.f32 0.5, %v6247_v54  ;;  %v7433_v54 = vld [vmem:[#allocation129_spill] sm:$0xff] }
 0x248   : > { %3832 = vpow2.f32 %v2647_v25  ;;  %v1987_v20 = vmul.f32 %v7246_v1, %v7432_v16  ;;  %v6398_v30 = vadd.f32 %v1982_v21, %v6241_v56  ;;  %v6401_v3 = vmul.f32 0.5, %v6325_v62 }
 0x249   : > { %v2496_v12 = vmul.f32 %v2480_v32, %v6367_v9  ;;  %v2559_v13 = vmul.f32 %v2543_v4, %v6342_v6  ;;  %v6404_v33 = vadd.f32 %v1984_v45, %v6250_v36  ;;  %v6408_v22 = vmul.f32 %v7405_v5, %v7433_v54 }
 0x24a   : > { %v3827_v0 = vpop.eup %3826  ;;  %v6412_v58 = vmul.f32 %v7405_v5, %v7434_v37  ;;  %v2609_v42 = vsub.f32 0.0, %v6352_v59  ;;  %v2610_v21 = vsub.f32 0.0, %v6355_v47  ;;  %vm2703_vm12 = vcmp.ge.f32.partialorder %v6213_v53, 0.0  ;;  %v7437_v5 = vld [vmem:[#allocation109_spill] sm:$0xff] }
 0x24b   : > { %v3829_v52 = vpop.eup %3828  ;;  %v2512_v56 = vadd.f32 1.4214138, %v2496_v12  ;;  %v2575_v25 = vadd.f32 0.2548296, %v2559_v13  ;;  %v2338_v62 = vmul.f32 %v3827_v0, %v6363_v7  ;;  %vm2342_vm13 = vweird.f32 %v6363_v7 }
 0x24c   : > { %v2346_v36 = vand.u32 2147483647, %v6363_v7  ;;  %v2348_v29 = vand.u32 2147483648, %v6363_v7  ;;  %v2353_v48 = vmul.f32 %v3829_v52, %v6365_v46  ;;  %v3831_v45 = vpop.eup %3830  ;;  %v2361_v16 = vand.u32 2147483647, %v6365_v46 }
 0x24d   : > { %v2528_v50 = vmul.f32 %v2512_v56, %v6367_v9  ;;  %v2591_v32 = vmul.f32 %v2575_v25, %v6342_v6  ;;  %v2339_v4 = vsub.f32 1.0, %v2338_v62  ;;  %vm2343_vm14 = vweird.f32 %v3827_v0 }
 0x24e   : > { %v3833_v12 = vpop.eup %3832  ;;  %v2354_v13 = vsub.f32 1.0, %v2353_v48  ;;  %v2363_v49 = vand.u32 2147483648, %v6365_v46  ;;  %v1947_v18 = vadd.f32 %v1915_v38, %v7435_v19  ;;  %v1949_v51 = vadd.f32 %v7437_v5, %v7436_v44  ;;  %vm2344_vm4 = vmor %vm2342_vm13, %vm2343_vm14 }
 0x24f   : > { %v2544_v23 = vadd.f32 -0.28449672, %v2528_v50  ;;  %v2671_v17 = vmul.f32 %v3831_v45, %v2591_v32  ;;  %v2340_v11 = vmul.f32 %v3827_v0, %v2339_v4  ;;  %vm6429_vm15 = vcmp.eq.f32.partialorder %v2346_v36, 8.507059e+37  ;;  %v7441_v4 = vld [vmem:[#allocation128_spill] sm:$0xff] }
 0x250   : > { %v2355_v6 = vmul.f32 %v3829_v52, %v2354_v13  ;;  %vm2357_vm2 = vweird.f32 %v6365_v46  ;;  %vm2358_vm3 = vweird.f32 %v3829_v52  ;;  %v2349_v55 = vor.u32 1.1754944e-38, %v2348_v29 }
 0x251   : > { %v2560_v25 = vmul.f32 %v2544_v23, %v6367_v9  ;;  %v2687_v62 = vsub.f32 1.0, %v2671_v17  ;;  %v2341_v48 = vadd.f32 %v3827_v0, %v2340_v11  ;;  %vm2362_vm5 = vcmp.eq.f32.partialorder %v2361_v16, 8.507059e+37  ;;  %vm2359_vm6 = vmor %vm2357_vm2, %vm2358_vm3  ;;  %v7440_v17 = vld [vmem:[#allocation80_spill] sm:$0xff]  ;;  %v7442_v16 = vld [vmem:[#allocation114_spill] sm:$0xff] }
 0x252   : > { %v2356_v19 = vadd.f32 %v3829_v52, %v2355_v6  ;;  %v2364_v44 = vor.u32 1.1754944e-38, %v2363_v49  ;;  %v2017_v5 = vadd.f32 %v1985_v24, %v1947_v18  ;;  %v2019_v50 = vadd.f32 %v1987_v20, %v1949_v51 }
 0x253   : > { %v2576_v38 = vadd.f32 0.2548296, %v2560_v25  ;;  %v2719_v36 = vsub.f32 0.0, %v2687_v62  ;;  %v2345_v45 = vsel %vm2344_vm4, %v3827_v0, %v2341_v48  ;;  %vm2704_vm7 = vcmp.ge.f32.partialorder %v6267_v8, 0.0  ;;  %v7443_v48 = vld [vmem:[#allocation50_spill] sm:$0xff] }
 0x254   : > { %v6441_v23 = vsel %vm6429_vm15, %v2349_v55, %v2345_v45  ;;  %v2360_v11 = vsel %vm2359_vm6, %v3829_v52, %v2356_v19  ;;  %v2055_v7 = vmul.f32 %v7215_v41, %v7440_v17  ;;  %v2057_v46 = vmul.f32 %v7215_v41, %v7362_v31 }
 0x255   : > { %v2592_v49 = vmul.f32 %v2576_v38, %v6367_v9  ;;  %v2735_v18 = vsel %vm2703_vm12, %v2687_v62, %v2719_v36  ;;  %v6450_v24 = vsel %vm2362_vm5, %v2364_v44, %v2360_v11  ;;  %v2465_v51 = vmul.f32 1.0614054, %v6441_v23  ;;  %v7445_v38 = vld [vmem:[#allocation108_spill] sm:$0xff] }
 0x256   : > { %v2751_v20 = vadd.f32 1.0, %v2735_v18  ;;  %v2466_v55 = vmul.f32 1.0614054, %v6450_v24  ;;  %v2625_v0 = vmul.f32 %v2609_v42, %v6352_v59  ;;  %v2087_v52 = vadd.f32 %v2055_v7, %v2017_v5  ;;  %v7444_v59 = vld [vmem:[#allocation100_spill] sm:$0xff] }
 0x257   : > { %v2672_v29 = vmul.f32 %v3833_v12, %v2592_v49  ;;  %v2481_v32 = vadd.f32 -1.4531521, %v2465_v51  ;;  %v1549_v41 = vadd.f32 %v7442_v16, %v7441_v4  ;;  %v2089_v13 = vadd.f32 %v2057_v46, %v2019_v50  ;;  %v7446_v18 = vld [vmem:[#allocation116_spill] sm:$0xff] }
 0x258   : > { %v2767_v9 = vmul.f32 %v2751_v20, %v6378_v43  ;;  %v2482_v53 = vadd.f32 -1.4531521, %v2466_v55  ;;  %v2626_v56 = vmul.f32 %v2610_v21, %v6355_v47  ;;  %v6460_v6 = vadd.f32 %v5395_v60, %v2087_v52 }
 0x259   : > { %v2688_v25 = vsub.f32 1.0, %v2672_v29  ;;  %v2497_v62 = vmul.f32 %v2481_v32, %v6441_v23  ;;  %v1617_v42 = vadd.f32 %v7444_v59, %v7443_v48  ;;  %v6466_v12 = vadd.f32 %v5395_v60, %v2089_v13  ;;  %v7447_v29 = vld [vmem:[#allocation126_spill] sm:$0xff]  ;;  %v7449_v48 = vld [vmem:[#allocation69_spill] sm:$0xff] }
 0x25a   : > { %v2783_v19 = vmul.f32 %v2767_v9, %v6385_v27  ;;  %v2498_v44 = vmul.f32 %v2482_v53, %v6450_v24  ;;  %v2649_v43 = vmul.f32 1.442695, %v2625_v0  ;;  %v6471_v5 = vmul.f32 0.70710677, %v6460_v6 }
 0x25b   : > { %v2720_v47 = vsub.f32 0.0, %v2688_v25  ;;  %v2513_v21 = vadd.f32 1.4214138, %v2497_v62  ;;  %v1619_v36 = vadd.f32 %v7445_v38, %v1549_v41  ;;  %v6475_v45 = vmul.f32 0.70710677, %v6466_v12 }
 0x25c   : > { %v2084_v50 = vadd.f32 %v6408_v22, %v6398_v30  ;;  %v2514_v11 = vadd.f32 1.4214138, %v2498_v44  ;;  %v2651_v7 = vmul.f32 1.442695, %v2626_v56  ;;  %v6480_v27 = vand.u32 2147483647, %v6471_v5 }
 0x25d   : > { %v2736_v46 = vsel %vm2704_vm7, %v2688_v25, %v2720_v47  ;;  %v2529_v49 = vmul.f32 %v2513_v21, %v6441_v23  ;;  %v1687_v51 = vadd.f32 %v7446_v18, %v1617_v42  ;;  %v6487_v20 = vand.u32 2147483647, %v6475_v45 }
 0x25e   : > { %v2752_v55 = vadd.f32 1.0, %v2736_v46  ;;  %v2086_v0 = vadd.f32 %v6412_v58, %v6404_v33  ;;  %v2530_v30 = vmul.f32 %v2514_v11, %v6450_v24  ;;  %v2195_v22 = vmul.f32 0.3275911, %v6480_v27  ;;  %v7448_v58 = vld [vmem:[#allocation138_spill] sm:$0xff] }
 0x25f   : > { %v2545_v52 = vadd.f32 -0.28449672, %v2529_v49  ;;  %3834 = vpow2.f32 %v2649_v43  ;;  %v1689_v8 = vadd.f32 %v7447_v29, %v1619_v36  ;;  %v2196_v32 = vmul.f32 0.3275911, %v6487_v20 }
 0x260   : > { %v2768_v4 = vmul.f32 %v2752_v55, %v6391_v2  ;;  %v2546_v16 = vadd.f32 -0.28449672, %v2530_v30  ;;  %v1916_v41 = vmul.f32 %v7388_v40, %v6300_v26  ;;  %v6498_v13 = vadd.f32 1.0, %v2195_v22 }
 0x261   : > { %v2561_v33 = vmul.f32 %v2545_v52, %v6441_v23  ;;  %3836 = vpow2.f32 %v2651_v7  ;;  %v1757_v9 = vadd.f32 %v7448_v58, %v1687_v51  ;;  %v6502_v53 = vadd.f32 1.0, %v2196_v32 }
 0x262   : > { %v2784_v56 = vmul.f32 %v2768_v4, %v6388_v61  ;;  %v2799_v25 = vpack.c.bf16 %v2783_v19, %v2783_v19  ;;  %v2562_v62 = vmul.f32 %v2546_v16, %v6450_v24  ;;  %3838 = vrcp.f32 %v6498_v13 }
 0x263   : > { %v2577_v2 = vadd.f32 0.2548296, %v2561_v33  ;;  %v1759_v59 = vadd.f32 %v7449_v48, %v1689_v8  ;;  %v1918_v26 = vmul.f32 %v7388_v40, %v6305_v28  ;;  %3840 = vrcp.f32 %v6502_v53 }
 0x264   : > { %v2800_v42 = vpack.c.bf16 %v2784_v56, %v2784_v56  ;;  %v2122_v44 = vadd.f32 %v7415_v14, %v2084_v50  ;;  %v2146_v43 = vmul.f32 0.5, %v6334_v39  ;;  %v2578_v47 = vadd.f32 0.2548296, %v2562_v62 }
 0x265   : > { %v3835_v61 = vpop.eup %3834  ;;  %v2124_v19 = vadd.f32 %v7415_v14, %v2086_v0  ;;  %v2593_v21 = vmul.f32 %v2577_v2, %v6441_v23  ;;  %vm2705_vm8 = vcmp.ge.f32.partialorder %v6339_v57, 0.0  ;;  %vm2706_vm9 = vcmp.ge.f32.partialorder %v6348_v10, 0.0 }
 0x266   : > { %v2851_v38 = vunpack.c.l.b16 %v2799_v25  ;;  %v2852_v36 = vunpack.c.l.b16 %v2800_v42  ;;  %v2594_v28 = vmul.f32 %v2578_v47, %v6450_v24  ;;  %v1948_v11 = vadd.f32 %v1916_v41, %v1757_v9 }
 0x267   : > { %v3837_v7 = vpop.eup %3836  ;;  %v2673_v46 = vmul.f32 %v3835_v61, %v2593_v21  ;;  %v6518_v50 = vadd.f32 %v1918_v26, %v1759_v59  ;;  %v1986_v39 = vmul.f32 %v7398_v63, %v7433_v54  ;;  %v1988_v49 = vmul.f32 %v7398_v63, %v7434_v37 }
 0x268   : > { %v3839_v23 = vpop.eup %3838  ;;  %v2864_v18 = vpack.c.b16 %v2852_v36, %v2851_v38  ;;  %v2674_v51 = vmul.f32 %v3837_v7, %v2594_v28  ;;  %v2611_v55 = vsub.f32 0.0, %v6480_v27  ;;  %v2612_v0 = vsub.f32 0.0, %v6487_v20  ;;  %v7450_v36 = vld [vmem:[#allocation134_spill] sm:$0xff] }
 0x269   : > { %v3841_v30 = vpop.eup %3840  ;;  %v2689_v24 = vsub.f32 1.0, %v2673_v46  ;;  %v2368_v22 = vmul.f32 %v3839_v23, %v6498_v13  ;;  %vm2372_vm10 = vweird.f32 %v6498_v13  ;;  %v2376_v52 = vand.u32 2147483647, %v6498_v13 }
 0x26a   : > { %2948 = vmatmul.bf16.gmra.mxu2 %v2864_v18  ;;  %v2690_v29 = vsub.f32 1.0, %v2674_v51  ;;  %v2378_v8 = vand.u32 2147483648, %v6498_v13  ;;  %v2383_v32 = vmul.f32 %v3841_v30, %v6502_v53  ;;  %vm2387_vm11 = vweird.f32 %v6502_v53 }
 0x26b   : > { %v2721_v4 = vsub.f32 0.0, %v2689_v24  ;;  %v2369_v16 = vsub.f32 1.0, %v2368_v22  ;;  %v2391_v41 = vand.u32 2147483647, %v6502_v53  ;;  %v1989_v33 = vmul.f32 %v7246_v1, %v7440_v17 }
 0x26c   : > { %v2722_v58 = vsub.f32 0.0, %v2690_v29  ;;  %vm2373_vm12 = vweird.f32 %v3839_v23  ;;  %v2384_v9 = vsub.f32 1.0, %v2383_v32  ;;  %v2393_v56 = vand.u32 2147483648, %v6502_v53 }
 0x26d   : > { %v2737_v25 = vsel %vm2705_vm8, %v2689_v24, %v2721_v4  ;;  %v2370_v62 = vmul.f32 %v3839_v23, %v2369_v16  ;;  %v1991_v2 = vmul.f32 %v7246_v1, %v7362_v31  ;;  %v2021_v48 = vadd.f32 %v1989_v33, %v6030_v35  ;;  %vm2374_vm15 = vmor %vm2372_vm10, %vm2373_vm12 }
 0x26e   : > { %v2738_v59 = vsel %vm2706_vm9, %v2690_v29, %v2722_v58  ;;  %v2753_v26 = vadd.f32 1.0, %v2737_v25  ;;  %v2385_v42 = vmul.f32 %v3841_v30, %v2384_v9  ;;  %vm2388_vm13 = vweird.f32 %v3841_v30  ;;  %v7455_v25 = vld [vmem:[#allocation82_spill] sm:$0xff] }
 0x26f   : > { %v2754_v17 = vadd.f32 1.0, %v2738_v59  ;;  %v2371_v47 = vadd.f32 %v3839_v23, %v2370_v62  ;;  %vm2377_vm14 = vcmp.eq.f32.partialorder %v2376_v52, 8.507059e+37  ;;  %v2023_v61 = vadd.f32 %v1991_v2, %v6111_v15  ;;  %vm2389_vm2 = vmor %vm2387_vm11, %vm2388_vm13  ;;  %v7456_v2 = vld [vmem:[#allocation74_spill] sm:$0xff] }
 0x270   : > { %v2769_v57 = vmul.f32 %v2753_v26, %v6401_v3  ;;  %v2379_v1 = vor.u32 1.1754944e-38, %v2378_v8  ;;  %v2386_v31 = vadd.f32 %v3841_v30, %v2385_v42  ;;  %v2394_v35 = vor.u32 1.1754944e-38, %v2393_v56  ;;  %v7454_v56 = vld [vmem:[#allocation93_spill] sm:$0xff] }
 0x271   : > { %v2770_v21 = vmul.f32 %v2754_v17, %v2146_v43  ;;  %v2375_v10 = vsel %vm2374_vm15, %v3839_v23, %v2371_v47  ;;  %v2091_v38 = vadd.f32 %v6084_v34, %v2021_v48  ;;  %v2093_v28 = vadd.f32 %v7450_v36, %v2023_v61  ;;  %v7457_v48 = vld [vmem:[#allocation76_spill] sm:$0xff] }
 0x272   : > { %v2785_v7 = vmul.f32 %v2769_v57, %v2122_v44  ;;  %v6552_v15 = vsel %vm2377_vm14, %v2379_v1, %v2375_v10  ;;  %v2390_v3 = vsel %vm2389_vm2, %v3841_v30, %v2386_v31  ;;  %vm2392_vm3 = vcmp.eq.f32.partialorder %v2391_v41, 8.507059e+37  ;;  %v7458_v17 = vld [vmem:[#allocation132_spill] sm:$0xff]  ;;  %v7460_v10 = vld [vmem:[#allocation37_spill] sm:$0xff] }
 0x273   : > { %v2786_v46 = vmul.f32 %v2770_v21, %v2124_v19  ;;  %v2018_v13 = vadd.f32 %v1986_v39, %v1948_v11  ;;  %v6554_v18 = vsel %vm2392_vm3, %v2394_v35, %v2390_v3  ;;  %v2467_v51 = vmul.f32 1.0614054, %v6552_v15  ;;  %v7451_v11 = vld [vmem:[#allocation103_spill] sm:$0xff]  ;;  %v7452_v39 = vld [vmem:[#allocation77_spill] sm:$0xff]  ;;  %v7459_v21 = vld [vmem:[#allocation122_spill] sm:$0xff] }
 0x274   : > { %v2801_v43 = vpack.c.bf16 %v2785_v7, %v2785_v7  ;;  %v2468_v23 = vmul.f32 1.0614054, %v6554_v18  ;;  %v2627_v53 = vmul.f32 %v2611_v55, %v6480_v27  ;;  %v6560_v34 = vadd.f32 %v5395_v60, %v2091_v38  ;;  %v7461_v3 = vld [vmem:[#allocation133_spill] sm:$0xff] }
 0x275   : > { %v2802_v24 = vpack.c.bf16 %v2786_v46, %v2786_v46  ;;  %v2483_v44 = vadd.f32 -1.4531521, %v2467_v51  ;;  %v2628_v22 = vmul.f32 %v2612_v0, %v6487_v20  ;;  %v6564_v30 = vadd.f32 %v5395_v60, %v2093_v28  ;;  %v7453_v20 = vld [vmem:[#allocation52_spill] sm:$0xff]  ;;  %v7463_v51 = vld [vmem:[#allocation113_spill] sm:$0xff] }
 0x276   : > { %v2020_v19 = vadd.f32 %v1988_v49, %v6518_v50  ;;  %v2056_v52 = vmul.f32 %v7452_v39, %v7451_v11  ;;  %v2484_v29 = vadd.f32 -1.4531521, %v2468_v23  ;;  %v6570_v8 = vmul.f32 0.70710677, %v6560_v34  ;;  %v7462_v46 = vld [vmem:[#allocation60_spill] sm:$0xff] }
 0x277   : > { %v2853_v27 = vunpack.c.l.b16 %v2801_v43  ;;  %v2854_v55 = vunpack.c.l.b16 %v2802_v24  ;;  %v2499_v32 = vmul.f32 %v2483_v44, %v6552_v15  ;;  %v6574_v4 = vmul.f32 0.70710677, %v6564_v30  ;;  %v7464_v43 = vld [vmem:[#allocation95_spill] sm:$0xff]  ;;  %v7465_v24 = vld [vmem:[#allocation140_spill] sm:$0xff] }
 0x278   : > { %v2058_v0 = vmul.f32 %v7452_v39, %v7453_v20  ;;  %v2500_v16 = vmul.f32 %v2484_v29, %v6554_v18  ;;  %v2653_v50 = vmul.f32 1.442695, %v2627_v53  ;;  %v6580_v49 = vand.u32 2147483647, %v6570_v8 }
 0x279   : > { %v2865_v41 = vpack.c.b16 %v2854_v55, %v2853_v27  ;;  %v2515_v33 = vadd.f32 1.4214138, %v2499_v32  ;;  %v2655_v58 = vmul.f32 1.442695, %v2628_v22  ;;  %v6583_v9 = vand.u32 2147483647, %v6574_v4 }
 0x27a   : > { %v2027_v62 = vadd.f32 %v7455_v25, %v7454_v56  ;;  %v1523_v59 = vmul.f32 %v7457_v48, %v7456_v2  ;;  %v2516_v26 = vadd.f32 1.4214138, %v2500_v16  ;;  %v2197_v42 = vmul.f32 0.3275911, %v6580_v49  ;;  %v7467_v27 = vld [vmem:[#allocation94_spill] sm:$0xff] }
 0x27b   : > { %v1283_v47 = vrot.slane %v7458_v17, 7  ;;  %2953 = vmatmul.bf16.vlgmr.msra.gmra.mxu3 %v2865_v41  ;;  %v2088_v61 = vadd.f32 %v2056_v52, %v2018_v13  ;;  %v2531_v57 = vmul.f32 %v2515_v33, %v6552_v15  ;;  %v2198_v1 = vmul.f32 0.3275911, %v6583_v9  ;;  %v7466_v52 = vld [vmem:[#allocation102_spill] sm:$0xff] }
 0x27c   : > { %v2532_v31 = vmul.f32 %v2516_v26, %v6554_v18  ;;  %3842 = vpow2.f32 %v2653_v50  ;;  %v6594_v35 = vadd.f32 1.0, %v2197_v42  ;;  %v2025_v38 = vadd.f32 %v7460_v10, %v7459_v21  ;;  %v7469_v16 = vld [vmem:[#allocation118_spill] sm:$0xff] }
 0x27d   : > { %v2090_v36 = vadd.f32 %v2058_v0, %v2020_v19  ;;  %v2547_v28 = vadd.f32 -0.28449672, %v2531_v57  ;;  %3844 = vpow2.f32 %v2655_v58  ;;  %v6598_v7 = vadd.f32 1.0, %v2198_v1 }
 0x27e   : > { %v6602_v13 = vadd.f32 %v7462_v46, %v7461_v3  ;;  %v6606_v23 = vadd.f32 %v7464_v43, %v7463_v51  ;;  %v2548_v53 = vadd.f32 -0.28449672, %v2532_v31  ;;  %3846 = vrcp.f32 %v6594_v35 }
 0x27f   : > { %v2097_v44 = vadd.f32 %v7465_v24, %v2027_v62  ;;  %v6612_v22 = vmul.f32 %v7388_v40, %v7451_v11  ;;  %v2563_v19 = vmul.f32 %v2547_v28, %v6552_v15  ;;  %3848 = vrcp.f32 %v6598_v7 }
 0x280   : > { %v6617_v29 = vadd.f32 %v1523_v59, %v7466_v52  ;;  %v7468_v55 = vrot.slane %v7467_v27, 7  ;;  %v2564_v0 = vmul.f32 %v2548_v53, %v6554_v18  ;;  %v2095_v50 = vadd.f32 %v7469_v16, %v2025_v38 }
 0x281   : > { %v6627_v41 = vadd.f32 %v7415_v14, %v2088_v61  ;;  %v6630_v33 = vadd.f32 %v7415_v14, %v2090_v36  ;;  %v2147_v58 = vmul.f32 0.5, %v6460_v6  ;;  %v2579_v56 = vadd.f32 0.2548296, %v2563_v19 }
 0x282   : > { %v6622_v32 = vsel %vm1224_vm0, %v7468_v55, %v1283_v47  ;;  %v3843_v25 = vpop.eup %3842  ;;  %v2148_v62 = vmul.f32 0.5, %v6466_v12  ;;  %v2580_v2 = vadd.f32 0.2548296, %v2564_v0  ;;  %vm2707_vm0 = vcmp.ge.f32.partialorder %v6471_v5, 0.0 }
 0x283   : > { %v2406_v59 = vand.u32 2147483647, %v6594_v35  ;;  %v3845_v26 = vpop.eup %3844  ;;  %v2595_v42 = vmul.f32 %v2579_v56, %v6552_v15  ;;  %vm2708_vm4 = vcmp.ge.f32.partialorder %v6475_v45, 0.0  ;;  %v6640_v47 = vmul.f32 %v7388_v40, %v7433_v54 }
 0x284   : > { %v2613_v6 = vsub.f32 0.0, %v6580_v49  ;;  %v3847_v61 = vpop.eup %3846  ;;  %v2596_v57 = vmul.f32 %v2580_v2, %v6554_v18  ;;  %v2408_v12 = vand.u32 2147483648, %v6594_v35  ;;  %v2614_v1 = vsub.f32 0.0, %v6583_v9 }
 0x285   : > { %v6647_v31 = vadd.f32 %v5395_v60, %v2095_v50  ;;  %v3849_v21 = vpop.eup %3848  ;;  %v2675_v15 = vmul.f32 %v3843_v25, %v2595_v42  ;;  %v2398_v10 = vmul.f32 %v3847_v61, %v6594_v35  ;;  %vm2402_vm5 = vweird.f32 %v6594_v35  ;;  %v7476_v25 = vld [vmem:[#allocation59_spill] sm:$0xff] }
 0x286   : > { %v6652_v54 = vadd.f32 %v5395_v60, %v2097_v44  ;;  %v2676_v38 = vmul.f32 %v3845_v26, %v2596_v57  ;;  %vm6654_vm6 = vcmp.eq.f32.partialorder %v2406_v59, 8.507059e+37  ;;  %v2413_v18 = vmul.f32 %v3849_v21, %v6598_v7 }
 0x287   : > { %vm2417_vm7 = vweird.f32 %v6598_v7  ;;  %v2691_v28 = vsub.f32 1.0, %v2675_v15  ;;  %v2399_v3 = vsub.f32 1.0, %v2398_v10  ;;  %v2421_v46 = vand.u32 2147483647, %v6598_v7 }
 0x288   : > { %v2423_v51 = vand.u32 2147483648, %v6598_v7  ;;  %v2692_v43 = vsub.f32 1.0, %v2676_v38  ;;  %v2409_v53 = vor.u32 1.1754944e-38, %v2408_v12  ;;  %v2414_v24 = vsub.f32 1.0, %v2413_v18 }
 0x289   : > { %v6663_v60 = vmul.f32 0.70710677, %v6647_v31  ;;  %v2723_v44 = vsub.f32 0.0, %v2691_v28  ;;  %v2400_v19 = vmul.f32 %v3847_v61, %v2399_v3  ;;  %vm2403_vm8 = vweird.f32 %v3847_v61 }
 0x28a   : > { %v6666_v52 = vmul.f32 0.70710677, %v6652_v54  ;;  %v2724_v55 = vsub.f32 0.0, %v2692_v43  ;;  %v2415_v0 = vmul.f32 %v3849_v21, %v2414_v24  ;;  %vm2418_vm9 = vweird.f32 %v3849_v21  ;;  %vm2404_vm11 = vmor %vm2402_vm5, %vm2403_vm8 }
 0x28b   : > { %v6669_v16 = vand.u32 2147483647, %v6663_v60  ;;  %v2739_v50 = vsel %vm2707_vm0, %v2691_v28, %v2723_v44  ;;  %v2401_v56 = vadd.f32 %v3847_v61, %v2400_v19  ;;  %vm6673_vm10 = vcmp.eq.f32.partialorder %v2421_v46, 8.507059e+37  ;;  %vm2419_vm12 = vmor %vm2417_vm7, %vm2418_vm9 }
 0x28c   : > { %v6678_v2 = vand.u32 2147483647, %v6666_v52  ;;  %v2740_v59 = vsel %vm2708_vm4, %v2692_v43, %v2724_v55  ;;  %v2755_v26 = vadd.f32 1.0, %v2739_v50  ;;  %v2416_v42 = vadd.f32 %v3849_v21, %v2415_v0  ;;  %v7475_v55 = vld [vmem:[#allocation64_spill] sm:$0xff] }
 0x28d   : > { %v2199_v57 = vmul.f32 0.3275911, %v6669_v16  ;;  %v2756_v5 = vadd.f32 1.0, %v2740_v59  ;;  %v2405_v12 = vsel %vm2404_vm11, %v3847_v61, %v2401_v56  ;;  %v2424_v15 = vor.u32 1.1754944e-38, %v2423_v51 }
 0x28e   : > { %v2200_v10 = vmul.f32 0.3275911, %v6678_v2  ;;  %v2771_v38 = vmul.f32 %v2755_v26, %v2147_v58  ;;  %v6690_v45 = vsel %vm6654_vm6, %v2409_v53, %v2405_v12  ;;  %v2420_v18 = vsel %vm2419_vm12, %v3849_v21, %v2416_v42  ;;  %v7474_v21 = vld [vmem:[#allocation135_spill] sm:$0xff] }
 0x28f   : > { %v6692_v28 = vadd.f32 1.0, %v2199_v57  ;;  %v2772_v35 = vmul.f32 %v2756_v5, %v2148_v62  ;;  %v6696_v3 = vsel %vm6673_vm10, %v2424_v15, %v2420_v18  ;;  %v2469_v61 = vmul.f32 1.0614054, %v6690_v45  ;;  %v7480_v18 = vld [vmem:[#allocation87_spill] sm:$0xff] }
 0x290   : > { %v6699_v7 = vadd.f32 1.0, %v2200_v10  ;;  %v2787_v46 = vmul.f32 %v2771_v38, %v6627_v41  ;;  %v1922_v58 = vmul.f32 %v7388_v40, %v7434_v37  ;;  %v2470_v36 = vmul.f32 1.0614054, %v6696_v3  ;;  %v7478_v10 = vld [vmem:[#allocation71_spill] sm:$0xff] }
 0x291   : > { %3850 = vrcp.f32 %v6692_v28  ;;  %v1625_v62 = vadd.f32 %v7474_v21, %v6617_v29  ;;  %v2788_v51 = vmul.f32 %v2772_v35, %v6630_v33  ;;  %v2485_v43 = vadd.f32 -1.4531521, %v2469_v61 }
 0x292   : > { %v2629_v53 = vmul.f32 %v2613_v6, %v6580_v49  ;;  %v2803_v24 = vpack.c.bf16 %v2787_v46, %v2787_v46  ;;  %v2486_v44 = vadd.f32 -1.4531521, %v2470_v36  ;;  %v2630_v19 = vmul.f32 %v2614_v1, %v6583_v9 }
 0x293   : > { %3852 = vrcp.f32 %v6699_v7  ;;  %v1525_v37 = vmul.f32 %v7457_v48, %v6622_v32  ;;  %v2804_v41 = vpack.c.bf16 %v2788_v51, %v2788_v51  ;;  %v1952_v0 = vadd.f32 %v6640_v47, %v7475_v55  ;;  %v7477_v47 = vld [vmem:[#allocation49_spill] sm:$0xff] }
 0x294   : > { %v2501_v29 = vmul.f32 %v2485_v43, %v6690_v45  ;;  %v1954_v33 = vadd.f32 %v1922_v58, %v6606_v23  ;;  %v1990_v49 = vmul.f32 %v7398_v63, %v7451_v11  ;;  %v1992_v6 = vmul.f32 %v7398_v63, %v7453_v20 }
 0x295   : > { %v2502_v9 = vmul.f32 %v2486_v44, %v6696_v3  ;;  %v2855_v1 = vunpack.c.l.b16 %v2803_v24  ;;  %v2856_v50 = vunpack.c.l.b16 %v2804_v41  ;;  %v2657_v48 = vmul.f32 1.442695, %v2629_v53 }
 0x296   : > { %v2517_v56 = vadd.f32 1.4214138, %v2501_v29  ;;  %v1695_v59 = vadd.f32 %v7476_v25, %v1625_v62  ;;  %v1733_v26 = vmul.f32 %v7477_v47, %v7467_v27  ;;  %v2659_v23 = vmul.f32 1.442695, %v2630_v19 }
 0x297   : > { %v3851_v32 = vpop.eup %3850  ;;  %v2518_v42 = vadd.f32 1.4214138, %v2502_v9  ;;  %v1557_v57 = vadd.f32 %v1525_v37, %v6602_v13  ;;  %v2866_v11 = vpack.c.b16 %v2856_v50, %v2855_v1  ;;  %v7479_v38 = vrot.slane %v7478_v10, 1  ;;  %v7482_v10 = vld [vmem:[#allocation68_spill] sm:$0xff] }
 0x298   : > { %v2533_v5 = vmul.f32 %v2517_v56, %v6690_v45  ;;  %v2428_v12 = vmul.f32 %v3851_v32, %v6692_v28  ;;  %v7481_v35 = vrot.slane %v7480_v18, 1  ;;  %v2022_v46 = vadd.f32 %v1990_v49, %v1952_v0 }
 0x299   : > { %v3853_v15 = vpop.eup %3852  ;;  %v2024_v58 = vadd.f32 %v1992_v6, %v1954_v33  ;;  %v2534_v36 = vmul.f32 %v2518_v42, %v6696_v3  ;;  %2958 = vmatmul.bf16.gmra.mxu3 %v2866_v11  ;;  %3854 = vpow2.f32 %v2657_v48  ;;  %v2436_v43 = vand.u32 2147483647, %v6692_v28 }
 0x29a   : > { %v6734_v61 = vsel %vm1768_vm1, %v7481_v35, %v7479_v38  ;;  %v2549_v21 = vadd.f32 -0.28449672, %v2533_v5  ;;  %v2429_v13 = vsub.f32 1.0, %v2428_v12  ;;  %v2443_v62 = vmul.f32 %v3853_v15, %v6699_v7 }
 0x29b   : > { %v2550_v51 = vadd.f32 -0.28449672, %v2534_v36  ;;  %3856 = vpow2.f32 %v2659_v23  ;;  %v2438_v53 = vand.u32 2147483648, %v6692_v28  ;;  %vm2433_vm13 = vweird.f32 %v3851_v32 }
 0x29c   : > { %v2565_v24 = vmul.f32 %v2549_v21, %v6690_v45  ;;  %v2430_v44 = vmul.f32 %v3851_v32, %v2429_v13  ;;  %v2444_v19 = vsub.f32 1.0, %v2443_v62  ;;  %vm2432_vm14 = vweird.f32 %v6692_v28 }
 0x29d   : > { %v2566_v37 = vmul.f32 %v2550_v51, %v6696_v3  ;;  %v2451_v41 = vand.u32 2147483647, %v6699_v7  ;;  %v2453_v55 = vand.u32 2147483648, %v6699_v7  ;;  %vm2448_vm15 = vweird.f32 %v3853_v15  ;;  %vm2434_vm2 = vmor %vm2432_vm14, %vm2433_vm13 }
 0x29e   : > { %v2581_v0 = vadd.f32 0.2548296, %v2565_v24  ;;  %v2431_v29 = vadd.f32 %v3851_v32, %v2430_v44  ;;  %v2445_v33 = vmul.f32 %v3853_v15, %v2444_v19  ;;  %v2060_v49 = vmul.f32 %v7452_v39, %v6734_v61 }
 0x29f   : > { %v2582_v6 = vadd.f32 0.2548296, %v2566_v37  ;;  %v2439_v9 = vor.u32 1.1754944e-38, %v2438_v53  ;;  %vm2447_vm3 = vweird.f32 %v6699_v7  ;;  %v3855_v1 = vpop.eup %3854  ;;  %vm2437_vm0 = vcmp.eq.f32.partialorder %v2436_v43, 8.507059e+37 }
 0x2a0   : > { %v2597_v50 = vmul.f32 %v2581_v0, %v6690_v45  ;;  %v2435_v28 = vsel %vm2434_vm2, %v3851_v32, %v2431_v29  ;;  %v2446_v56 = vadd.f32 %v3853_v15, %v2445_v33  ;;  %vm2449_vm4 = vmor %vm2447_vm3, %vm2448_vm15  ;;  %v2454_v23 = vor.u32 1.1754944e-38, %v2453_v55  ;;  %v2934_v29 = vpop.f32.mrf.mxu2 }
 0x2a1   : > { %v3857_v48 = vpop.eup %3856  ;;  %v2598_v25 = vmul.f32 %v2582_v6, %v6696_v3  ;;  %v6750_v42 = vsel %vm2437_vm0, %v2439_v9, %v2435_v28  ;;  %v2615_v11 = vsub.f32 0.0, %v6669_v16  ;;  %vm2452_vm5 = vcmp.eq.f32.partialorder %v2451_v41, 8.507059e+37  ;;  %v7484_v6 = vld [vmem:[#allocation88_spill] sm:$0xff] }
 0x2a2   : > { %v2677_v5 = vmul.f32 %v3855_v1, %v2597_v50  ;;  %v2450_v12 = vsel %vm2449_vm4, %v3853_v15, %v2446_v56  ;;  %v2471_v7 = vmul.f32 1.0614054, %v6750_v42  ;;  %v2062_v45 = vmul.f32 %v7452_v39, %v7482_v10  ;;  %v7483_v15 = vld [vmem:[#allocation67_spill] sm:$0xff] }
 0x2a3   : > { %v2678_v32 = vmul.f32 %v3857_v48, %v2598_v25  ;;  %v6756_v38 = vsel %vm2452_vm5, %v2454_v23, %v2450_v12  ;;  %v2616_v18 = vsub.f32 0.0, %v6678_v2  ;;  %v1735_v3 = vmul.f32 %v7477_v47, %v7458_v17  ;;  %v6781_v23 = vld [vmem:[%s7485_s20] ss:$0 sm:$0xff] }
 0x2a4   : > { %v2693_v35 = vsub.f32 1.0, %v2677_v5  ;;  %v2472_v36 = vmul.f32 1.0614054, %v6756_v38  ;;  %v2487_v21 = vadd.f32 -1.4531521, %v2471_v7  ;;  %v1765_v13 = vadd.f32 %v1733_v26, %v1695_v59 }
 0x2a5   : > { %v1627_v62 = vadd.f32 %v7483_v15, %v1557_v57  ;;  %v2694_v51 = vsub.f32 1.0, %v2678_v32  ;;  %v2631_v43 = vmul.f32 %v2615_v11, %v6669_v16  ;;  %v2092_v53 = vadd.f32 %v2060_v49, %v2022_v46 }
 0x2a6   : > { %v2725_v24 = vsub.f32 0.0, %v2693_v35  ;;  %v2488_v44 = vadd.f32 -1.4531521, %v2472_v36  ;;  %v2503_v19 = vmul.f32 %v2487_v21, %v6750_v42  ;;  %v2094_v37 = vadd.f32 %v2062_v45, %v2024_v58 }
 0x2a7   : > { %vm2709_vm6 = vcmp.ge.f32.partialorder %v6570_v8, 0.0  ;;  %v2726_v41 = vsub.f32 0.0, %v2694_v51  ;;  %v2632_v47 = vmul.f32 %v2616_v18, %v6678_v2  ;;  %vm2710_vm7 = vcmp.ge.f32.partialorder %v6574_v4, 0.0 }
 0x2a8   : > { %v2741_v55 = vsel %vm2709_vm6, %v2693_v35, %v2725_v24  ;;  %v2504_v59 = vmul.f32 %v2488_v44, %v6756_v38  ;;  %v2519_v26 = vadd.f32 1.4214138, %v2503_v19  ;;  %v2149_v57 = vmul.f32 0.5, %v6560_v34 }
 0x2a9   : > { %v2742_v16 = vsel %vm2710_vm7, %v2694_v51, %v2726_v41  ;;  %v2757_v46 = vadd.f32 1.0, %v2741_v55  ;;  %v2661_v0 = vmul.f32 1.442695, %v2631_v43  ;;  %v2150_v33 = vmul.f32 0.5, %v6564_v30 }
 0x2aa   : > { %v2758_v58 = vadd.f32 1.0, %v2742_v16  ;;  %v2520_v49 = vadd.f32 1.4214138, %v2504_v59  ;;  %v2535_v8 = vmul.f32 %v2519_v26, %v6750_v42  ;;  %v1697_v2 = vadd.f32 %v7484_v6, %v1627_v62 }
 0x2ab   : > { %v2130_v4 = vadd.f32 %v7415_v14, %v2092_v53  ;;  %v2773_v9 = vmul.f32 %v2757_v46, %v2149_v57  ;;  %v2663_v1 = vmul.f32 1.442695, %v2632_v47  ;;  %v2132_v50 = vadd.f32 %v7415_v14, %v2094_v37 }
 0x2ac   : > { %v2774_v28 = vmul.f32 %v2758_v58, %v2150_v33  ;;  %v2536_v34 = vmul.f32 %v2520_v49, %v6756_v38  ;;  %v2551_v56 = vadd.f32 -0.28449672, %v2535_v8  ;;  %v1826_v48 = vrot.slane %v7467_v27, 1 }
 0x2ad   : > { %v1827_v30 = vrot.slane %v7458_v17, 1  ;;  %v2789_v25 = vmul.f32 %v2773_v9, %v2130_v4  ;;  %3858 = vpow2.f32 %v2661_v0  ;;  %v1767_v7 = vadd.f32 %v1735_v3, %v1697_v2  ;;  %v2936_v3 = vpop.f32.mrf.mxu2 }
 0x2ae   : > { %v2790_v11 = vmul.f32 %v2774_v28, %v2132_v50  ;;  %v2552_v5 = vadd.f32 -0.28449672, %v2536_v34  ;;  %v2567_v12 = vmul.f32 %v2551_v56, %v6750_v42  ;;  %v1926_v45 = vmul.f32 %v7388_v40, %v7453_v20 }
 0x2af   : > { %v2805_v32 = vpack.c.bf16 %v2789_v25, %v2789_v25  ;;  %3860 = vpow2.f32 %v2663_v1  ;;  %v1956_v27 = vadd.f32 %v6612_v22, %v1765_v13  ;;  %v1828_v21 = vsel %vm1768_vm1, %v1826_v48, %v1827_v30 }
 0x2b0   : > { %v2806_v17 = vpack.c.bf16 %v2790_v11, %v2790_v11  ;;  %v2568_v18 = vmul.f32 %v2552_v5, %v6756_v38  ;;  %v2583_v35 = vadd.f32 0.2548296, %v2567_v12  ;;  %v1994_v15 = vmul.f32 %v7398_v63, %v6734_v61 }
 0x2b1   : > { %v2857_v36 = vunpack.c.l.b16 %v2805_v32  ;;  %v2935_v62 = vadd.f32 %v6781_v23, %v2934_v29  ;;  %v2937_v20 = vadd.f32 %v6781_v23, %v2936_v3  ;;  %v1996_v13 = vmul.f32 %v7398_v63, %v7482_v10 }
 0x2b2   : > { %v2858_v51 = vunpack.c.l.b16 %v2806_v17  ;;  %v2584_v43 = vadd.f32 0.2548296, %v2568_v18  ;;  %v2599_v40 = vmul.f32 %v2583_v35, %v6750_v42  ;;  %v1888_v53 = vsel %vm1768_vm1, %v1827_v30, 0.0 }
 0x2b3   : > { %v3859_v22 = vpop.eup %3858  ;;  %v1958_v24 = vadd.f32 %v1926_v45, %v1767_v7  ;;  %v3572_v37 = vpack.c.bf16 %v2937_v20, %v2935_v62  ;;  %v2026_v47 = vadd.f32 %v1994_v15, %v1956_v27  ;;  %v2064_v55 = vmul.f32 %v7452_v39, %v1828_v21 }
 0x2b4   : > { %v2867_v44 = vpack.c.b16 %v2858_v51, %v2857_v36  ;;  %v2600_v61 = vmul.f32 %v2584_v43, %v6756_v38  ;;  %v2679_v19 = vmul.f32 %v3859_v22, %v2599_v40  ;;  %v2066_v63 = vmul.f32 %v7452_v39, %v1888_v53 }
 0x2b5   : > { %v3861_v41 = vpop.eup %3860  ;;  %3573 = vst [vmem:[%s6801_s29] sm:$0xff] %v3572_v37   ;;  %v2028_v10 = vadd.f32 %v1996_v13, %v1958_v24  ;;  %v2096_v38 = vadd.f32 %v2064_v55, %v2026_v47  ;;  %vm2711_vm1 = vcmp.ge.f32.partialorder %v6663_v60, 0.0  ;;  %v2939_v16 = vpop.f32.mrf.mxu2  ;;  %v2151_v33 = vmul.f32 0.5, %v6647_v31 }
 0x2b6   : > { %2963 = vmatmul.bf16.gmra.mxu3 %v2867_v44  ;;  %v2680_v42 = vmul.f32 %v3861_v41, %v2600_v61  ;;  %v2695_v59 = vsub.f32 1.0, %v2679_v19  ;;  %vm2712_vm8 = vcmp.ge.f32.partialorder %v6666_v52, 0.0  ;;  %v2152_v39 = vmul.f32 0.5, %v6652_v54 }
 0x2b7   : > { %v2098_v29 = vadd.f32 %v2066_v63, %v2028_v10  ;;  %v2134_v8 = vadd.f32 %v7415_v14, %v2096_v38  ;;  %v2940_v31 = vadd.f32 %v6781_v23, %v2939_v16 }
 0x2b8   : > { %v2696_v26 = vsub.f32 1.0, %v2680_v42  ;;  %v2727_v57 = vsub.f32 0.0, %v2695_v59 }
 0x2b9   : > { %v2136_v4 = vadd.f32 %v7415_v14, %v2098_v29 }
 0x2ba   : > { %v2728_v46 = vsub.f32 0.0, %v2696_v26  ;;  %v2743_v0 = vsel %vm2711_vm1, %v2695_v59, %v2727_v57 }
 0x2bb   : > { %v2759_v58 = vadd.f32 1.0, %v2743_v0 }
 0x2bc   : > { %v2744_v49 = vsel %vm2712_vm8, %v2696_v26, %v2728_v46 }
 0x2bd   : > { %v2760_v6 = vadd.f32 1.0, %v2744_v49  ;;  %v2775_v2 = vmul.f32 %v2759_v58, %v2151_v33  ;;  %v2941_v28 = vpop.f32.mrf.mxu2 }
 0x2be   : > { %v2942_v52 = vadd.f32 %v6781_v23, %v2941_v28 }
 0x2bf   : > { %v2776_v60 = vmul.f32 %v2760_v6, %v2152_v39  ;;  %v2791_v9 = vmul.f32 %v2775_v2, %v2134_v8 }
 0x2c0   : > { %v3577_v56 = vpack.c.bf16 %v2942_v52, %v2940_v31 }
 0x2c1   : > { %v2792_v1 = vmul.f32 %v2776_v60, %v2136_v4  ;;  %v2807_v50 = vpack.c.bf16 %v2791_v9, %v2791_v9 }
 0x2c2   : > { %3609 = vst [vmem:[%s6801_s29 + $0x8] sm:$0xff] %v3577_v56  }
 0x2c3   : > { %v2808_v34 = vpack.c.bf16 %v2792_v1, %v2792_v1  ;;  %v2859_v48 = vunpack.c.l.b16 %v2807_v50 }
 0x2c5   : > { %v2860_v30 = vunpack.c.l.b16 %v2808_v34  ;;  %v2944_v25 = vpop.f32.mrf.mxu2 }
 0x2c6   : > { %v2945_v11 = vadd.f32 %v6781_v23, %v2944_v25 }
 0x2c7   : > { %v2868_v54 = vpack.c.b16 %v2860_v30, %v2859_v48 }
 0x2c9   : > { %2968 = vmatmul.bf16.gmra.mxu3 %v2868_v54 }
 0x2cd   : > { %v2946_v14 = vpop.f32.mrf.mxu2 }
 0x2ce   : > { %v2947_v5 = vadd.f32 %v6781_v23, %v2946_v14 }
 0x2d0   : > { %v3582_v12 = vpack.c.bf16 %v2947_v5, %v2945_v11 }
 0x2d2   : > { %3610 = vst [vmem:[%s6801_s29 + $0x10] sm:$0xff] %v3582_v12  }
 0x2ed   : > { %v2949_v7 = vpop.f32.mrf.mxu2 }
 0x2ee   : > { %v2950_v32 = vadd.f32 %v6781_v23, %v2949_v7 }
 0x2f5   : > { %v2951_v45 = vpop.f32.mrf.mxu2 }
 0x2f6   : > { %v2952_v27 = vadd.f32 %v6781_v23, %v2951_v45 }
 0x2f8   : > { %v3587_v17 = vpack.c.bf16 %v2952_v27, %v2950_v32 }
 0x2fa   : > { %3611 = vst [vmem:[%s6801_s29 + $0x18] sm:$0xff] %v3587_v17  }
 0x2fe   : > { %v2954_v18 = vpop.f32.mrf.mxu3 }
 0x2ff   : > { %v2955_v36 = vadd.f32 %v6781_v23, %v2954_v18 }
 0x306   : > { %v2956_v35 = vpop.f32.mrf.mxu3 }
 0x307   : > { %v2957_v21 = vadd.f32 %v6781_v23, %v2956_v35 }
 0x309   : > { %v3592_v15 = vpack.c.bf16 %v2957_v21, %v2955_v36 }
 0x30b   : > { %3612 = vst [vmem:[%s6801_s29 + $0x20] sm:$0xff] %v3592_v15  }
 0x31c   : > { %v2959_v62 = vpop.f32.mrf.mxu3 }
 0x31d   : > { %v2960_v51 = vadd.f32 %v6781_v23, %v2959_v62 }
 0x324   : > { %v2961_v3 = vpop.f32.mrf.mxu3 }
 0x325   : > { %v2962_v43 = vadd.f32 %v6781_v23, %v2961_v3 }
 0x327   : > { %v3597_v40 = vpack.c.bf16 %v2962_v43, %v2960_v51 }
 0x329   : > { %3613 = vst [vmem:[%s6801_s29 + $0x28] sm:$0xff] %v3597_v40  }
 0x339   : > { %v2964_v20 = vpop.f32.mrf.mxu3 }
 0x33a   : > { %v2965_v13 = vadd.f32 %v6781_v23, %v2964_v20 }
 0x341   : > { %v2966_v22 = vpop.f32.mrf.mxu3 }
 0x342   : > { %v2967_v53 = vadd.f32 %v6781_v23, %v2966_v22 }
 0x344   : > { %v3602_v24 = vpack.c.bf16 %v2967_v53, %v2965_v13 }
 0x346   : > { %3614 = vst [vmem:[%s6801_s29 + $0x30] sm:$0xff] %v3602_v24  }
 0x34c   : > { %v2969_v44 = vpop.f32.mrf.mxu3 }
 0x34d   : > { %v2970_v19 = vadd.f32 %v6781_v23, %v2969_v44 }
 0x354   : > { %v2971_v61 = vpop.f32.mrf.mxu3 }
 0x355   : > { %v2972_v37 = vadd.f32 %v6781_v23, %v2971_v61 }
 0x357   : > { %v3607_v41 = vpack.c.bf16 %v2972_v37, %v2970_v19 }
 0x359   : > { %3615 = vst [vmem:[%s6801_s29 + $0x38] sm:$0xff] %v3607_v41  }
 0x35a   : > { %4069 = shalt.err (!%p4066_p13)
}
 0x35b   : > { %s4213_s12 = smov 64   ;;  %s4214_s20 = smov 4  }
 0x35c   : > { %3642 = dma.vmem_to_hbm [thread:$0]  (%p4469_p5), %s3023_s1, 1024, %s3025_s18, %s3007_s23, %s4213_s12, %s4213_s12, %s4214_s20  }
 0x35d PF: > { %p3675_p12 = scmp.ge.s32.totalorder %s4204_s22, 2  ;;  %s3039_s29 = sand.u32 1, %s4176_s15  }
 0x35e   : > { %s3040_s19 = scalar_lea.sflag [#allocation5], %s3039_s29 }
 0x35f   : > { %p3665_p7 = pnand %p3675_p12, %p4473_p11 }
 0x361   : > { %p3666_p6 = pneg %p3665_p7 }
 0x363   : > { %4147 = dma.done.wait (%p3666_p6), %s3040_s19, 1024  }
 0x364   : > { %4149 = vsyncadd (%p3666_p6), %s3040_s19, 4294966272  ;;  %s30_s22 = sadd.s32 1, %s4204_s22   ;;  %s7489_s30 = sld [smem:[#allocation22_spill]] }
 0x365   : > { %p6854_p1 = scmp.ge.s32.totalorder %s30_s22, 6   ;;  %s7490_s12 = sld [smem:[#allocation23_spill]] }
 0x366   : > { %s7491_s13 = sld [smem:[#allocation24_spill]]  ;;  %s7498_s10 = smov %s4160_s11 }
 0x367   : > { %s7492_s4 = sld [smem:[#allocation35_spill]]  ;;  %s7499_s11 = smov %s4515_s14 }
 0x368   : > { %s7493_s0 = sld [smem:[#allocation36_spill]]  ;;  %s7501_s15 = smov %s4180_s16 }
 0x369   : > { %s7494_s18 = sld [smem:[#allocation27_spill]]  ;;  %s7502_s16 = smov %s4184_s17 }
 0x36a   : > { %s7495_s19 = sld [smem:[#allocation28_spill]]  ;;  %29 = sbr.rel (!%p6854_p1) target bundleno = 25 (0x19), region = 139 }
 0x36b   : > { %s7496_s20 = sld [smem:[#allocation30_spill]] }
 0x36c   : > { %s7497_s21 = sld [smem:[#allocation31_spill]] }
 0x36d   : > { %s7500_s14 = smov %s7492_s4 }
 0x36e   : > { %s7503_s17 = smov %s7493_s0 }
 0x36f   :  { %3046 = vsyncpa [#allocation4], 1 }
 0x370   :  { %3048 = vsyncpa [#allocation4 + $0x1], 1 }
 0x371   :  { %3049 = vsyncpa [#allocation7], 1 }
 0x372   :  { %3051 = vsyncpa [#allocation7 + $0x1], 1 }
 0x373   :  { %3052 = vsyncpa [#allocation10], 1 }
 0x374   :  { %3053 = vsyncpa [#allocation13], 1 }
 0x375   :  { %3054 = vsyncpa [#allocation5], 1 }
 0x376   :  { %3056 = vsyncpa [#allocation5 + $0x1], 1 }

</bundles_post_ra>
